<compile_context>
chip_gen: v6e
topology: v6e:2x2x1
jax: 0.10.0
libtpu: 0.0.40
codegen_flags: <defaults>
</compile_context>

<pallas_src>
import jax
import jax.numpy as jnp
from jax import lax
from jax.experimental import pallas as pl
from jax.experimental.pallas import tpu as pltpu

HIDDEN_SIZE = 128
INPUT_SIZE = 1
NUM_LAYERS = 2
OUTPUT_SIZE = 1


def _sigmoid(x):
    # One EUP transcendental per gate (tanh); avoids exp + divide lowering.
    return 0.5 * (1.0 + jnp.tanh(0.5 * x))


def _gru_kernel(gi0_ref,                       # (T, BB, 3H) f32, layer-0 input gates (biases folded)
                b0hn_ref,                      # (1, H)  f32, b_hh_l0[n]
                whh0_ref, wih1_ref, whh1_ref,  # (H, 3H) bf16  (kept in VMEM, loaded per use)
                b1rz_ref, b1in_ref, b1hn_ref,  # (1,2H)/(1,H)/(1,H) f32
                h_ref):                        # (BB, H) f32  -> last-step top-layer hidden
    T, BB, _ = gi0_ref.shape
    H = whh0_ref.shape[0]

    # Pre-broadcast biases once, outside the (unrolled) time loop
    # (JAX does not CSE broadcast_in_dim inside loops).
    b0_hn = jnp.broadcast_to(b0hn_ref[...], (BB, H))
    b1_rz = jnp.broadcast_to(b1rz_ref[...], (BB, 2 * H))
    b1_in = jnp.broadcast_to(b1in_ref[...], (BB, H))
    b1_hn = jnp.broadcast_to(b1hn_ref[...], (BB, H))

    h0 = jnp.zeros((BB, H), jnp.float32)
    h1 = jnp.zeros((BB, H), jnp.float32)

    # Fully unrolled time loop (T static, small) -> all MXU/EUP work visible to the scheduler.
    for t in range(T):
        gi0 = gi0_ref[t]                                       # (BB, 3H), static index

        # Both gh matmuls depend only on the carried state -> issue them up-front so the
        # second one overlaps with layer-0 gate math. Weight refs are indexed at the call
        # site so the bf16 weights stream from VMEM instead of living in vregs.
        gh0 = jnp.dot(h0.astype(jnp.bfloat16), whh0_ref[...],
                      preferred_element_type=jnp.float32)
        gh1 = jnp.dot(h1.astype(jnp.bfloat16), whh1_ref[...],
                      preferred_element_type=jnp.float32)

        # ---- layer 0 (PyTorch gate order r, z, n; input+hidden biases pre-summed in gi0) ----
        rz0 = _sigmoid(gi0[:, :2 * H] + gh0[:, :2 * H])
        r0 = rz0[:, :H]
        z0 = rz0[:, H:]
        n0 = jnp.tanh(gi0[:, 2 * H:] + r0 * (gh0[:, 2 * H:] + b0_hn))
        h0 = (1.0 - z0) * n0 + z0 * h0

        # ---- layer 1 (input = new layer-0 hidden) ----
        gi1 = jnp.dot(h0.astype(jnp.bfloat16), wih1_ref[...],
                      preferred_element_type=jnp.float32)
        rz1 = _sigmoid(gi1[:, :2 * H] + gh1[:, :2 * H] + b1_rz)
        r1 = rz1[:, :H]
        z1 = rz1[:, H:]
        n1 = jnp.tanh(gi1[:, 2 * H:] + b1_in + r1 * (gh1[:, 2 * H:] + b1_hn))
        h1 = (1.0 - z1) * n1 + z1 * h1

    # Lane-dense (BB, 128) output -> unmasked full-vreg stores; fc head done in the wrapper.
    h_ref[...] = h1


def _tensorcores_per_chip():
    """2 TensorCores on v7x; 1 on v5e/v6e (the chips we target)."""
    try:
        kind = jax.devices()[0].device_kind.lower()
    except Exception:
        return 1
    return 2 if "v7" in kind else 1


def _choose_batch_block(b_padded, num_cores):
    bb = b_padded
    # Split across TensorCores only when each core still gets >= 8 sublanes.
    if num_cores > 1 and b_padded % (8 * num_cores) == 0:
        bb = b_padded // num_cores
    # Cap rows per block near MXU height; keep blocks a multiple of 8 sublanes.
    while bb > 256 and (bb // 2) % 8 == 0 and b_padded % (bb // 2) == 0:
        bb //= 2
    return bb


def gru_forward(x, params):
    """x: (B, T, I) float32 (batch_first, like PyTorch). Returns (B, output_size)."""
    B, T, I = x.shape
    H = HIDDEN_SIZE

    # Pad batch to a multiple of 8 sublanes (avoids masked sublane ops for odd batches).
    B_pad = ((B + 7) // 8) * 8
    if B_pad != B:
        x = jnp.pad(x, ((0, B_pad - B), (0, 0), (0, 0)))

    BB = _choose_batch_block(B_pad, _tensorcores_per_chip())
    grid = (B_pad // BB,)

    # ---- hoisted layer-0 input projection: one batched matmul over all T steps ----
    x_tm = jnp.transpose(x, (1, 0, 2)).astype(jnp.float32)          # (T, B_pad, I)
    wih0_T = params["w_ih_l0"].T.astype(jnp.float32)                # (I, 3H)
    b0_gi = jnp.concatenate([
        params["b_ih_l0"][:2 * H] + params["b_hh_l0"][:2 * H],      # r,z: both biases folded
        params["b_ih_l0"][2 * H:],                                  # n: input bias only
    ])
    gi0 = x_tm @ wih0_T + b0_gi                                     # (T, B_pad, 3H) f32

    # ---- remaining weights / pre-combined biases ----
    b0_hn = params["b_hh_l0"][2 * H:][None, :]                      # (1, H)
    whh0_T = params["w_hh_l0"].T.astype(jnp.bfloat16)               # (H, 3H)
    wih1_T = params["w_ih_l1"].T.astype(jnp.bfloat16)               # (H, 3H)
    whh1_T = params["w_hh_l1"].T.astype(jnp.bfloat16)               # (H, 3H)
    b1_rz = (params["b_ih_l1"][:2 * H] + params["b_hh_l1"][:2 * H])[None, :]   # (1, 2H)
    b1_in = params["b_ih_l1"][2 * H:][None, :]                      # (1, H)
    b1_hn = params["b_hh_l1"][2 * H:][None, :]                      # (1, H)

    in_specs = [
        pl.BlockSpec((T, BB, 3 * H), lambda i: (0, i, 0)),   # gi0: sliced along batch
        pl.BlockSpec((1, H), lambda i: (0, 0)),              # b0_hn
        pl.BlockSpec((H, 3 * H), lambda i: (0, 0)),          # whh0
        pl.BlockSpec((H, 3 * H), lambda i: (0, 0)),          # wih1
        pl.BlockSpec((H, 3 * H), lambda i: (0, 0)),          # whh1
        pl.BlockSpec((1, 2 * H), lambda i: (0, 0)),          # b1_rz
        pl.BlockSpec((1, H), lambda i: (0, 0)),              # b1_in
        pl.BlockSpec((1, H), lambda i: (0, 0)),              # b1_hn
    ]
    out_specs = pl.BlockSpec((BB, H), lambda i: (i, 0))

    h_last = pl.pallas_call(
        _gru_kernel,
        out_shape=jax.ShapeDtypeStruct((B_pad, H), jnp.float32),
        grid=grid,
        in_specs=in_specs,
        out_specs=out_specs,
        compiler_params=pltpu.CompilerParams(dimension_semantics=("parallel",)),
    )(gi0, b0_hn, whh0_T, wih1_T, whh1_T, b1_rz, b1_in, b1_hn)

    # fc head on the last time step of the top layer: tiny (H -> 1) matmul, plain XLA.
    out = h_last[:B] @ params["w_fc"].T + params["b_fc"]
    return out


def init_params(key, input_size, hidden_size, output_size):
    ks = jax.random.split(key, 11)
    H = hidden_size
    scale = 1.0 / jnp.sqrt(jnp.float32(H))

    def u(k, shape):
        return jax.random.uniform(k, shape, jnp.float32, -scale, scale)

    return {
        "w_ih_l0": u(ks[0], (3 * H, input_size)),
        "w_hh_l0": u(ks[1], (3 * H, H)),
        "b_ih_l0": u(ks[2], (3 * H,)),
        "b_hh_l0": u(ks[3], (3 * H,)),
        "w_ih_l1": u(ks[4], (3 * H, H)),
        "w_hh_l1": u(ks[5], (3 * H, H)),
        "b_ih_l1": u(ks[6], (3 * H,)),
        "b_hh_l1": u(ks[7], (3 * H,)),
        "w_fc":    u(ks[8], (output_size, H)),
        "b_fc":    u(ks[9], (output_size,)),
    }


def gru_reference(x, params):
    """Pure-JAX f32 reference matching torch.nn.GRU(batch_first=True) + Linear."""
    H = HIDDEN_SIZE

    def cell(x_t, h, w_ih, w_hh, b_ih, b_hh):
        gi = x_t @ w_ih.T + b_ih
        gh = h @ w_hh.T + b_hh
        r = jax.nn.sigmoid(gi[:, :H] + gh[:, :H])
        z = jax.nn.sigmoid(gi[:, H:2 * H] + gh[:, H:2 * H])
        n = jnp.tanh(gi[:, 2 * H:] + r * gh[:, 2 * H:])
        return (1.0 - z) * n + z * h

    B, T, _ = x.shape
    h0 = jnp.zeros((B, H), jnp.float32)
    h1 = jnp.zeros((B, H), jnp.float32)

    def scan_step(carry, x_t):
        h0, h1 = carry
        h0 = cell(x_t, h0, params["w_ih_l0"], params["w_hh_l0"],
                  params["b_ih_l0"], params["b_hh_l0"])
        h1 = cell(h0, h1, params["w_ih_l1"], params["w_hh_l1"],
                  params["b_ih_l1"], params["b_hh_l1"])
        return (h0, h1), None

    (h0, h1), _ = lax.scan(scan_step, (h0, h1), jnp.transpose(x, (1, 0, 2)))
    return h1 @ params["w_fc"].T + params["b_fc"]


if __name__ == "__main__":
    key = jax.random.PRNGKey(0)
    k_x, k_p = jax.random.split(key)

    batch, seq = 16, 8
    x = jax.random.normal(k_x, (batch, seq, INPUT_SIZE), jnp.float32)
    params = init_params(k_p, INPUT_SIZE, HIDDEN_SIZE, OUTPUT_SIZE)

    out = jax.block_until_ready(gru_forward(x, params))
    ref = jax.block_until_ready(gru_reference(x, params))

    assert out.shape == (batch, OUTPUT_SIZE)
    # bf16 recurrent-weight operands -> bf16-level tolerance vs f32 reference.
    assert jnp.allclose(out, ref, atol=2e-2, rtol=2e-2), (out, ref)
    print("KERNEL_OK")
</pallas_src>

<mosaic_0001>
module attributes {stable_mosaic.version = 11 : i64} {
  func.func @_gru_kernel(%arg0: i32, %arg1: memref<8x16x384xf32, #tpu.memory_space<vmem>>, %arg2: memref<1x128xf32, #tpu.memory_space<vmem>>, %arg3: memref<128x384xbf16, #tpu.memory_space<vmem>>, %arg4: memref<128x384xbf16, #tpu.memory_space<vmem>>, %arg5: memref<128x384xbf16, #tpu.memory_space<vmem>>, %arg6: memref<1x256xf32, #tpu.memory_space<vmem>>, %arg7: memref<1x128xf32, #tpu.memory_space<vmem>>, %arg8: memref<1x128xf32, #tpu.memory_space<vmem>>, %arg9: memref<16x128xf32, #tpu.memory_space<vmem>>) attributes {dimension_semantics = [#tpu.dimension_semantics<parallel>], iteration_bounds = array<i64: 1>, scalar_prefetch = 0 : i64, scratch_operands = 0 : i64, tpu.core_type = #tpu.core_type<tc>, window_params = [{transform_indices = @transform_0, window_bounds = array<i64: 8, 16, 384>}, {pipeline_mode = #tpu.pipeline_mode<synchronous>, transform_indices = @transform_1, window_bounds = array<i64: 1, 128>}, {pipeline_mode = #tpu.pipeline_mode<synchronous>, transform_indices = @transform_2, window_bounds = array<i64: 128, 384>}, {pipeline_mode = #tpu.pipeline_mode<synchronous>, transform_indices = @transform_3, window_bounds = array<i64: 128, 384>}, {pipeline_mode = #tpu.pipeline_mode<synchronous>, transform_indices = @transform_4, window_bounds = array<i64: 128, 384>}, {pipeline_mode = #tpu.pipeline_mode<synchronous>, transform_indices = @transform_5, window_bounds = array<i64: 1, 256>}, {pipeline_mode = #tpu.pipeline_mode<synchronous>, transform_indices = @transform_6, window_bounds = array<i64: 1, 128>}, {pipeline_mode = #tpu.pipeline_mode<synchronous>, transform_indices = @transform_7, window_bounds = array<i64: 1, 128>}, {transform_indices = @transform_8, window_bounds = array<i64: 16, 128>}]} {
    %c0 = arith.constant 0 : index
    %c0_0 = arith.constant 0 : index
    %0 = vector.load %arg2[%c0, %c0_0] : memref<1x128xf32, #tpu.memory_space<vmem>>, vector<1x128xf32>
    %1 = vector.shape_cast %0 : vector<1x128xf32> to vector<1x128xf32>
    %2 = vector.broadcast %1 : vector<1x128xf32> to vector<16x128xf32>
    %c0_1 = arith.constant 0 : index
    %c0_2 = arith.constant 0 : index
    %3 = vector.load %arg6[%c0_1, %c0_2] : memref<1x256xf32, #tpu.memory_space<vmem>>, vector<1x256xf32>
    %4 = vector.shape_cast %3 : vector<1x256xf32> to vector<1x256xf32>
    %5 = vector.broadcast %4 : vector<1x256xf32> to vector<16x256xf32>
    %c0_3 = arith.constant 0 : index
    %c0_4 = arith.constant 0 : index
    %6 = vector.load %arg7[%c0_3, %c0_4] : memref<1x128xf32, #tpu.memory_space<vmem>>, vector<1x128xf32>
    %7 = vector.shape_cast %6 : vector<1x128xf32> to vector<1x128xf32>
    %8 = vector.broadcast %7 : vector<1x128xf32> to vector<16x128xf32>
    %c0_5 = arith.constant 0 : index
    %c0_6 = arith.constant 0 : index
    %9 = vector.load %arg8[%c0_5, %c0_6] : memref<1x128xf32, #tpu.memory_space<vmem>>, vector<1x128xf32>
    %10 = vector.shape_cast %9 : vector<1x128xf32> to vector<1x128xf32>
    %11 = vector.broadcast %10 : vector<1x128xf32> to vector<16x128xf32>
    %cst = arith.constant 0.000000e+00 : f32
    %12 = vector.broadcast %cst : f32 to vector<16x128xf32>
    %cst_7 = arith.constant 0.000000e+00 : f32
    %13 = vector.broadcast %cst_7 : f32 to vector<16x128xf32>
    %c0_8 = arith.constant 0 : index
    %c0_9 = arith.constant 0 : index
    %c0_10 = arith.constant 0 : index
    %14 = vector.load %arg1[%c0_8, %c0_9, %c0_10] : memref<8x16x384xf32, #tpu.memory_space<vmem>>, vector<1x16x384xf32>
    %15 = vector.shape_cast %14 : vector<1x16x384xf32> to vector<16x384xf32>
    %16 = arith.truncf %12 : vector<16x128xf32> to vector<16x128xbf16>
    %c0_11 = arith.constant 0 : index
    %c0_12 = arith.constant 0 : index
    %17 = vector.load %arg3[%c0_11, %c0_12] : memref<128x384xbf16, #tpu.memory_space<vmem>>, vector<128x384xbf16>
    %cst_13 = arith.constant dense<0.000000e+00> : vector<16x384xf32>
    %18 = tpu.matmul %16, %17, %cst_13 {dimension_numbers = #tpu.dot_dimension_numbers<[1], [0], [0], [1], [0, 0, 1, 1], [], []>} : vector<16x128xbf16>, vector<128x384xbf16>, vector<16x384xf32> -> vector<16x384xf32>
    %19 = arith.truncf %13 : vector<16x128xf32> to vector<16x128xbf16>
    %c0_14 = arith.constant 0 : index
    %c0_15 = arith.constant 0 : index
    %20 = vector.load %arg5[%c0_14, %c0_15] : memref<128x384xbf16, #tpu.memory_space<vmem>>, vector<128x384xbf16>
    %cst_16 = arith.constant dense<0.000000e+00> : vector<16x384xf32>
    %21 = tpu.matmul %19, %20, %cst_16 {dimension_numbers = #tpu.dot_dimension_numbers<[1], [0], [0], [1], [0, 0, 1, 1], [], []>} : vector<16x128xbf16>, vector<128x384xbf16>, vector<16x384xf32> -> vector<16x384xf32>
    %22 = vector.extract_strided_slice %15 {offsets = [0, 0], sizes = [16, 256], strides = [1, 1]} : vector<16x384xf32> to vector<16x256xf32>
    %23 = vector.extract_strided_slice %18 {offsets = [0, 0], sizes = [16, 256], strides = [1, 1]} : vector<16x384xf32> to vector<16x256xf32>
    %24 = arith.addf %22, %23 : vector<16x256xf32>
    %cst_17 = arith.constant 5.000000e-01 : f32
    %25 = vector.broadcast %cst_17 : f32 to vector<16x256xf32>
    %26 = arith.mulf %25, %24 : vector<16x256xf32>
    %27 = math.tanh %26 : vector<16x256xf32>
    %cst_18 = arith.constant 1.000000e+00 : f32
    %28 = vector.broadcast %cst_18 : f32 to vector<16x256xf32>
    %29 = arith.addf %28, %27 : vector<16x256xf32>
    %cst_19 = arith.constant 5.000000e-01 : f32
    %30 = vector.broadcast %cst_19 : f32 to vector<16x256xf32>
    %31 = arith.mulf %30, %29 : vector<16x256xf32>
    %32 = vector.extract_strided_slice %31 {offsets = [0, 0], sizes = [16, 128], strides = [1, 1]} : vector<16x256xf32> to vector<16x128xf32>
    %33 = vector.extract_strided_slice %31 {offsets = [0, 128], sizes = [16, 128], strides = [1, 1]} : vector<16x256xf32> to vector<16x128xf32>
    %34 = vector.extract_strided_slice %15 {offsets = [0, 256], sizes = [16, 128], strides = [1, 1]} : vector<16x384xf32> to vector<16x128xf32>
    %35 = vector.extract_strided_slice %18 {offsets = [0, 256], sizes = [16, 128], strides = [1, 1]} : vector<16x384xf32> to vector<16x128xf32>
    %36 = arith.addf %35, %2 : vector<16x128xf32>
    %37 = arith.mulf %32, %36 : vector<16x128xf32>
    %38 = arith.addf %34, %37 : vector<16x128xf32>
    %39 = math.tanh %38 : vector<16x128xf32>
    %cst_20 = arith.constant 1.000000e+00 : f32
    %40 = vector.broadcast %cst_20 : f32 to vector<16x128xf32>
    %41 = arith.subf %40, %33 : vector<16x128xf32>
    %42 = arith.mulf %41, %39 : vector<16x128xf32>
    %43 = arith.mulf %33, %12 : vector<16x128xf32>
    %44 = arith.addf %42, %43 : vector<16x128xf32>
    %45 = arith.truncf %44 : vector<16x128xf32> to vector<16x128xbf16>
    %c0_21 = arith.constant 0 : index
    %c0_22 = arith.constant 0 : index
    %46 = vector.load %arg4[%c0_21, %c0_22] : memref<128x384xbf16, #tpu.memory_space<vmem>>, vector<128x384xbf16>
    %cst_23 = arith.constant dense<0.000000e+00> : vector<16x384xf32>
    %47 = tpu.matmul %45, %46, %cst_23 {dimension_numbers = #tpu.dot_dimension_numbers<[1], [0], [0], [1], [0, 0, 1, 1], [], []>} : vector<16x128xbf16>, vector<128x384xbf16>, vector<16x384xf32> -> vector<16x384xf32>
    %48 = vector.extract_strided_slice %47 {offsets = [0, 0], sizes = [16, 256], strides = [1, 1]} : vector<16x384xf32> to vector<16x256xf32>
    %49 = vector.extract_strided_slice %21 {offsets = [0, 0], sizes = [16, 256], strides = [1, 1]} : vector<16x384xf32> to vector<16x256xf32>
    %50 = arith.addf %48, %49 : vector<16x256xf32>
    %51 = arith.addf %50, %5 : vector<16x256xf32>
    %cst_24 = arith.constant 5.000000e-01 : f32
    %52 = vector.broadcast %cst_24 : f32 to vector<16x256xf32>
    %53 = arith.mulf %52, %51 : vector<16x256xf32>
    %54 = math.tanh %53 : vector<16x256xf32>
    %cst_25 = arith.constant 1.000000e+00 : f32
    %55 = vector.broadcast %cst_25 : f32 to vector<16x256xf32>
    %56 = arith.addf %55, %54 : vector<16x256xf32>
    %cst_26 = arith.constant 5.000000e-01 : f32
    %57 = vector.broadcast %cst_26 : f32 to vector<16x256xf32>
    %58 = arith.mulf %57, %56 : vector<16x256xf32>
    %59 = vector.extract_strided_slice %58 {offsets = [0, 0], sizes = [16, 128], strides = [1, 1]} : vector<16x256xf32> to vector<16x128xf32>
    %60 = vector.extract_strided_slice %58 {offsets = [0, 128], sizes = [16, 128], strides = [1, 1]} : vector<16x256xf32> to vector<16x128xf32>
    %61 = vector.extract_strided_slice %47 {offsets = [0, 256], sizes = [16, 128], strides = [1, 1]} : vector<16x384xf32> to vector<16x128xf32>
    %62 = arith.addf %61, %8 : vector<16x128xf32>
    %63 = vector.extract_strided_slice %21 {offsets = [0, 256], sizes = [16, 128], strides = [1, 1]} : vector<16x384xf32> to vector<16x128xf32>
    %64 = arith.addf %63, %11 : vector<16x128xf32>
    %65 = arith.mulf %59, %64 : vector<16x128xf32>
    %66 = arith.addf %62, %65 : vector<16x128xf32>
    %67 = math.tanh %66 : vector<16x128xf32>
    %cst_27 = arith.constant 1.000000e+00 : f32
    %68 = vector.broadcast %cst_27 : f32 to vector<16x128xf32>
    %69 = arith.subf %68, %60 : vector<16x128xf32>
    %70 = arith.mulf %69, %67 : vector<16x128xf32>
    %71 = arith.mulf %60, %13 : vector<16x128xf32>
    %72 = arith.addf %70, %71 : vector<16x128xf32>
    %c1 = arith.constant 1 : index
    %c0_28 = arith.constant 0 : index
    %c0_29 = arith.constant 0 : index
    %73 = vector.load %arg1[%c1, %c0_28, %c0_29] : memref<8x16x384xf32, #tpu.memory_space<vmem>>, vector<1x16x384xf32>
    %74 = vector.shape_cast %73 : vector<1x16x384xf32> to vector<16x384xf32>
    %75 = arith.truncf %44 : vector<16x128xf32> to vector<16x128xbf16>
    %c0_30 = arith.constant 0 : index
    %c0_31 = arith.constant 0 : index
    %76 = vector.load %arg3[%c0_30, %c0_31] : memref<128x384xbf16, #tpu.memory_space<vmem>>, vector<128x384xbf16>
    %cst_32 = arith.constant dense<0.000000e+00> : vector<16x384xf32>
    %77 = tpu.matmul %75, %76, %cst_32 {dimension_numbers = #tpu.dot_dimension_numbers<[1], [0], [0], [1], [0, 0, 1, 1], [], []>} : vector<16x128xbf16>, vector<128x384xbf16>, vector<16x384xf32> -> vector<16x384xf32>
    %78 = arith.truncf %72 : vector<16x128xf32> to vector<16x128xbf16>
    %c0_33 = arith.constant 0 : index
    %c0_34 = arith.constant 0 : index
    %79 = vector.load %arg5[%c0_33, %c0_34] : memref<128x384xbf16, #tpu.memory_space<vmem>>, vector<128x384xbf16>
    %cst_35 = arith.constant dense<0.000000e+00> : vector<16x384xf32>
    %80 = tpu.matmul %78, %79, %cst_35 {dimension_numbers = #tpu.dot_dimension_numbers<[1], [0], [0], [1], [0, 0, 1, 1], [], []>} : vector<16x128xbf16>, vector<128x384xbf16>, vector<16x384xf32> -> vector<16x384xf32>
    %81 = vector.extract_strided_slice %74 {offsets = [0, 0], sizes = [16, 256], strides = [1, 1]} : vector<16x384xf32> to vector<16x256xf32>
    %82 = vector.extract_strided_slice %77 {offsets = [0, 0], sizes = [16, 256], strides = [1, 1]} : vector<16x384xf32> to vector<16x256xf32>
    %83 = arith.addf %81, %82 : vector<16x256xf32>
    %cst_36 = arith.constant 5.000000e-01 : f32
    %84 = vector.broadcast %cst_36 : f32 to vector<16x256xf32>
    %85 = arith.mulf %84, %83 : vector<16x256xf32>
    %86 = math.tanh %85 : vector<16x256xf32>
    %cst_37 = arith.constant 1.000000e+00 : f32
    %87 = vector.broadcast %cst_37 : f32 to vector<16x256xf32>
    %88 = arith.addf %87, %86 : vector<16x256xf32>
    %cst_38 = arith.constant 5.000000e-01 : f32
    %89 = vector.broadcast %cst_38 : f32 to vector<16x256xf32>
    %90 = arith.mulf %89, %88 : vector<16x256xf32>
    %91 = vector.extract_strided_slice %90 {offsets = [0, 0], sizes = [16, 128], strides = [1, 1]} : vector<16x256xf32> to vector<16x128xf32>
    %92 = vector.extract_strided_slice %90 {offsets = [0, 128], sizes = [16, 128], strides = [1, 1]} : vector<16x256xf32> to vector<16x128xf32>
    %93 = vector.extract_strided_slice %74 {offsets = [0, 256], sizes = [16, 128], strides = [1, 1]} : vector<16x384xf32> to vector<16x128xf32>
    %94 = vector.extract_strided_slice %77 {offsets = [0, 256], sizes = [16, 128], strides = [1, 1]} : vector<16x384xf32> to vector<16x128xf32>
    %95 = arith.addf %94, %2 : vector<16x128xf32>
    %96 = arith.mulf %91, %95 : vector<16x128xf32>
    %97 = arith.addf %93, %96 : vector<16x128xf32>
    %98 = math.tanh %97 : vector<16x128xf32>
    %cst_39 = arith.constant 1.000000e+00 : f32
    %99 = vector.broadcast %cst_39 : f32 to vector<16x128xf32>
    %100 = arith.subf %99, %92 : vector<16x128xf32>
    %101 = arith.mulf %100, %98 : vector<16x128xf32>
    %102 = arith.mulf %92, %44 : vector<16x128xf32>
    %103 = arith.addf %101, %102 : vector<16x128xf32>
    %104 = arith.truncf %103 : vector<16x128xf32> to vector<16x128xbf16>
    %c0_40 = arith.constant 0 : index
    %c0_41 = arith.constant 0 : index
    %105 = vector.load %arg4[%c0_40, %c0_41] : memref<128x384xbf16, #tpu.memory_space<vmem>>, vector<128x384xbf16>
    %cst_42 = arith.constant dense<0.000000e+00> : vector<16x384xf32>
    %106 = tpu.matmul %104, %105, %cst_42 {dimension_numbers = #tpu.dot_dimension_numbers<[1], [0], [0], [1], [0, 0, 1, 1], [], []>} : vector<16x128xbf16>, vector<128x384xbf16>, vector<16x384xf32> -> vector<16x384xf32>
    %107 = vector.extract_strided_slice %106 {offsets = [0, 0], sizes = [16, 256], strides = [1, 1]} : vector<16x384xf32> to vector<16x256xf32>
    %108 = vector.extract_strided_slice %80 {offsets = [0, 0], sizes = [16, 256], strides = [1, 1]} : vector<16x384xf32> to vector<16x256xf32>
    %109 = arith.addf %107, %108 : vector<16x256xf32>
    %110 = arith.addf %109, %5 : vector<16x256xf32>
    %cst_43 = arith.constant 5.000000e-01 : f32
    %111 = vector.broadcast %cst_43 : f32 to vector<16x256xf32>
    %112 = arith.mulf %111, %110 : vector<16x256xf32>
    %113 = math.tanh %112 : vector<16x256xf32>
    %cst_44 = arith.constant 1.000000e+00 : f32
    %114 = vector.broadcast %cst_44 : f32 to vector<16x256xf32>
    %115 = arith.addf %114, %113 : vector<16x256xf32>
    %cst_45 = arith.constant 5.000000e-01 : f32
    %116 = vector.broadcast %cst_45 : f32 to vector<16x256xf32>
    %117 = arith.mulf %116, %115 : vector<16x256xf32>
    %118 = vector.extract_strided_slice %117 {offsets = [0, 0], sizes = [16, 128], strides = [1, 1]} : vector<16x256xf32> to vector<16x128xf32>
    %119 = vector.extract_strided_slice %117 {offsets = [0, 128], sizes = [16, 128], strides = [1, 1]} : vector<16x256xf32> to vector<16x128xf32>
    %120 = vector.extract_strided_slice %106 {offsets = [0, 256], sizes = [16, 128], strides = [1, 1]} : vector<16x384xf32> to vector<16x128xf32>
    %121 = arith.addf %120, %8 : vector<16x128xf32>
    %122 = vector.extract_strided_slice %80 {offsets = [0, 256], sizes = [16, 128], strides = [1, 1]} : vector<16x384xf32> to vector<16x128xf32>
    %123 = arith.addf %122, %11 : vector<16x128xf32>
    %124 = arith.mulf %118, %123 : vector<16x128xf32>
    %125 = arith.addf %121, %124 : vector<16x128xf32>
    %126 = math.tanh %125 : vector<16x128xf32>
    %cst_46 = arith.constant 1.000000e+00 : f32
    %127 = vector.broadcast %cst_46 : f32 to vector<16x128xf32>
    %128 = arith.subf %127, %119 : vector<16x128xf32>
    %129 = arith.mulf %128, %126 : vector<16x128xf32>
    %130 = arith.mulf %119, %72 : vector<16x128xf32>
    %131 = arith.addf %129, %130 : vector<16x128xf32>
    %c2 = arith.constant 2 : index
    %c0_47 = arith.constant 0 : index
    %c0_48 = arith.constant 0 : index
    %132 = vector.load %arg1[%c2, %c0_47, %c0_48] : memref<8x16x384xf32, #tpu.memory_space<vmem>>, vector<1x16x384xf32>
    %133 = vector.shape_cast %132 : vector<1x16x384xf32> to vector<16x384xf32>
    %134 = arith.truncf %103 : vector<16x128xf32> to vector<16x128xbf16>
    %c0_49 = arith.constant 0 : index
    %c0_50 = arith.constant 0 : index
    %135 = vector.load %arg3[%c0_49, %c0_50] : memref<128x384xbf16, #tpu.memory_space<vmem>>, vector<128x384xbf16>
    %cst_51 = arith.constant dense<0.000000e+00> : vector<16x384xf32>
    %136 = tpu.matmul %134, %135, %cst_51 {dimension_numbers = #tpu.dot_dimension_numbers<[1], [0], [0], [1], [0, 0, 1, 1], [], []>} : vector<16x128xbf16>, vector<128x384xbf16>, vector<16x384xf32> -> vector<16x384xf32>
    %137 = arith.truncf %131 : vector<16x128xf32> to vector<16x128xbf16>
    %c0_52 = arith.constant 0 : index
    %c0_53 = arith.constant 0 : index
    %138 = vector.load %arg5[%c0_52, %c0_53] : memref<128x384xbf16, #tpu.memory_space<vmem>>, vector<128x384xbf16>
    %cst_54 = arith.constant dense<0.000000e+00> : vector<16x384xf32>
    %139 = tpu.matmul %137, %138, %cst_54 {dimension_numbers = #tpu.dot_dimension_numbers<[1], [0], [0], [1], [0, 0, 1, 1], [], []>} : vector<16x128xbf16>, vector<128x384xbf16>, vector<16x384xf32> -> vector<16x384xf32>
    %140 = vector.extract_strided_slice %133 {offsets = [0, 0], sizes = [16, 256], strides = [1, 1]} : vector<16x384xf32> to vector<16x256xf32>
    %141 = vector.extract_strided_slice %136 {offsets = [0, 0], sizes = [16, 256], strides = [1, 1]} : vector<16x384xf32> to vector<16x256xf32>
    %142 = arith.addf %140, %141 : vector<16x256xf32>
    %cst_55 = arith.constant 5.000000e-01 : f32
    %143 = vector.broadcast %cst_55 : f32 to vector<16x256xf32>
    %144 = arith.mulf %143, %142 : vector<16x256xf32>
    %145 = math.tanh %144 : vector<16x256xf32>
    %cst_56 = arith.constant 1.000000e+00 : f32
    %146 = vector.broadcast %cst_56 : f32 to vector<16x256xf32>
    %147 = arith.addf %146, %145 : vector<16x256xf32>
    %cst_57 = arith.constant 5.000000e-01 : f32
    %148 = vector.broadcast %cst_57 : f32 to vector<16x256xf32>
    %149 = arith.mulf %148, %147 : vector<16x256xf32>
    %150 = vector.extract_strided_slice %149 {offsets = [0, 0], sizes = [16, 128], strides = [1, 1]} : vector<16x256xf32> to vector<16x128xf32>
    %151 = vector.extract_strided_slice %149 {offsets = [0, 128], sizes = [16, 128], strides = [1, 1]} : vector<16x256xf32> to vector<16x128xf32>
    %152 = vector.extract_strided_slice %133 {offsets = [0, 256], sizes = [16, 128], strides = [1, 1]} : vector<16x384xf32> to vector<16x128xf32>
    %153 = vector.extract_strided_slice %136 {offsets = [0, 256], sizes = [16, 128], strides = [1, 1]} : vector<16x384xf32> to vector<16x128xf32>
    %154 = arith.addf %153, %2 : vector<16x128xf32>
    %155 = arith.mulf %150, %154 : vector<16x128xf32>
    %156 = arith.addf %152, %155 : vector<16x128xf32>
    %157 = math.tanh %156 : vector<16x128xf32>
    %cst_58 = arith.constant 1.000000e+00 : f32
    %158 = vector.broadcast %cst_58 : f32 to vector<16x128xf32>
    %159 = arith.subf %158, %151 : vector<16x128xf32>
    %160 = arith.mulf %159, %157 : vector<16x128xf32>
    %161 = arith.mulf %151, %103 : vector<16x128xf32>
    %162 = arith.addf %160, %161 : vector<16x128xf32>
    %163 = arith.truncf %162 : vector<16x128xf32> to vector<16x128xbf16>
    %c0_59 = arith.constant 0 : index
    %c0_60 = arith.constant 0 : index
    %164 = vector.load %arg4[%c0_59, %c0_60] : memref<128x384xbf16, #tpu.memory_space<vmem>>, vector<128x384xbf16>
    %cst_61 = arith.constant dense<0.000000e+00> : vector<16x384xf32>
    %165 = tpu.matmul %163, %164, %cst_61 {dimension_numbers = #tpu.dot_dimension_numbers<[1], [0], [0], [1], [0, 0, 1, 1], [], []>} : vector<16x128xbf16>, vector<128x384xbf16>, vector<16x384xf32> -> vector<16x384xf32>
    %166 = vector.extract_strided_slice %165 {offsets = [0, 0], sizes = [16, 256], strides = [1, 1]} : vector<16x384xf32> to vector<16x256xf32>
    %167 = vector.extract_strided_slice %139 {offsets = [0, 0], sizes = [16, 256], strides = [1, 1]} : vector<16x384xf32> to vector<16x256xf32>
    %168 = arith.addf %166, %167 : vector<16x256xf32>
    %169 = arith.addf %168, %5 : vector<16x256xf32>
    %cst_62 = arith.constant 5.000000e-01 : f32
    %170 = vector.broadcast %cst_62 : f32 to vector<16x256xf32>
    %171 = arith.mulf %170, %169 : vector<16x256xf32>
    %172 = math.tanh %171 : vector<16x256xf32>
    %cst_63 = arith.constant 1.000000e+00 : f32
    %173 = vector.broadcast %cst_63 : f32 to vector<16x256xf32>
    %174 = arith.addf %173, %172 : vector<16x256xf32>
    %cst_64 = arith.constant 5.000000e-01 : f32
    %175 = vector.broadcast %cst_64 : f32 to vector<16x256xf32>
    %176 = arith.mulf %175, %174 : vector<16x256xf32>
    %177 = vector.extract_strided_slice %176 {offsets = [0, 0], sizes = [16, 128], strides = [1, 1]} : vector<16x256xf32> to vector<16x128xf32>
    %178 = vector.extract_strided_slice %176 {offsets = [0, 128], sizes = [16, 128], strides = [1, 1]} : vector<16x256xf32> to vector<16x128xf32>
    %179 = vector.extract_strided_slice %165 {offsets = [0, 256], sizes = [16, 128], strides = [1, 1]} : vector<16x384xf32> to vector<16x128xf32>
    %180 = arith.addf %179, %8 : vector<16x128xf32>
    %181 = vector.extract_strided_slice %139 {offsets = [0, 256], sizes = [16, 128], strides = [1, 1]} : vector<16x384xf32> to vector<16x128xf32>
    %182 = arith.addf %181, %11 : vector<16x128xf32>
    %183 = arith.mulf %177, %182 : vector<16x128xf32>
    %184 = arith.addf %180, %183 : vector<16x128xf32>
    %185 = math.tanh %184 : vector<16x128xf32>
    %cst_65 = arith.constant 1.000000e+00 : f32
    %186 = vector.broadcast %cst_65 : f32 to vector<16x128xf32>
    %187 = arith.subf %186, %178 : vector<16x128xf32>
    %188 = arith.mulf %187, %185 : vector<16x128xf32>
    %189 = arith.mulf %178, %131 : vector<16x128xf32>
    %190 = arith.addf %188, %189 : vector<16x128xf32>
    %c3 = arith.constant 3 : index
    %c0_66 = arith.constant 0 : index
    %c0_67 = arith.constant 0 : index
    %191 = vector.load %arg1[%c3, %c0_66, %c0_67] : memref<8x16x384xf32, #tpu.memory_space<vmem>>, vector<1x16x384xf32>
    %192 = vector.shape_cast %191 : vector<1x16x384xf32> to vector<16x384xf32>
    %193 = arith.truncf %162 : vector<16x128xf32> to vector<16x128xbf16>
    %c0_68 = arith.constant 0 : index
    %c0_69 = arith.constant 0 : index
    %194 = vector.load %arg3[%c0_68, %c0_69] : memref<128x384xbf16, #tpu.memory_space<vmem>>, vector<128x384xbf16>
    %cst_70 = arith.constant dense<0.000000e+00> : vector<16x384xf32>
    %195 = tpu.matmul %193, %194, %cst_70 {dimension_numbers = #tpu.dot_dimension_numbers<[1], [0], [0], [1], [0, 0, 1, 1], [], []>} : vector<16x128xbf16>, vector<128x384xbf16>, vector<16x384xf32> -> vector<16x384xf32>
    %196 = arith.truncf %190 : vector<16x128xf32> to vector<16x128xbf16>
    %c0_71 = arith.constant 0 : index
    %c0_72 = arith.constant 0 : index
    %197 = vector.load %arg5[%c0_71, %c0_72] : memref<128x384xbf16, #tpu.memory_space<vmem>>, vector<128x384xbf16>
    %cst_73 = arith.constant dense<0.000000e+00> : vector<16x384xf32>
    %198 = tpu.matmul %196, %197, %cst_73 {dimension_numbers = #tpu.dot_dimension_numbers<[1], [0], [0], [1], [0, 0, 1, 1], [], []>} : vector<16x128xbf16>, vector<128x384xbf16>, vector<16x384xf32> -> vector<16x384xf32>
    %199 = vector.extract_strided_slice %192 {offsets = [0, 0], sizes = [16, 256], strides = [1, 1]} : vector<16x384xf32> to vector<16x256xf32>
    %200 = vector.extract_strided_slice %195 {offsets = [0, 0], sizes = [16, 256], strides = [1, 1]} : vector<16x384xf32> to vector<16x256xf32>
    %201 = arith.addf %199, %200 : vector<16x256xf32>
    %cst_74 = arith.constant 5.000000e-01 : f32
    %202 = vector.broadcast %cst_74 : f32 to vector<16x256xf32>
    %203 = arith.mulf %202, %201 : vector<16x256xf32>
    %204 = math.tanh %203 : vector<16x256xf32>
    %cst_75 = arith.constant 1.000000e+00 : f32
    %205 = vector.broadcast %cst_75 : f32 to vector<16x256xf32>
    %206 = arith.addf %205, %204 : vector<16x256xf32>
    %cst_76 = arith.constant 5.000000e-01 : f32
    %207 = vector.broadcast %cst_76 : f32 to vector<16x256xf32>
    %208 = arith.mulf %207, %206 : vector<16x256xf32>
    %209 = vector.extract_strided_slice %208 {offsets = [0, 0], sizes = [16, 128], strides = [1, 1]} : vector<16x256xf32> to vector<16x128xf32>
    %210 = vector.extract_strided_slice %208 {offsets = [0, 128], sizes = [16, 128], strides = [1, 1]} : vector<16x256xf32> to vector<16x128xf32>
    %211 = vector.extract_strided_slice %192 {offsets = [0, 256], sizes = [16, 128], strides = [1, 1]} : vector<16x384xf32> to vector<16x128xf32>
    %212 = vector.extract_strided_slice %195 {offsets = [0, 256], sizes = [16, 128], strides = [1, 1]} : vector<16x384xf32> to vector<16x128xf32>
    %213 = arith.addf %212, %2 : vector<16x128xf32>
    %214 = arith.mulf %209, %213 : vector<16x128xf32>
    %215 = arith.addf %211, %214 : vector<16x128xf32>
    %216 = math.tanh %215 : vector<16x128xf32>
    %cst_77 = arith.constant 1.000000e+00 : f32
    %217 = vector.broadcast %cst_77 : f32 to vector<16x128xf32>
    %218 = arith.subf %217, %210 : vector<16x128xf32>
    %219 = arith.mulf %218, %216 : vector<16x128xf32>
    %220 = arith.mulf %210, %162 : vector<16x128xf32>
    %221 = arith.addf %219, %220 : vector<16x128xf32>
    %222 = arith.truncf %221 : vector<16x128xf32> to vector<16x128xbf16>
    %c0_78 = arith.constant 0 : index
    %c0_79 = arith.constant 0 : index
    %223 = vector.load %arg4[%c0_78, %c0_79] : memref<128x384xbf16, #tpu.memory_space<vmem>>, vector<128x384xbf16>
    %cst_80 = arith.constant dense<0.000000e+00> : vector<16x384xf32>
    %224 = tpu.matmul %222, %223, %cst_80 {dimension_numbers = #tpu.dot_dimension_numbers<[1], [0], [0], [1], [0, 0, 1, 1], [], []>} : vector<16x128xbf16>, vector<128x384xbf16>, vector<16x384xf32> -> vector<16x384xf32>
    %225 = vector.extract_strided_slice %224 {offsets = [0, 0], sizes = [16, 256], strides = [1, 1]} : vector<16x384xf32> to vector<16x256xf32>
    %226 = vector.extract_strided_slice %198 {offsets = [0, 0], sizes = [16, 256], strides = [1, 1]} : vector<16x384xf32> to vector<16x256xf32>
    %227 = arith.addf %225, %226 : vector<16x256xf32>
    %228 = arith.addf %227, %5 : vector<16x256xf32>
    %cst_81 = arith.constant 5.000000e-01 : f32
    %229 = vector.broadcast %cst_81 : f32 to vector<16x256xf32>
    %230 = arith.mulf %229, %228 : vector<16x256xf32>
    %231 = math.tanh %230 : vector<16x256xf32>
    %cst_82 = arith.constant 1.000000e+00 : f32
    %232 = vector.broadcast %cst_82 : f32 to vector<16x256xf32>
    %233 = arith.addf %232, %231 : vector<16x256xf32>
    %cst_83 = arith.constant 5.000000e-01 : f32
    %234 = vector.broadcast %cst_83 : f32 to vector<16x256xf32>
    %235 = arith.mulf %234, %233 : vector<16x256xf32>
    %236 = vector.extract_strided_slice %235 {offsets = [0, 0], sizes = [16, 128], strides = [1, 1]} : vector<16x256xf32> to vector<16x128xf32>
    %237 = vector.extract_strided_slice %235 {offsets = [0, 128], sizes = [16, 128], strides = [1, 1]} : vector<16x256xf32> to vector<16x128xf32>
    %238 = vector.extract_strided_slice %224 {offsets = [0, 256], sizes = [16, 128], strides = [1, 1]} : vector<16x384xf32> to vector<16x128xf32>
    %239 = arith.addf %238, %8 : vector<16x128xf32>
    %240 = vector.extract_strided_slice %198 {offsets = [0, 256], sizes = [16, 128], strides = [1, 1]} : vector<16x384xf32> to vector<16x128xf32>
    %241 = arith.addf %240, %11 : vector<16x128xf32>
    %242 = arith.mulf %236, %241 : vector<16x128xf32>
    %243 = arith.addf %239, %242 : vector<16x128xf32>
    %244 = math.tanh %243 : vector<16x128xf32>
    %cst_84 = arith.constant 1.000000e+00 : f32
    %245 = vector.broadcast %cst_84 : f32 to vector<16x128xf32>
    %246 = arith.subf %245, %237 : vector<16x128xf32>
    %247 = arith.mulf %246, %244 : vector<16x128xf32>
    %248 = arith.mulf %237, %190 : vector<16x128xf32>
    %249 = arith.addf %247, %248 : vector<16x128xf32>
    %c4 = arith.constant 4 : index
    %c0_85 = arith.constant 0 : index
    %c0_86 = arith.constant 0 : index
    %250 = vector.load %arg1[%c4, %c0_85, %c0_86] : memref<8x16x384xf32, #tpu.memory_space<vmem>>, vector<1x16x384xf32>
    %251 = vector.shape_cast %250 : vector<1x16x384xf32> to vector<16x384xf32>
    %252 = arith.truncf %221 : vector<16x128xf32> to vector<16x128xbf16>
    %c0_87 = arith.constant 0 : index
    %c0_88 = arith.constant 0 : index
    %253 = vector.load %arg3[%c0_87, %c0_88] : memref<128x384xbf16, #tpu.memory_space<vmem>>, vector<128x384xbf16>
    %cst_89 = arith.constant dense<0.000000e+00> : vector<16x384xf32>
    %254 = tpu.matmul %252, %253, %cst_89 {dimension_numbers = #tpu.dot_dimension_numbers<[1], [0], [0], [1], [0, 0, 1, 1], [], []>} : vector<16x128xbf16>, vector<128x384xbf16>, vector<16x384xf32> -> vector<16x384xf32>
    %255 = arith.truncf %249 : vector<16x128xf32> to vector<16x128xbf16>
    %c0_90 = arith.constant 0 : index
    %c0_91 = arith.constant 0 : index
    %256 = vector.load %arg5[%c0_90, %c0_91] : memref<128x384xbf16, #tpu.memory_space<vmem>>, vector<128x384xbf16>
    %cst_92 = arith.constant dense<0.000000e+00> : vector<16x384xf32>
    %257 = tpu.matmul %255, %256, %cst_92 {dimension_numbers = #tpu.dot_dimension_numbers<[1], [0], [0], [1], [0, 0, 1, 1], [], []>} : vector<16x128xbf16>, vector<128x384xbf16>, vector<16x384xf32> -> vector<16x384xf32>
    %258 = vector.extract_strided_slice %251 {offsets = [0, 0], sizes = [16, 256], strides = [1, 1]} : vector<16x384xf32> to vector<16x256xf32>
    %259 = vector.extract_strided_slice %254 {offsets = [0, 0], sizes = [16, 256], strides = [1, 1]} : vector<16x384xf32> to vector<16x256xf32>
    %260 = arith.addf %258, %259 : vector<16x256xf32>
    %cst_93 = arith.constant 5.000000e-01 : f32
    %261 = vector.broadcast %cst_93 : f32 to vector<16x256xf32>
    %262 = arith.mulf %261, %260 : vector<16x256xf32>
    %263 = math.tanh %262 : vector<16x256xf32>
    %cst_94 = arith.constant 1.000000e+00 : f32
    %264 = vector.broadcast %cst_94 : f32 to vector<16x256xf32>
    %265 = arith.addf %264, %263 : vector<16x256xf32>
    %cst_95 = arith.constant 5.000000e-01 : f32
    %266 = vector.broadcast %cst_95 : f32 to vector<16x256xf32>
    %267 = arith.mulf %266, %265 : vector<16x256xf32>
    %268 = vector.extract_strided_slice %267 {offsets = [0, 0], sizes = [16, 128], strides = [1, 1]} : vector<16x256xf32> to vector<16x128xf32>
    %269 = vector.extract_strided_slice %267 {offsets = [0, 128], sizes = [16, 128], strides = [1, 1]} : vector<16x256xf32> to vector<16x128xf32>
    %270 = vector.extract_strided_slice %251 {offsets = [0, 256], sizes = [16, 128], strides = [1, 1]} : vector<16x384xf32> to vector<16x128xf32>
    %271 = vector.extract_strided_slice %254 {offsets = [0, 256], sizes = [16, 128], strides = [1, 1]} : vector<16x384xf32> to vector<16x128xf32>
    %272 = arith.addf %271, %2 : vector<16x128xf32>
    %273 = arith.mulf %268, %272 : vector<16x128xf32>
    %274 = arith.addf %270, %273 : vector<16x128xf32>
    %275 = math.tanh %274 : vector<16x128xf32>
    %cst_96 = arith.constant 1.000000e+00 : f32
    %276 = vector.broadcast %cst_96 : f32 to vector<16x128xf32>
    %277 = arith.subf %276, %269 : vector<16x128xf32>
    %278 = arith.mulf %277, %275 : vector<16x128xf32>
    %279 = arith.mulf %269, %221 : vector<16x128xf32>
    %280 = arith.addf %278, %279 : vector<16x128xf32>
    %281 = arith.truncf %280 : vector<16x128xf32> to vector<16x128xbf16>
    %c0_97 = arith.constant 0 : index
    %c0_98 = arith.constant 0 : index
    %282 = vector.load %arg4[%c0_97, %c0_98] : memref<128x384xbf16, #tpu.memory_space<vmem>>, vector<128x384xbf16>
    %cst_99 = arith.constant dense<0.000000e+00> : vector<16x384xf32>
    %283 = tpu.matmul %281, %282, %cst_99 {dimension_numbers = #tpu.dot_dimension_numbers<[1], [0], [0], [1], [0, 0, 1, 1], [], []>} : vector<16x128xbf16>, vector<128x384xbf16>, vector<16x384xf32> -> vector<16x384xf32>
    %284 = vector.extract_strided_slice %283 {offsets = [0, 0], sizes = [16, 256], strides = [1, 1]} : vector<16x384xf32> to vector<16x256xf32>
    %285 = vector.extract_strided_slice %257 {offsets = [0, 0], sizes = [16, 256], strides = [1, 1]} : vector<16x384xf32> to vector<16x256xf32>
    %286 = arith.addf %284, %285 : vector<16x256xf32>
    %287 = arith.addf %286, %5 : vector<16x256xf32>
    %cst_100 = arith.constant 5.000000e-01 : f32
    %288 = vector.broadcast %cst_100 : f32 to vector<16x256xf32>
    %289 = arith.mulf %288, %287 : vector<16x256xf32>
    %290 = math.tanh %289 : vector<16x256xf32>
    %cst_101 = arith.constant 1.000000e+00 : f32
    %291 = vector.broadcast %cst_101 : f32 to vector<16x256xf32>
    %292 = arith.addf %291, %290 : vector<16x256xf32>
    %cst_102 = arith.constant 5.000000e-01 : f32
    %293 = vector.broadcast %cst_102 : f32 to vector<16x256xf32>
    %294 = arith.mulf %293, %292 : vector<16x256xf32>
    %295 = vector.extract_strided_slice %294 {offsets = [0, 0], sizes = [16, 128], strides = [1, 1]} : vector<16x256xf32> to vector<16x128xf32>
    %296 = vector.extract_strided_slice %294 {offsets = [0, 128], sizes = [16, 128], strides = [1, 1]} : vector<16x256xf32> to vector<16x128xf32>
    %297 = vector.extract_strided_slice %283 {offsets = [0, 256], sizes = [16, 128], strides = [1, 1]} : vector<16x384xf32> to vector<16x128xf32>
    %298 = arith.addf %297, %8 : vector<16x128xf32>
    %299 = vector.extract_strided_slice %257 {offsets = [0, 256], sizes = [16, 128], strides = [1, 1]} : vector<16x384xf32> to vector<16x128xf32>
    %300 = arith.addf %299, %11 : vector<16x128xf32>
    %301 = arith.mulf %295, %300 : vector<16x128xf32>
    %302 = arith.addf %298, %301 : vector<16x128xf32>
    %303 = math.tanh %302 : vector<16x128xf32>
    %cst_103 = arith.constant 1.000000e+00 : f32
    %304 = vector.broadcast %cst_103 : f32 to vector<16x128xf32>
    %305 = arith.subf %304, %296 : vector<16x128xf32>
    %306 = arith.mulf %305, %303 : vector<16x128xf32>
    %307 = arith.mulf %296, %249 : vector<16x128xf32>
    %308 = arith.addf %306, %307 : vector<16x128xf32>
    %c5 = arith.constant 5 : index
    %c0_104 = arith.constant 0 : index
    %c0_105 = arith.constant 0 : index
    %309 = vector.load %arg1[%c5, %c0_104, %c0_105] : memref<8x16x384xf32, #tpu.memory_space<vmem>>, vector<1x16x384xf32>
    %310 = vector.shape_cast %309 : vector<1x16x384xf32> to vector<16x384xf32>
    %311 = arith.truncf %280 : vector<16x128xf32> to vector<16x128xbf16>
    %c0_106 = arith.constant 0 : index
    %c0_107 = arith.constant 0 : index
    %312 = vector.load %arg3[%c0_106, %c0_107] : memref<128x384xbf16, #tpu.memory_space<vmem>>, vector<128x384xbf16>
    %cst_108 = arith.constant dense<0.000000e+00> : vector<16x384xf32>
    %313 = tpu.matmul %311, %312, %cst_108 {dimension_numbers = #tpu.dot_dimension_numbers<[1], [0], [0], [1], [0, 0, 1, 1], [], []>} : vector<16x128xbf16>, vector<128x384xbf16>, vector<16x384xf32> -> vector<16x384xf32>
    %314 = arith.truncf %308 : vector<16x128xf32> to vector<16x128xbf16>
    %c0_109 = arith.constant 0 : index
    %c0_110 = arith.constant 0 : index
    %315 = vector.load %arg5[%c0_109, %c0_110] : memref<128x384xbf16, #tpu.memory_space<vmem>>, vector<128x384xbf16>
    %cst_111 = arith.constant dense<0.000000e+00> : vector<16x384xf32>
    %316 = tpu.matmul %314, %315, %cst_111 {dimension_numbers = #tpu.dot_dimension_numbers<[1], [0], [0], [1], [0, 0, 1, 1], [], []>} : vector<16x128xbf16>, vector<128x384xbf16>, vector<16x384xf32> -> vector<16x384xf32>
    %317 = vector.extract_strided_slice %310 {offsets = [0, 0], sizes = [16, 256], strides = [1, 1]} : vector<16x384xf32> to vector<16x256xf32>
    %318 = vector.extract_strided_slice %313 {offsets = [0, 0], sizes = [16, 256], strides = [1, 1]} : vector<16x384xf32> to vector<16x256xf32>
    %319 = arith.addf %317, %318 : vector<16x256xf32>
    %cst_112 = arith.constant 5.000000e-01 : f32
    %320 = vector.broadcast %cst_112 : f32 to vector<16x256xf32>
    %321 = arith.mulf %320, %319 : vector<16x256xf32>
    %322 = math.tanh %321 : vector<16x256xf32>
    %cst_113 = arith.constant 1.000000e+00 : f32
    %323 = vector.broadcast %cst_113 : f32 to vector<16x256xf32>
    %324 = arith.addf %323, %322 : vector<16x256xf32>
    %cst_114 = arith.constant 5.000000e-01 : f32
    %325 = vector.broadcast %cst_114 : f32 to vector<16x256xf32>
    %326 = arith.mulf %325, %324 : vector<16x256xf32>
    %327 = vector.extract_strided_slice %326 {offsets = [0, 0], sizes = [16, 128], strides = [1, 1]} : vector<16x256xf32> to vector<16x128xf32>
    %328 = vector.extract_strided_slice %326 {offsets = [0, 128], sizes = [16, 128], strides = [1, 1]} : vector<16x256xf32> to vector<16x128xf32>
    %329 = vector.extract_strided_slice %310 {offsets = [0, 256], sizes = [16, 128], strides = [1, 1]} : vector<16x384xf32> to vector<16x128xf32>
    %330 = vector.extract_strided_slice %313 {offsets = [0, 256], sizes = [16, 128], strides = [1, 1]} : vector<16x384xf32> to vector<16x128xf32>
    %331 = arith.addf %330, %2 : vector<16x128xf32>
    %332 = arith.mulf %327, %331 : vector<16x128xf32>
    %333 = arith.addf %329, %332 : vector<16x128xf32>
    %334 = math.tanh %333 : vector<16x128xf32>
    %cst_115 = arith.constant 1.000000e+00 : f32
    %335 = vector.broadcast %cst_115 : f32 to vector<16x128xf32>
    %336 = arith.subf %335, %328 : vector<16x128xf32>
    %337 = arith.mulf %336, %334 : vector<16x128xf32>
    %338 = arith.mulf %328, %280 : vector<16x128xf32>
    %339 = arith.addf %337, %338 : vector<16x128xf32>
    %340 = arith.truncf %339 : vector<16x128xf32> to vector<16x128xbf16>
    %c0_116 = arith.constant 0 : index
    %c0_117 = arith.constant 0 : index
    %341 = vector.load %arg4[%c0_116, %c0_117] : memref<128x384xbf16, #tpu.memory_space<vmem>>, vector<128x384xbf16>
    %cst_118 = arith.constant dense<0.000000e+00> : vector<16x384xf32>
    %342 = tpu.matmul %340, %341, %cst_118 {dimension_numbers = #tpu.dot_dimension_numbers<[1], [0], [0], [1], [0, 0, 1, 1], [], []>} : vector<16x128xbf16>, vector<128x384xbf16>, vector<16x384xf32> -> vector<16x384xf32>
    %343 = vector.extract_strided_slice %342 {offsets = [0, 0], sizes = [16, 256], strides = [1, 1]} : vector<16x384xf32> to vector<16x256xf32>
    %344 = vector.extract_strided_slice %316 {offsets = [0, 0], sizes = [16, 256], strides = [1, 1]} : vector<16x384xf32> to vector<16x256xf32>
    %345 = arith.addf %343, %344 : vector<16x256xf32>
    %346 = arith.addf %345, %5 : vector<16x256xf32>
    %cst_119 = arith.constant 5.000000e-01 : f32
    %347 = vector.broadcast %cst_119 : f32 to vector<16x256xf32>
    %348 = arith.mulf %347, %346 : vector<16x256xf32>
    %349 = math.tanh %348 : vector<16x256xf32>
    %cst_120 = arith.constant 1.000000e+00 : f32
    %350 = vector.broadcast %cst_120 : f32 to vector<16x256xf32>
    %351 = arith.addf %350, %349 : vector<16x256xf32>
    %cst_121 = arith.constant 5.000000e-01 : f32
    %352 = vector.broadcast %cst_121 : f32 to vector<16x256xf32>
    %353 = arith.mulf %352, %351 : vector<16x256xf32>
    %354 = vector.extract_strided_slice %353 {offsets = [0, 0], sizes = [16, 128], strides = [1, 1]} : vector<16x256xf32> to vector<16x128xf32>
    %355 = vector.extract_strided_slice %353 {offsets = [0, 128], sizes = [16, 128], strides = [1, 1]} : vector<16x256xf32> to vector<16x128xf32>
    %356 = vector.extract_strided_slice %342 {offsets = [0, 256], sizes = [16, 128], strides = [1, 1]} : vector<16x384xf32> to vector<16x128xf32>
    %357 = arith.addf %356, %8 : vector<16x128xf32>
    %358 = vector.extract_strided_slice %316 {offsets = [0, 256], sizes = [16, 128], strides = [1, 1]} : vector<16x384xf32> to vector<16x128xf32>
    %359 = arith.addf %358, %11 : vector<16x128xf32>
    %360 = arith.mulf %354, %359 : vector<16x128xf32>
    %361 = arith.addf %357, %360 : vector<16x128xf32>
    %362 = math.tanh %361 : vector<16x128xf32>
    %cst_122 = arith.constant 1.000000e+00 : f32
    %363 = vector.broadcast %cst_122 : f32 to vector<16x128xf32>
    %364 = arith.subf %363, %355 : vector<16x128xf32>
    %365 = arith.mulf %364, %362 : vector<16x128xf32>
    %366 = arith.mulf %355, %308 : vector<16x128xf32>
    %367 = arith.addf %365, %366 : vector<16x128xf32>
    %c6 = arith.constant 6 : index
    %c0_123 = arith.constant 0 : index
    %c0_124 = arith.constant 0 : index
    %368 = vector.load %arg1[%c6, %c0_123, %c0_124] : memref<8x16x384xf32, #tpu.memory_space<vmem>>, vector<1x16x384xf32>
    %369 = vector.shape_cast %368 : vector<1x16x384xf32> to vector<16x384xf32>
    %370 = arith.truncf %339 : vector<16x128xf32> to vector<16x128xbf16>
    %c0_125 = arith.constant 0 : index
    %c0_126 = arith.constant 0 : index
    %371 = vector.load %arg3[%c0_125, %c0_126] : memref<128x384xbf16, #tpu.memory_space<vmem>>, vector<128x384xbf16>
    %cst_127 = arith.constant dense<0.000000e+00> : vector<16x384xf32>
    %372 = tpu.matmul %370, %371, %cst_127 {dimension_numbers = #tpu.dot_dimension_numbers<[1], [0], [0], [1], [0, 0, 1, 1], [], []>} : vector<16x128xbf16>, vector<128x384xbf16>, vector<16x384xf32> -> vector<16x384xf32>
    %373 = arith.truncf %367 : vector<16x128xf32> to vector<16x128xbf16>
    %c0_128 = arith.constant 0 : index
    %c0_129 = arith.constant 0 : index
    %374 = vector.load %arg5[%c0_128, %c0_129] : memref<128x384xbf16, #tpu.memory_space<vmem>>, vector<128x384xbf16>
    %cst_130 = arith.constant dense<0.000000e+00> : vector<16x384xf32>
    %375 = tpu.matmul %373, %374, %cst_130 {dimension_numbers = #tpu.dot_dimension_numbers<[1], [0], [0], [1], [0, 0, 1, 1], [], []>} : vector<16x128xbf16>, vector<128x384xbf16>, vector<16x384xf32> -> vector<16x384xf32>
    %376 = vector.extract_strided_slice %369 {offsets = [0, 0], sizes = [16, 256], strides = [1, 1]} : vector<16x384xf32> to vector<16x256xf32>
    %377 = vector.extract_strided_slice %372 {offsets = [0, 0], sizes = [16, 256], strides = [1, 1]} : vector<16x384xf32> to vector<16x256xf32>
    %378 = arith.addf %376, %377 : vector<16x256xf32>
    %cst_131 = arith.constant 5.000000e-01 : f32
    %379 = vector.broadcast %cst_131 : f32 to vector<16x256xf32>
    %380 = arith.mulf %379, %378 : vector<16x256xf32>
    %381 = math.tanh %380 : vector<16x256xf32>
    %cst_132 = arith.constant 1.000000e+00 : f32
    %382 = vector.broadcast %cst_132 : f32 to vector<16x256xf32>
    %383 = arith.addf %382, %381 : vector<16x256xf32>
    %cst_133 = arith.constant 5.000000e-01 : f32
    %384 = vector.broadcast %cst_133 : f32 to vector<16x256xf32>
    %385 = arith.mulf %384, %383 : vector<16x256xf32>
    %386 = vector.extract_strided_slice %385 {offsets = [0, 0], sizes = [16, 128], strides = [1, 1]} : vector<16x256xf32> to vector<16x128xf32>
    %387 = vector.extract_strided_slice %385 {offsets = [0, 128], sizes = [16, 128], strides = [1, 1]} : vector<16x256xf32> to vector<16x128xf32>
    %388 = vector.extract_strided_slice %369 {offsets = [0, 256], sizes = [16, 128], strides = [1, 1]} : vector<16x384xf32> to vector<16x128xf32>
    %389 = vector.extract_strided_slice %372 {offsets = [0, 256], sizes = [16, 128], strides = [1, 1]} : vector<16x384xf32> to vector<16x128xf32>
    %390 = arith.addf %389, %2 : vector<16x128xf32>
    %391 = arith.mulf %386, %390 : vector<16x128xf32>
    %392 = arith.addf %388, %391 : vector<16x128xf32>
    %393 = math.tanh %392 : vector<16x128xf32>
    %cst_134 = arith.constant 1.000000e+00 : f32
    %394 = vector.broadcast %cst_134 : f32 to vector<16x128xf32>
    %395 = arith.subf %394, %387 : vector<16x128xf32>
    %396 = arith.mulf %395, %393 : vector<16x128xf32>
    %397 = arith.mulf %387, %339 : vector<16x128xf32>
    %398 = arith.addf %396, %397 : vector<16x128xf32>
    %399 = arith.truncf %398 : vector<16x128xf32> to vector<16x128xbf16>
    %c0_135 = arith.constant 0 : index
    %c0_136 = arith.constant 0 : index
    %400 = vector.load %arg4[%c0_135, %c0_136] : memref<128x384xbf16, #tpu.memory_space<vmem>>, vector<128x384xbf16>
    %cst_137 = arith.constant dense<0.000000e+00> : vector<16x384xf32>
    %401 = tpu.matmul %399, %400, %cst_137 {dimension_numbers = #tpu.dot_dimension_numbers<[1], [0], [0], [1], [0, 0, 1, 1], [], []>} : vector<16x128xbf16>, vector<128x384xbf16>, vector<16x384xf32> -> vector<16x384xf32>
    %402 = vector.extract_strided_slice %401 {offsets = [0, 0], sizes = [16, 256], strides = [1, 1]} : vector<16x384xf32> to vector<16x256xf32>
    %403 = vector.extract_strided_slice %375 {offsets = [0, 0], sizes = [16, 256], strides = [1, 1]} : vector<16x384xf32> to vector<16x256xf32>
    %404 = arith.addf %402, %403 : vector<16x256xf32>
    %405 = arith.addf %404, %5 : vector<16x256xf32>
    %cst_138 = arith.constant 5.000000e-01 : f32
    %406 = vector.broadcast %cst_138 : f32 to vector<16x256xf32>
    %407 = arith.mulf %406, %405 : vector<16x256xf32>
    %408 = math.tanh %407 : vector<16x256xf32>
    %cst_139 = arith.constant 1.000000e+00 : f32
    %409 = vector.broadcast %cst_139 : f32 to vector<16x256xf32>
    %410 = arith.addf %409, %408 : vector<16x256xf32>
    %cst_140 = arith.constant 5.000000e-01 : f32
    %411 = vector.broadcast %cst_140 : f32 to vector<16x256xf32>
    %412 = arith.mulf %411, %410 : vector<16x256xf32>
    %413 = vector.extract_strided_slice %412 {offsets = [0, 0], sizes = [16, 128], strides = [1, 1]} : vector<16x256xf32> to vector<16x128xf32>
    %414 = vector.extract_strided_slice %412 {offsets = [0, 128], sizes = [16, 128], strides = [1, 1]} : vector<16x256xf32> to vector<16x128xf32>
    %415 = vector.extract_strided_slice %401 {offsets = [0, 256], sizes = [16, 128], strides = [1, 1]} : vector<16x384xf32> to vector<16x128xf32>
    %416 = arith.addf %415, %8 : vector<16x128xf32>
    %417 = vector.extract_strided_slice %375 {offsets = [0, 256], sizes = [16, 128], strides = [1, 1]} : vector<16x384xf32> to vector<16x128xf32>
    %418 = arith.addf %417, %11 : vector<16x128xf32>
    %419 = arith.mulf %413, %418 : vector<16x128xf32>
    %420 = arith.addf %416, %419 : vector<16x128xf32>
    %421 = math.tanh %420 : vector<16x128xf32>
    %cst_141 = arith.constant 1.000000e+00 : f32
    %422 = vector.broadcast %cst_141 : f32 to vector<16x128xf32>
    %423 = arith.subf %422, %414 : vector<16x128xf32>
    %424 = arith.mulf %423, %421 : vector<16x128xf32>
    %425 = arith.mulf %414, %367 : vector<16x128xf32>
    %426 = arith.addf %424, %425 : vector<16x128xf32>
    %c7 = arith.constant 7 : index
    %c0_142 = arith.constant 0 : index
    %c0_143 = arith.constant 0 : index
    %427 = vector.load %arg1[%c7, %c0_142, %c0_143] : memref<8x16x384xf32, #tpu.memory_space<vmem>>, vector<1x16x384xf32>
    %428 = vector.shape_cast %427 : vector<1x16x384xf32> to vector<16x384xf32>
    %429 = arith.truncf %398 : vector<16x128xf32> to vector<16x128xbf16>
    %c0_144 = arith.constant 0 : index
    %c0_145 = arith.constant 0 : index
    %430 = vector.load %arg3[%c0_144, %c0_145] : memref<128x384xbf16, #tpu.memory_space<vmem>>, vector<128x384xbf16>
    %cst_146 = arith.constant dense<0.000000e+00> : vector<16x384xf32>
    %431 = tpu.matmul %429, %430, %cst_146 {dimension_numbers = #tpu.dot_dimension_numbers<[1], [0], [0], [1], [0, 0, 1, 1], [], []>} : vector<16x128xbf16>, vector<128x384xbf16>, vector<16x384xf32> -> vector<16x384xf32>
    %432 = arith.truncf %426 : vector<16x128xf32> to vector<16x128xbf16>
    %c0_147 = arith.constant 0 : index
    %c0_148 = arith.constant 0 : index
    %433 = vector.load %arg5[%c0_147, %c0_148] : memref<128x384xbf16, #tpu.memory_space<vmem>>, vector<128x384xbf16>
    %cst_149 = arith.constant dense<0.000000e+00> : vector<16x384xf32>
    %434 = tpu.matmul %432, %433, %cst_149 {dimension_numbers = #tpu.dot_dimension_numbers<[1], [0], [0], [1], [0, 0, 1, 1], [], []>} : vector<16x128xbf16>, vector<128x384xbf16>, vector<16x384xf32> -> vector<16x384xf32>
    %435 = vector.extract_strided_slice %428 {offsets = [0, 0], sizes = [16, 256], strides = [1, 1]} : vector<16x384xf32> to vector<16x256xf32>
    %436 = vector.extract_strided_slice %431 {offsets = [0, 0], sizes = [16, 256], strides = [1, 1]} : vector<16x384xf32> to vector<16x256xf32>
    %437 = arith.addf %435, %436 : vector<16x256xf32>
    %cst_150 = arith.constant 5.000000e-01 : f32
    %438 = vector.broadcast %cst_150 : f32 to vector<16x256xf32>
    %439 = arith.mulf %438, %437 : vector<16x256xf32>
    %440 = math.tanh %439 : vector<16x256xf32>
    %cst_151 = arith.constant 1.000000e+00 : f32
    %441 = vector.broadcast %cst_151 : f32 to vector<16x256xf32>
    %442 = arith.addf %441, %440 : vector<16x256xf32>
    %cst_152 = arith.constant 5.000000e-01 : f32
    %443 = vector.broadcast %cst_152 : f32 to vector<16x256xf32>
    %444 = arith.mulf %443, %442 : vector<16x256xf32>
    %445 = vector.extract_strided_slice %444 {offsets = [0, 0], sizes = [16, 128], strides = [1, 1]} : vector<16x256xf32> to vector<16x128xf32>
    %446 = vector.extract_strided_slice %444 {offsets = [0, 128], sizes = [16, 128], strides = [1, 1]} : vector<16x256xf32> to vector<16x128xf32>
    %447 = vector.extract_strided_slice %428 {offsets = [0, 256], sizes = [16, 128], strides = [1, 1]} : vector<16x384xf32> to vector<16x128xf32>
    %448 = vector.extract_strided_slice %431 {offsets = [0, 256], sizes = [16, 128], strides = [1, 1]} : vector<16x384xf32> to vector<16x128xf32>
    %449 = arith.addf %448, %2 : vector<16x128xf32>
    %450 = arith.mulf %445, %449 : vector<16x128xf32>
    %451 = arith.addf %447, %450 : vector<16x128xf32>
    %452 = math.tanh %451 : vector<16x128xf32>
    %cst_153 = arith.constant 1.000000e+00 : f32
    %453 = vector.broadcast %cst_153 : f32 to vector<16x128xf32>
    %454 = arith.subf %453, %446 : vector<16x128xf32>
    %455 = arith.mulf %454, %452 : vector<16x128xf32>
    %456 = arith.mulf %446, %398 : vector<16x128xf32>
    %457 = arith.addf %455, %456 : vector<16x128xf32>
    %458 = arith.truncf %457 : vector<16x128xf32> to vector<16x128xbf16>
    %c0_154 = arith.constant 0 : index
    %c0_155 = arith.constant 0 : index
    %459 = vector.load %arg4[%c0_154, %c0_155] : memref<128x384xbf16, #tpu.memory_space<vmem>>, vector<128x384xbf16>
    %cst_156 = arith.constant dense<0.000000e+00> : vector<16x384xf32>
    %460 = tpu.matmul %458, %459, %cst_156 {dimension_numbers = #tpu.dot_dimension_numbers<[1], [0], [0], [1], [0, 0, 1, 1], [], []>} : vector<16x128xbf16>, vector<128x384xbf16>, vector<16x384xf32> -> vector<16x384xf32>
    %461 = vector.extract_strided_slice %460 {offsets = [0, 0], sizes = [16, 256], strides = [1, 1]} : vector<16x384xf32> to vector<16x256xf32>
    %462 = vector.extract_strided_slice %434 {offsets = [0, 0], sizes = [16, 256], strides = [1, 1]} : vector<16x384xf32> to vector<16x256xf32>
    %463 = arith.addf %461, %462 : vector<16x256xf32>
    %464 = arith.addf %463, %5 : vector<16x256xf32>
    %cst_157 = arith.constant 5.000000e-01 : f32
    %465 = vector.broadcast %cst_157 : f32 to vector<16x256xf32>
    %466 = arith.mulf %465, %464 : vector<16x256xf32>
    %467 = math.tanh %466 : vector<16x256xf32>
    %cst_158 = arith.constant 1.000000e+00 : f32
    %468 = vector.broadcast %cst_158 : f32 to vector<16x256xf32>
    %469 = arith.addf %468, %467 : vector<16x256xf32>
    %cst_159 = arith.constant 5.000000e-01 : f32
    %470 = vector.broadcast %cst_159 : f32 to vector<16x256xf32>
    %471 = arith.mulf %470, %469 : vector<16x256xf32>
    %472 = vector.extract_strided_slice %471 {offsets = [0, 0], sizes = [16, 128], strides = [1, 1]} : vector<16x256xf32> to vector<16x128xf32>
    %473 = vector.extract_strided_slice %471 {offsets = [0, 128], sizes = [16, 128], strides = [1, 1]} : vector<16x256xf32> to vector<16x128xf32>
    %474 = vector.extract_strided_slice %460 {offsets = [0, 256], sizes = [16, 128], strides = [1, 1]} : vector<16x384xf32> to vector<16x128xf32>
    %475 = arith.addf %474, %8 : vector<16x128xf32>
    %476 = vector.extract_strided_slice %434 {offsets = [0, 256], sizes = [16, 128], strides = [1, 1]} : vector<16x384xf32> to vector<16x128xf32>
    %477 = arith.addf %476, %11 : vector<16x128xf32>
    %478 = arith.mulf %472, %477 : vector<16x128xf32>
    %479 = arith.addf %475, %478 : vector<16x128xf32>
    %480 = math.tanh %479 : vector<16x128xf32>
    %cst_160 = arith.constant 1.000000e+00 : f32
    %481 = vector.broadcast %cst_160 : f32 to vector<16x128xf32>
    %482 = arith.subf %481, %473 : vector<16x128xf32>
    %483 = arith.mulf %482, %480 : vector<16x128xf32>
    %484 = arith.mulf %473, %426 : vector<16x128xf32>
    %485 = arith.addf %483, %484 : vector<16x128xf32>
    %c0_161 = arith.constant 0 : index
    %c0_162 = arith.constant 0 : index
    %486 = vector.load %arg9[%c0_161, %c0_162] : memref<16x128xf32, #tpu.memory_space<vmem>>, vector<16x128xf32>
    tpu.vector_store %arg9[%c0_161, %c0_162], %485 {strides = array<i32>} : memref<16x128xf32, #tpu.memory_space<vmem>>, vector<16x128xf32>,
    return
  }
  func.func @transform_0(%arg0: i32) -> (i32, i32, i32) {
    %c0_i32 = arith.constant 0 : i32
    %c0_i32_0 = arith.constant 0 : i32
    %c0_i32_1 = arith.constant 0 : i32
    return %c0_i32, %arg0, %c0_i32_0 : i32, i32, i32
  }
  func.func @transform_1(%arg0: i32) -> (i32, i32) {
    %c0_i32 = arith.constant 0 : i32
    %c0_i32_0 = arith.constant 0 : i32
    %c0_i32_1 = arith.constant 0 : i32
    return %c0_i32, %c0_i32_0 : i32, i32
  }
  func.func @transform_2(%arg0: i32) -> (i32, i32) {
    %c0_i32 = arith.constant 0 : i32
    %c0_i32_0 = arith.constant 0 : i32
    %c0_i32_1 = arith.constant 0 : i32
    return %c0_i32, %c0_i32_0 : i32, i32
  }
  func.func @transform_3(%arg0: i32) -> (i32, i32) {
    %c0_i32 = arith.constant 0 : i32
    %c0_i32_0 = arith.constant 0 : i32
    %c0_i32_1 = arith.constant 0 : i32
    return %c0_i32, %c0_i32_0 : i32, i32
  }
  func.func @transform_4(%arg0: i32) -> (i32, i32) {
    %c0_i32 = arith.constant 0 : i32
    %c0_i32_0 = arith.constant 0 : i32
    %c0_i32_1 = arith.constant 0 : i32
    return %c0_i32, %c0_i32_0 : i32, i32
  }
  func.func @transform_5(%arg0: i32) -> (i32, i32) {
    %c0_i32 = arith.constant 0 : i32
    %c0_i32_0 = arith.constant 0 : i32
    %c0_i32_1 = arith.constant 0 : i32
    return %c0_i32, %c0_i32_0 : i32, i32
  }
  func.func @transform_6(%arg0: i32) -> (i32, i32) {
    %c0_i32 = arith.constant 0 : i32
    %c0_i32_0 = arith.constant 0 : i32
    %c0_i32_1 = arith.constant 0 : i32
    return %c0_i32, %c0_i32_0 : i32, i32
  }
  func.func @transform_7(%arg0: i32) -> (i32, i32) {
    %c0_i32 = arith.constant 0 : i32
    %c0_i32_0 = arith.constant 0 : i32
    %c0_i32_1 = arith.constant 0 : i32
    return %c0_i32, %c0_i32_0 : i32, i32
  }
  func.func @transform_8(%arg0: i32) -> (i32, i32) {
    %c0_i32 = arith.constant 0 : i32
    %c0_i32_0 = arith.constant 0 : i32
    return %arg0, %c0_i32 : i32, i32
  }
}

</mosaic_0001>

<bundles_post_ra>
// kernel: tpu_custom_call.1
= control target key start
LH: loop header
LB: loop body
LE: loop exit
PB: predicated region body
PF: predicated region fallthrough
CT: control target
= control target key end

     0   :  { %13 = vsyncpa [#allocation3], 0  ;;  %s6276_s0 = inlined_call_operand.hbm [shape: f32[8,16,384], index: 0, kind: input, shape index: {}]   ;;  %s6277_s1 = inlined_call_operand.vmem [shape: f32[1,128], index: 1, kind: input, shape index: {}]   ;;  %s6278_s2 = inlined_call_operand.hbm [shape: bf16[128,384], index: 2, kind: input, shape index: {}]   ;;  %s6279_s3 = inlined_call_operand.hbm [shape: bf16[128,384], index: 3, kind: input, shape index: {}]   ;;  %s6280_s4 = inlined_call_operand.hbm [shape: bf16[128,384], index: 4, kind: input, shape index: {}]   ;;  %s6281_s5 = inlined_call_operand.vmem [shape: f32[1,256], index: 5, kind: input, shape index: {}]   ;;  %s6282_s6 = inlined_call_operand.vmem [shape: f32[1,128], index: 6, kind: input, shape index: {}]   ;;  %s6283_s7 = inlined_call_operand.vmem [shape: f32[1,128], index: 7, kind: input, shape index: {}]   ;;  %s6284_s8 = inlined_call_operand.hbm [shape: f32[16,128], index: 8, kind: output, shape index: {}]  }
   0x1   :  { %14 = vsyncpa [#allocation6], 0 }
   0x2   :  { %15 = vsyncpa [#allocation9], 0 }
   0x3   :  { %16 = vsyncpa [#allocation4], 0  ;;  %s4661_s27 = smov [#allocation5]  }
   0x4   :  { %s36_s28 = sshll.u32 %s4661_s27, 4  ;;  %s37_s28 = int_to_ptr.vmem [resolvable:$true] %s36_s28 }
   0x5   :  { %s4561_s29 = scalar_lea.vmem %s37_s28, 3072  ;;  %p4566_p1 = scmp.lt.s32.totalorder %s37_s28, %s37_s28 }
   0x6   :  { %p4562_p0 = scmp.ne.s32.totalorder %s37_s28, %s4561_s29  ;;  %p4567_p2 = scmp.lt.s32.totalorder %s4561_s29, %s4561_s29 }
   0x8   :  { %p4568_p3 = por %p4567_p2, %p4566_p1 }
   0xa   :  { %p4569_p4 = pnand %p4568_p3, %p4562_p0 }
   0xc   :  { %4572 = shalt.err (!%p4569_p4)
}
   0xd   :  { %s4662_s30 = smov 192   ;;  %s4663_s9 = smov 12  }
   0xe   :  { %42 = dma.hbm_to_vmem [thread:$0]  %s6278_s2, 3072, %s37_s28, [#allocation6], %s4662_s30, %s4662_s30, %s4663_s9  }
   0xf   :  { %s4664_s12 = smov [#allocation2]  }
  0x10   :  { %s22_s13 = sshll.u32 %s4664_s12, 4  ;;  %s23_s13 = int_to_ptr.vmem [resolvable:$true] %s22_s13 }
  0x11   :  { %s4581_s14 = scalar_lea.vmem %s23_s13, 6144  ;;  %p4586_p6 = scmp.lt.s32.totalorder %s23_s13, %s23_s13 }
  0x12   :  { %p4582_p5 = scmp.ne.s32.totalorder %s23_s13, %s4581_s14  ;;  %p4587_p7 = scmp.lt.s32.totalorder %s4581_s14, %s4581_s14 }
  0x14   :  { %p4588_p8 = por %p4587_p7, %p4586_p6 }
  0x16   :  { %p4589_p9 = pnand %p4588_p8, %p4582_p5 }
  0x18   :  { %4592 = shalt.err (!%p4589_p9)
}
  0x19   :  { %s4665_s15 = smov 384   ;;  %s4666_s16 = smov 24  }
  0x1a   :  { %28 = dma.hbm_to_vmem [thread:$0]  %s6276_s0, 6144, %s23_s13, [#allocation3], %s4665_s15, %s4665_s15, %s4666_s16  }
  0x1b   :  { %s4667_s19 = smov [#allocation7]   ;;  %s4668_s21 = smov [#allocation8]  }
  0x1c   :  { %s48_s20 = sshll.u32 %s4667_s19, 4  ;;  %s60_s2 = sshll.u32 %s4668_s21, 4  ;;  %s49_s20 = int_to_ptr.vmem [resolvable:$true] %s48_s20  ;;  %s61_s2 = int_to_ptr.vmem [resolvable:$true] %s60_s2 }
  0x1d   :  { %s4601_s22 = scalar_lea.vmem %s49_s20, 3072  ;;  %p4606_p11 = scmp.lt.s32.totalorder %s49_s20, %s49_s20 }
  0x1e   :  { %p4602_p10 = scmp.ne.s32.totalorder %s49_s20, %s4601_s22  ;;  %p4607_p12 = scmp.lt.s32.totalorder %s4601_s22, %s4601_s22 }
  0x20   :  { %p4608_p13 = por %p4607_p12, %p4606_p11 }
  0x22   :  { %p4609_p0 = pnand %p4608_p13, %p4602_p10 }
  0x24   :  { %4612 = shalt.err (!%p4609_p0)
}
  0x25   :  { %54 = dma.hbm_to_vmem [thread:$0]  %s6279_s3, 3072, %s49_s20, [#allocation6], %s4662_s30, %s4662_s30, %s4663_s9  }
  0x26   :  { %s4621_s0 = scalar_lea.vmem %s61_s2, 3072  ;;  %p4626_p2 = scmp.lt.s32.totalorder %s61_s2, %s61_s2 }
  0x27   :  { %p4622_p1 = scmp.ne.s32.totalorder %s61_s2, %s4621_s0  ;;  %p4627_p3 = scmp.lt.s32.totalorder %s4621_s0, %s4621_s0 }
  0x29   :  { %p4628_p4 = por %p4627_p3, %p4626_p2 }
  0x2b   :  { %p4629_p5 = pnand %p4628_p4, %p4622_p1 }
  0x2d   :  { %4632 = shalt.err (!%p4629_p5)
}
  0x2e   :  { %66 = dma.hbm_to_vmem [thread:$0]  %s6280_s4, 3072, %s61_s2, [#allocation9], %s4662_s30, %s4662_s30, %s4663_s9  }
  0x2f   :  { %4653 = dma.done.wait [#allocation3], 6144  }
  0x30   :  { %4654 = vsyncadd [#allocation3], 4294961152 }
  0x31   :  { %4655 = dma.done.wait [#allocation6], 6144  }
  0x32   :  { %4656 = vsyncadd [#allocation6], 4294961152 }
  0x33   :  { %4657 = dma.done.wait [#allocation9], 3072  }
  0x34   :  { %4658 = vsyncadd [#allocation9], 4294964224  ;;  %v6314_v0 = vmov 0.0   ;;  %v6285_v1 = vmov 0   ;;  %vm4671_vm0 = vmmov 0  }
  0x35   :  { %3621 = vmatprep.subr.bf16.mxu1 %v6314_v0  ;;  %317 = vmatprep.mubr.bf16.mxu0 %v6285_v1  ;;  %v4745_v2 = vld [vmem:[#allocation5 + $0xac] ss:$12 sps:$4 sm:$0xff]   ;;  %v4747_v3 = vld [vmem:[#allocation5 + $0xa8] ss:$12 sps:$4 sm:$0xff]   ;;  %v4753_v5 = vld [vmem:[#allocation5 + $0x90] ss:$12 sps:$4 sm:$0xff]  }
  0x36   :  { %3637 = vmatprep.mubr.msk.bf16.mxu1 %vm4671_vm0, %v6314_v0  ;;  %285 = vmatprep.subr.bf16.mxu0 %v4745_v2  ;;  %v4750_v4 = vld [vmem:[#allocation5 + $0x94] ss:$12 sps:$4 sm:$0xff]   ;;  %v4756_v6 = vld [vmem:[#allocation5 + $0x7c] ss:$12 sps:$4 sm:$0xff]   ;;  %v4761_v8 = vld [vmem:[#allocation5 + $0x78] ss:$12 sps:$4 sm:$0xff]  }
  0x37   :  { %286 = vmatpush1.bf16.msra.mxu0 %v4747_v3  ;;  %v4758_v7 = vld [vmem:[#allocation5 + $0xb0] ss:$12 sps:$4 sm:$0xff]   ;;  %v4767_v10 = vld [vmem:[#allocation5 + $0x98] ss:$12 sps:$4 sm:$0xff]   ;;  %v4770_v11 = vld [vmem:[#allocation5 + $0x60] ss:$12 sps:$4 sm:$0xff]  }
  0x38   :  { %287 = vmatprep.subr.bf16.mxu0 %v4750_v4  ;;  %v4763_v9 = vld [vmem:[#allocation5 + $0x64] ss:$12 sps:$4 sm:$0xff]   ;;  %3622 = vmatpush3.bf16.msra.mxu1 %v4758_v7  ;;  %v4773_v12 = vld [vmem:[#allocation5 + $0x4c] ss:$12 sps:$4 sm:$0xff]   ;;  %v4780_v14 = vld [vmem:[#allocation5 + $0x48] ss:$12 sps:$4 sm:$0xff]  }
  0x39   :  { %3623 = vmatprep.subr.bf16.mxu1 %v6314_v0  ;;  %v4777_v13 = vld [vmem:[#allocation5 + $0x80] ss:$12 sps:$4 sm:$0xff]   ;;  %v4787_v16 = vld [vmem:[#allocation5 + $0x68] ss:$12 sps:$4 sm:$0xff]   ;;  %v4791_v17 = vld [vmem:[#allocation5 + $0x30] ss:$12 sps:$4 sm:$0xff]  }
  0x3a   :  { %v4783_v15 = vld [vmem:[#allocation5 + $0x34] ss:$12 sps:$4 sm:$0xff]   ;;  %v4793_v18 = vld [vmem:[#allocation5 + $0x1c] ss:$12 sps:$4 sm:$0xff]   ;;  %v4801_v20 = vld [vmem:[#allocation5 + $0x18] ss:$12 sps:$4 sm:$0xff]  }
  0x3b   :  { %288 = vmatpush1.bf16.msra.mxu0 %v4753_v5  ;;  %v4797_v19 = vld [vmem:[#allocation5 + $0x50] ss:$12 sps:$4 sm:$0xff]   ;;  %v4807_v22 = vld [vmem:[#allocation5 + $0x38] ss:$12 sps:$4 sm:$0xff]   ;;  %v4810_v23 = vld [vmem:[#allocation5] ss:$12 sps:$4 sm:$0xff]  }
  0x3c   :  { %289 = vmatprep.subr.bf16.mxu0 %v4756_v6  ;;  %3624 = vmatpush3.bf16.msra.mxu1 %v4767_v10  ;;  %v4803_v21 = vld [vmem:[#allocation5 + $0x4] ss:$12 sps:$4 sm:$0xff]   ;;  %v4813_v24 = vld [vmem:[#allocation5 + $0x20] ss:$12 sps:$4 sm:$0xff]   ;;  %v4820_v26 = vld [vmem:[#allocation8 + $0xa8] ss:$12 sps:$4 sm:$0xff]  }
  0x3d   :  { %3625 = vmatprep.subr.bf16.mxu1 %v6314_v0  ;;  %v4817_v25 = vld [vmem:[#allocation8 + $0xac] ss:$12 sps:$4 sm:$0xff]   ;;  %v4822_v27 = vld [vmem:[#allocation5 + $0x8] ss:$12 sps:$4 sm:$0xff]   ;;  %v4830_v29 = vld [vmem:[#allocation8 + $0x90] ss:$12 sps:$4 sm:$0xff]  }
  0x3e   :  { %v4824_v28 = vld [vmem:[#allocation8 + $0x94] ss:$12 sps:$4 sm:$0xff]   ;;  %v4833_v30 = vld [vmem:[#allocation8 + $0xb0] ss:$12 sps:$4 sm:$0xff]   ;;  %v4842_v32 = vld [vmem:[#allocation8 + $0x78] ss:$12 sps:$4 sm:$0xff]  }
  0x3f   :  { %290 = vmatpush1.bf16.msra.mxu0 %v4761_v8  ;;  %v4835_v31 = vld [vmem:[#allocation8 + $0x7c] ss:$12 sps:$4 sm:$0xff]   ;;  %v4844_v33 = vld [vmem:[#allocation8 + $0x98] ss:$12 sps:$4 sm:$0xff]   ;;  %v4853_v35 = vld [vmem:[#allocation8 + $0x60] ss:$12 sps:$4 sm:$0xff]  }
  0x40   :  { %291 = vmatprep.subr.bf16.mxu0 %v4763_v9  ;;  %3626 = vmatpush3.bf16.msra.mxu1 %v4777_v13  ;;  %v4846_v34 = vld [vmem:[#allocation8 + $0x64] ss:$12 sps:$4 sm:$0xff]   ;;  %v4857_v36 = vld [vmem:[#allocation8 + $0x80] ss:$12 sps:$4 sm:$0xff]   ;;  %v4866_v38 = vld [vmem:[#allocation8 + $0x48] ss:$12 sps:$4 sm:$0xff]  }
  0x41   :  { %3627 = vmatprep.subr.bf16.mxu1 %v6314_v0  ;;  %v4859_v37 = vld [vmem:[#allocation8 + $0x4c] ss:$12 sps:$4 sm:$0xff]   ;;  %v4870_v39 = vld [vmem:[#allocation8 + $0x68] ss:$12 sps:$4 sm:$0xff]   ;;  %v4878_v41 = vld [vmem:[#allocation8 + $0x30] ss:$12 sps:$4 sm:$0xff]  }
  0x42   :  { %v4876_v40 = vld [vmem:[#allocation8 + $0x34] ss:$12 sps:$4 sm:$0xff]   ;;  %v4880_v42 = vld [vmem:[#allocation8 + $0x50] ss:$12 sps:$4 sm:$0xff]   ;;  %v4888_v44 = vld [vmem:[#allocation8 + $0x18] ss:$12 sps:$4 sm:$0xff]  }
  0x43   :  { %292 = vmatpush1.bf16.msra.mxu0 %v4770_v11  ;;  %v4885_v43 = vld [vmem:[#allocation8 + $0x1c] ss:$12 sps:$4 sm:$0xff]   ;;  %6444 = vst [vmem:[#allocation16_spill] sm:$0xff] %v4888_v44  ;;  %v4890_v45 = vld [vmem:[#allocation8 + $0x38] ss:$12 sps:$4 sm:$0xff]  }
  0x44   :  { %293 = vmatprep.subr.bf16.mxu0 %v4773_v12  ;;  %3628 = vmatpush3.bf16.msra.mxu1 %v4787_v16  ;;  %6443 = vst [vmem:[#allocation15_spill] sm:$0xff] %v4885_v43  ;;  %v4895_v46 = vld [vmem:[#allocation8 + $0x4] ss:$12 sps:$4 sm:$0xff]   ;;  %v4898_v47 = vld [vmem:[#allocation8] ss:$12 sps:$4 sm:$0xff]  }
  0x45   :  { %3629 = vmatprep.subr.bf16.mxu1 %v6314_v0  ;;  %6445 = vst [vmem:[#allocation17_spill] sm:$0xff] %v4895_v46  ;;  %6446 = vst [vmem:[#allocation18_spill] sm:$0xff] %v4898_v47  ;;  %v4900_v48 = vld [vmem:[#allocation8 + $0x20] ss:$12 sps:$4 sm:$0xff]   ;;  %v4906_v49 = vld [vmem:[#allocation8 + $0x8] ss:$12 sps:$4 sm:$0xff]  }
  0x46   :  { %6447 = vst [vmem:[#allocation19_spill] sm:$0xff] %v4900_v48  ;;  %6448 = vst [vmem:[#allocation20_spill] sm:$0xff] %v4906_v49  ;;  %v4912_v50 = vld [vmem:[#allocation7 + $0xac] ss:$12 sps:$4 sm:$0xff]   ;;  %v4915_v51 = vld [vmem:[#allocation7 + $0xa8] ss:$12 sps:$4 sm:$0xff]  }
  0x47   :  { %294 = vmatpush1.bf16.msra.mxu0 %v4780_v14  ;;  %6449 = vst [vmem:[#allocation21_spill] sm:$0xff] %v4912_v50  ;;  %6450 = vst [vmem:[#allocation22_spill] sm:$0xff] %v4915_v51  ;;  %v4917_v52 = vld [vmem:[#allocation7 + $0xb0] ss:$12 sps:$4 sm:$0xff]   ;;  %v4924_v53 = vld [vmem:[#allocation7 + $0x94] ss:$12 sps:$4 sm:$0xff]  }
  0x48   :  { %295 = vmatprep.subr.bf16.mxu0 %v4783_v15  ;;  %3630 = vmatpush3.bf16.msra.mxu1 %v4797_v19  ;;  %6451 = vst [vmem:[#allocation23_spill] sm:$0xff] %v4917_v52  ;;  %6452 = vst [vmem:[#allocation24_spill] sm:$0xff] %v4924_v53  ;;  %v4927_v54 = vld [vmem:[#allocation7 + $0x90] ss:$12 sps:$4 sm:$0xff]   ;;  %v4929_v55 = vld [vmem:[#allocation7 + $0x98] ss:$12 sps:$4 sm:$0xff]  }
  0x49   :  { %3631 = vmatprep.subr.bf16.mxu1 %v6314_v0  ;;  %6453 = vst [vmem:[#allocation25_spill] sm:$0xff] %v4927_v54  ;;  %6454 = vst [vmem:[#allocation26_spill] sm:$0xff] %v4929_v55  ;;  %v4934_v56 = vld [vmem:[#allocation7 + $0x7c] ss:$12 sps:$4 sm:$0xff]   ;;  %v4937_v57 = vld [vmem:[#allocation7 + $0x78] ss:$12 sps:$4 sm:$0xff]  }
  0x4a   :  { %6455 = vst [vmem:[#allocation27_spill] sm:$0xff] %v4934_v56  ;;  %6456 = vst [vmem:[#allocation28_spill] sm:$0xff] %v4937_v57  ;;  %v4939_v58 = vld [vmem:[#allocation7 + $0x80] ss:$12 sps:$4 sm:$0xff]   ;;  %v4944_v59 = vld [vmem:[#allocation7 + $0x64] ss:$12 sps:$4 sm:$0xff]  }
  0x4b   :  { %296 = vmatpush1.bf16.msra.mxu0 %v4791_v17  ;;  %6457 = vst [vmem:[#allocation29_spill] sm:$0xff] %v4939_v58  ;;  %6458 = vst [vmem:[#allocation30_spill] sm:$0xff] %v4944_v59  ;;  %v4947_v60 = vld [vmem:[#allocation7 + $0x60] ss:$12 sps:$4 sm:$0xff]   ;;  %v4949_v61 = vld [vmem:[#allocation7 + $0x68] ss:$12 sps:$4 sm:$0xff]  }
  0x4c   :  { %297 = vmatprep.subr.bf16.mxu0 %v4793_v18  ;;  %3632 = vmatpush3.bf16.msra.mxu1 %v4807_v22  ;;  %6459 = vst [vmem:[#allocation31_spill] sm:$0xff] %v4947_v60  ;;  %6460 = vst [vmem:[#allocation32_spill] sm:$0xff] %v4949_v61  ;;  %v4954_v62 = vld [vmem:[#allocation7 + $0x4c] ss:$12 sps:$4 sm:$0xff]   ;;  %v4956_v63 = vld [vmem:[#allocation7 + $0x48] ss:$12 sps:$4 sm:$0xff]  }
  0x4d   :  { %3633 = vmatprep.subr.bf16.mxu1 %v6314_v0  ;;  %6461 = vst [vmem:[#allocation33_spill] sm:$0xff] %v4954_v62  ;;  %6462 = vst [vmem:[#allocation34_spill] sm:$0xff] %v4956_v63 }
  0x4f   :  { %298 = vmatpush1.bf16.msra.mxu0 %v4801_v20 }
  0x50   :  { %299 = vmatprep.subr.bf16.mxu0 %v4803_v21  ;;  %3634 = vmatpush3.bf16.msra.mxu1 %v4813_v24 }
  0x51   :  { %3635 = vmatprep.subr.bf16.mxu1 %v6314_v0 }
  0x53   :  { %300 = vmatpush1.bf16.msra.mxu0 %v4810_v23 }
  0x54   :  { %529 = vmatprep.subr.bf16.mxu0 %v4817_v25  ;;  %3636 = vmatpush3.bf16.msra.mxu1 %v4822_v27 }
  0x55   :  { %3641 = vmatprep.subr.bf16.mxu1 %v6314_v0 }
  0x56   :  { %318 = vmatmul.mubr.bf16.vlgmr.msra.gmra.mxu0 %v6285_v1 }
  0x57   :  { %530 = vmatpush1.bf16.msra.mxu0 %v4820_v26  ;;  %561 = vmatprep.mubr.bf16.mxu0 %v6285_v1 }
  0x58   :  { %531 = vmatprep.subr.bf16.mxu0 %v4824_v28  ;;  %3638 = vmatmul.mubr.bf16.vlgmr.msra.gmra.mxu1 %v6285_v1 }
  0x59   :  { %3642 = vmatpush3.bf16.msra.mxu1 %v4833_v30  ;;  %3657 = vmatprep.mubr.msk.bf16.mxu1 %vm4671_vm0, %v6314_v0 }
  0x5a   :  { %3643 = vmatprep.subr.bf16.mxu1 %v6314_v0 }
  0x5b   :  { %532 = vmatpush1.bf16.msra.mxu0 %v4830_v29 }
  0x5c   :  { %533 = vmatprep.subr.bf16.mxu0 %v4835_v31 }
  0x5d   :  { %3644 = vmatpush3.bf16.msra.mxu1 %v4844_v33 }
  0x5e   :  { %3645 = vmatprep.subr.bf16.mxu1 %v6314_v0 }
  0x5f   :  { %534 = vmatpush1.bf16.msra.mxu0 %v4842_v32 }
  0x60   :  { %535 = vmatprep.subr.bf16.mxu0 %v4846_v34 }
  0x61   :  { %3646 = vmatpush3.bf16.msra.mxu1 %v4857_v36 }
  0x62   :  { %3647 = vmatprep.subr.bf16.mxu1 %v6314_v0 }
  0x63   :  { %536 = vmatpush1.bf16.msra.mxu0 %v4853_v35 }
  0x64   :  { %537 = vmatprep.subr.bf16.mxu0 %v4859_v37 }
  0x65   :  { %3648 = vmatpush3.bf16.msra.mxu1 %v4870_v39 }
  0x66   :  { %3649 = vmatprep.subr.bf16.mxu1 %v6314_v0 }
  0x67   :  { %538 = vmatpush1.bf16.msra.mxu0 %v4866_v38 }
  0x68   :  { %539 = vmatprep.subr.bf16.mxu0 %v4876_v40 }
  0x69   :  { %3650 = vmatpush3.bf16.msra.mxu1 %v4880_v42 }
  0x6a   :  { %3651 = vmatprep.subr.bf16.mxu1 %v6314_v0 }
  0x6b   :  { %540 = vmatpush1.bf16.msra.mxu0 %v4878_v41 }
  0x6c   :  { %541 = vmatprep.subr.bf16.mxu0 %v4885_v43 }
  0x6d   :  { %3652 = vmatpush3.bf16.msra.mxu1 %v4890_v45 }
  0x6e   :  { %3653 = vmatprep.subr.bf16.mxu1 %v6314_v0 }
  0x6f   :  { %542 = vmatpush1.bf16.msra.mxu0 %v4888_v44 }
  0x70   :  { %543 = vmatprep.subr.bf16.mxu0 %v4895_v46 }
  0x71   :  { %3654 = vmatpush3.bf16.msra.mxu1 %v4900_v48 }
  0x72   :  { %3655 = vmatprep.subr.bf16.mxu1 %v6314_v0 }
  0x73   :  { %544 = vmatpush1.bf16.msra.mxu0 %v4898_v47 }
  0x74   :  { %810 = vmatprep.subr.bf16.mxu0 %v4912_v50 }
  0x75   :  { %3656 = vmatpush3.bf16.msra.mxu1 %v4906_v49 }
  0x76   :  { %562 = vmatmul.mubr.bf16.vlgmr.msra.gmra.mxu0 %v6285_v1  ;;  %3661 = vmatprep.subr.bf16.mxu1 %v6314_v0 }
  0x77   :  { %842 = vmatprep.mubr.bf16.mxu0 %v6285_v1  ;;  %811 = vmatpush1.bf16.msra.mxu0 %v4915_v51 }
  0x78   :  { %3658 = vmatmul.mubr.bf16.vlgmr.msra.gmra.mxu1 %v6285_v1  ;;  %812 = vmatprep.subr.bf16.mxu0 %v4924_v53  ;;  %v4958_v1 = vld [vmem:[#allocation7 + $0x50] ss:$12 sps:$4 sm:$0xff]   ;;  %v120_v53 = vld [vmem:[#allocation2 + $0x8] sm:$0xff] }
  0x79   :  { %3677 = vmatprep.mubr.msk.bf16.mxu1 %vm4671_vm0, %v6314_v0  ;;  %3662 = vmatpush3.bf16.msra.mxu1 %v4917_v52  ;;  %6463 = vst [vmem:[#allocation35_spill] sm:$0xff] %v4958_v1 }
  0x7a   :  { %3663 = vmatprep.subr.bf16.mxu1 %v6314_v0 }
  0x7b   :  { %813 = vmatpush1.bf16.msra.mxu0 %v4927_v54 }
  0x7c   :  { %814 = vmatprep.subr.bf16.mxu0 %v4934_v56 }
  0x7d   :  { %3664 = vmatpush3.bf16.msra.mxu1 %v4929_v55 }
  0x7e   :  { %3665 = vmatprep.subr.bf16.mxu1 %v6314_v0 }
  0x7f   :  { %815 = vmatpush1.bf16.msra.mxu0 %v4937_v57  ;;  %v4976_v57 = vld [vmem:[#allocation7 + $0x18] ss:$12 sps:$4 sm:$0xff]  }
  0x80   :  { %816 = vmatprep.subr.bf16.mxu0 %v4944_v59  ;;  %v4966_v59 = vld [vmem:[#allocation7 + $0x30] ss:$12 sps:$4 sm:$0xff]   ;;  %6468 = vst [vmem:[#allocation40_spill] sm:$0xff] %v4976_v57 }
  0x81   :  { %3666 = vmatpush3.bf16.msra.mxu1 %v4939_v58  ;;  %v4961_v58 = vld [vmem:[#allocation7 + $0x34] ss:$12 sps:$4 sm:$0xff]   ;;  %6465 = vst [vmem:[#allocation37_spill] sm:$0xff] %v4966_v59 }
  0x82   :  { %3667 = vmatprep.subr.bf16.mxu1 %v6314_v0  ;;  %6464 = vst [vmem:[#allocation36_spill] sm:$0xff] %v4961_v58 }
  0x83   :  { %817 = vmatpush1.bf16.msra.mxu0 %v4947_v60  ;;  %v4968_v60 = vld [vmem:[#allocation7 + $0x38] ss:$12 sps:$4 sm:$0xff]  }
  0x84   :  { %818 = vmatprep.subr.bf16.mxu0 %v4954_v62  ;;  %6466 = vst [vmem:[#allocation38_spill] sm:$0xff] %v4968_v60  ;;  %v4978_v62 = vld [vmem:[#allocation7 + $0x20] ss:$12 sps:$4 sm:$0xff]  }
  0x85   :  { %3668 = vmatpush3.bf16.msra.mxu1 %v4949_v61  ;;  %v4972_v61 = vld [vmem:[#allocation7 + $0x1c] ss:$12 sps:$4 sm:$0xff]   ;;  %6469 = vst [vmem:[#allocation41_spill] sm:$0xff] %v4978_v62 }
  0x86   :  { %3669 = vmatprep.subr.bf16.mxu1 %v6314_v0  ;;  %6467 = vst [vmem:[#allocation39_spill] sm:$0xff] %v4972_v61 }
  0x87   :  { %819 = vmatpush1.bf16.msra.mxu0 %v4956_v63  ;;  %v4988_v63 = vld [vmem:[#allocation7 + $0x8] ss:$12 sps:$4 sm:$0xff]  }
  0x88   :  { %820 = vmatprep.subr.bf16.mxu0 %v4961_v58  ;;  %v4986_v58 = vld [vmem:[#allocation7] ss:$12 sps:$4 sm:$0xff]   ;;  %6472 = vst [vmem:[#allocation44_spill] sm:$0xff] %v4988_v63 }
  0x89   :  { %3670 = vmatpush3.bf16.msra.mxu1 %v4958_v1  ;;  %v4982_v1 = vld [vmem:[#allocation7 + $0x4] ss:$12 sps:$4 sm:$0xff]   ;;  %6471 = vst [vmem:[#allocation43_spill] sm:$0xff] %v4986_v58 }
  0x8a   :  { %3671 = vmatprep.subr.bf16.mxu1 %v6314_v0  ;;  %6470 = vst [vmem:[#allocation42_spill] sm:$0xff] %v4982_v1 }
  0x8b   :  { %821 = vmatpush1.bf16.msra.mxu0 %v4966_v59  ;;  %v122_v59 = vld [vmem:[#allocation2 + $0x18] sm:$0xff] }
  0x8c   :  { %822 = vmatprep.subr.bf16.mxu0 %v4972_v61  ;;  %v119_v61 = vld [vmem:[#allocation2] sm:$0xff] }
  0x8d   :  { %3672 = vmatpush3.bf16.msra.mxu1 %v4968_v60 }
  0x8e   :  { %3673 = vmatprep.subr.bf16.mxu1 %v6314_v0 }
  0x8f   :  { %823 = vmatpush1.bf16.msra.mxu0 %v4976_v57 }
  0x90   :  { %824 = vmatprep.subr.bf16.mxu0 %v4982_v1 }
  0x91   :  { %3674 = vmatpush3.bf16.msra.mxu1 %v4978_v62 }
  0x92   :  { %3675 = vmatprep.subr.bf16.mxu1 %v6314_v0 }
  0x93   :  { %825 = vmatpush1.bf16.msra.mxu0 %v4986_v58  ;;  %v123_v58 = vld [vmem:[#allocation2 + $0x20] sm:$0xff] }
  0x94   :  { %943 = vmatprep.subr.bf16.mxu0 %v4745_v2 }
  0x95   :  { %3676 = vmatpush3.bf16.msra.mxu1 %v4988_v63 }
  0x96   :  { %3681 = vmatprep.subr.bf16.mxu1 %v6314_v0 }
 0x116   :  { %v319_v57 = vpop.f32.mrf.mxu0 }
 0x117   :  { %v613_v60 = vadd.f32 %v319_v57, %v119_v61  ;;  %v4999_v57 = vld [vmem:[%s6277_s1] ss:$0 sm:$0xff]  ;;  %v124_v61 = vld [vmem:[#allocation2 + $0x28] sm:$0xff] }
 0x118   :  { %v321_v62 = vpop.f32.mrf.mxu0  ;;  %v362_v1 = vpop.f32.mrf.mxu1 }
 0x119   :  { %v617_v56 = vmul.f32 0.5, %v613_v60  ;;  %v614_v2 = vadd.f32 %v321_v62, %v120_v53 }
 0x11a   :  { %v323_v55 = vpop.f32.mrf.mxu0  ;;  %v3639_v51 = vpop.f32.mrf.mxu1 }
 0x11b   :  { %4211 = vtanh.f32 %v617_v56  ;;  %v615_v54 = vadd.f32 %v323_v55, %v122_v59  ;;  %v618_v47 = vmul.f32 0.5, %v614_v2  ;;  %v121_v59 = vld [vmem:[#allocation2 + $0x10] sm:$0xff] }
 0x11c   :  { %v325_v63 = vpop.f32.mrf.mxu0  ;;  %v365_v50 = vpop.f32.mrf.mxu1 }
 0x11d   :  { %v619_v52 = vmul.f32 0.5, %v615_v54  ;;  %v616_v0 = vadd.f32 %v325_v63, %v123_v58  ;;  %v633_v54 = vadd.f32 %v4999_v57, %v362_v1 }
 0x11e   :  { %v3640_v49 = vpop.f32.mrf.mxu1 }
 0x11f   :  { %4213 = vtanh.f32 %v619_v52  ;;  %v620_v46 = vmul.f32 0.5, %v616_v0  ;;  %v634_v0 = vadd.f32 %v4999_v57, %v365_v50 }
 0x120   :  { %4215 = vtanh.f32 %v618_v47 }
 0x121   :  { %4217 = vtanh.f32 %v620_v46 }
 0x128   :  { %v4212_v56 = vpop.eup %4211 }
 0x129   :  { %v625_v55 = vadd.f32 1.0, %v4212_v56 }
 0x12b   :  { %v629_v51 = vmul.f32 0.5, %v625_v55 }
 0x12c   :  { %v4214_v52 = vpop.eup %4213 }
 0x12d   :  { %v635_v60 = vmul.f32 %v633_v54, %v629_v51  ;;  %v627_v53 = vadd.f32 1.0, %v4214_v52  ;;  %v4216_v2 = vpop.eup %4215 }
 0x12e   :  { %v4218_v47 = vpop.eup %4217  ;;  %v626_v56 = vadd.f32 1.0, %v4216_v2 }
 0x12f   :  { %v637_v49 = vadd.f32 %v635_v60, %v121_v59  ;;  %v631_v58 = vmul.f32 0.5, %v627_v53  ;;  %v628_v48 = vadd.f32 1.0, %v4218_v47 }
 0x130   :  { %v630_v1 = vmul.f32 0.5, %v626_v56 }
 0x131   :  { %4219 = vtanh.f32 %v637_v49  ;;  %v636_v62 = vmul.f32 %v634_v0, %v631_v58  ;;  %v632_v46 = vmul.f32 0.5, %v628_v48  ;;  %v6474_v48 = vmov 0  }
 0x132   :  { %v641_v44 = vsub.f32 1.0, %v630_v1  ;;  %v645_v52 = vmul.f32 0.0, %v630_v1 }
 0x133   :  { %v638_v63 = vadd.f32 %v636_v62, %v124_v61  ;;  %v642_v43 = vsub.f32 1.0, %v632_v46  ;;  %v646_v59 = vmul.f32 0.0, %v632_v46 }
 0x135   :  { %4221 = vtanh.f32 %v638_v63 }
 0x13e   :  { %v4220_v55 = vpop.eup %4219 }
 0x13f   :  { %v643_v54 = vmul.f32 %v4220_v55, %v641_v44  ;;  %v6473_v44 = vmov 0.0  }
 0x141   :  { %v5003_v50 = vadd.f32 %v645_v52, %v643_v54 }
 0x142   :  { %v4222_v51 = vpop.eup %4221 }
 0x143   :  { %v644_v60 = vmul.f32 %v4222_v51, %v642_v43 }
 0x145   :  { %v5005_v53 = vadd.f32 %v646_v59, %v644_v60 }
 0x147   :  { %v649_v49 = vpack.c.bf16 %v5005_v53, %v5003_v50 }
 0x149   :  { %843 = vmatmul.mubr.bf16.vlgmr.msra.gmra.mxu0 %v649_v49  ;;  %3678 = vmatmul.mubr.bf16.vlgmr.msra.gmra.mxu1 %v649_v49 }
 0x14a   :  { %944 = vmatpush1.bf16.msra.mxu0 %v4747_v3  ;;  %3682 = vmatpush3.bf16.msra.mxu1 %v4758_v7  ;;  %v5042_v3 = vpop.f32.mrf.mxu1  ;;  %v6475_v7 = vld [vmem:[#allocation15_spill] sm:$0xff] }
 0x14b   :  { %945 = vmatprep.subr.bf16.mxu0 %v4750_v4  ;;  %3683 = vmatprep.subr.bf16.mxu1 %v6473_v44 }
 0x14c   :  { %975 = vmatprep.mubr.bf16.mxu0 %v6474_v48  ;;  %3697 = vmatprep.mubr.msk.bf16.mxu1 %vm4671_vm0, %v6473_v44  ;;  %v3659_v4 = vpop.f32.mrf.mxu1 }
 0x14e   :  { %946 = vmatpush1.bf16.msra.mxu0 %v4753_v5  ;;  %3684 = vmatpush3.bf16.msra.mxu1 %v4767_v10  ;;  %v5048_v5 = vpop.f32.mrf.mxu1  ;;  %v6478_v10 = vld [vmem:[#allocation17_spill] sm:$0xff] }
 0x14f   :  { %947 = vmatprep.subr.bf16.mxu0 %v4756_v6  ;;  %3685 = vmatprep.subr.bf16.mxu1 %v6473_v44 }
 0x150   :  { %v3660_v6 = vpop.f32.mrf.mxu1 }
 0x152   :  { %948 = vmatpush1.bf16.msra.mxu0 %v4761_v8  ;;  %3686 = vmatpush3.bf16.msra.mxu1 %v4777_v13  ;;  %v6476_v8 = vld [vmem:[#allocation16_spill] sm:$0xff]  ;;  %v6481_v13 = vld [vmem:[#allocation21_spill] sm:$0xff] }
 0x153   :  { %949 = vmatprep.subr.bf16.mxu0 %v4763_v9  ;;  %3687 = vmatprep.subr.bf16.mxu1 %v6473_v44  ;;  %v6477_v9 = vld [vmem:[#allocation19_spill] sm:$0xff] }
 0x156   :  { %950 = vmatpush1.bf16.msra.mxu0 %v4770_v11  ;;  %3688 = vmatpush3.bf16.msra.mxu1 %v4787_v16  ;;  %v6479_v11 = vld [vmem:[#allocation18_spill] sm:$0xff] }
 0x157   :  { %951 = vmatprep.subr.bf16.mxu0 %v4773_v12  ;;  %3689 = vmatprep.subr.bf16.mxu1 %v6473_v44  ;;  %v6480_v12 = vld [vmem:[#allocation20_spill] sm:$0xff] }
 0x15a   :  { %952 = vmatpush1.bf16.msra.mxu0 %v4780_v14  ;;  %3690 = vmatpush3.bf16.msra.mxu1 %v4797_v19  ;;  %v563_v14 = vpop.f32.mrf.mxu0 }
 0x15b   :  { %953 = vmatprep.subr.bf16.mxu0 %v4783_v15  ;;  %3691 = vmatprep.subr.bf16.mxu1 %v6473_v44  ;;  %v95_v15 = vlaneseq }
 0x15c   :  { %v565_v16 = vpop.f32.mrf.mxu0 }
 0x15e   :  { %954 = vmatpush1.bf16.msra.mxu0 %v4791_v17  ;;  %3692 = vmatpush3.bf16.msra.mxu1 %v4807_v22  ;;  %v96_v17 = vshrl.u32 %v95_v15, 7 }
 0x15f   :  { %955 = vmatprep.subr.bf16.mxu0 %v4793_v18  ;;  %3693 = vmatprep.subr.bf16.mxu1 %v6473_v44  ;;  %v567_v18 = vpop.f32.mrf.mxu0 }
 0x160   :  { %v97_v19 = vsub.s32 0, %v96_v17  ;;  %v101_v63 = vsub.s32 1, %v96_v17  ;;  %v5097_v17 = vld [vmem:[%s6283_s7] ss:$0 sm:$0xff] }
 0x162   :  { %956 = vmatpush1.bf16.msra.mxu0 %v4801_v20  ;;  %3694 = vmatpush3.bf16.msra.mxu1 %v4813_v24  ;;  %v93_v20 = vld [vmem:[%s6281_s5] sm:$0x3] }
 0x163   :  { %957 = vmatprep.subr.bf16.mxu0 %v4803_v21  ;;  %3695 = vmatprep.subr.bf16.mxu1 %v6473_v44  ;;  %v569_v21 = vpop.f32.mrf.mxu0  ;;  %v5086_v22 = vrot.slane %v93_v20, %v97_v19  ;;  %v5089_v54 = vrot.slane %v93_v20, %v101_v63  ;;  %v920_v19 = vadd.f32 %v5097_v17, %v5042_v3 }
 0x165   :  { %6482 = vst [vmem:[#allocation15_spill] sm:$0xff] %v5089_v54 }
 0x166   :  { %958 = vmatpush1.bf16.msra.mxu0 %v4810_v23  ;;  %3696 = vmatpush3.bf16.msra.mxu1 %v4822_v27 }
 0x167   :  { %1028 = vmatprep.subr.bf16.mxu0 %v4817_v25  ;;  %3701 = vmatprep.subr.bf16.mxu1 %v6473_v44 }
 0x169   :  { %976 = vmatmul.mubr.bf16.vlgmr.msra.gmra.mxu0 %v649_v49  ;;  %3698 = vmatmul.mubr.bf16.vlgmr.msra.gmra.mxu1 %v649_v49 }
 0x16a   :  { %1029 = vmatpush1.bf16.msra.mxu0 %v4820_v26  ;;  %3702 = vmatpush3.bf16.msra.mxu1 %v4833_v30 }
 0x16b   :  { %1030 = vmatprep.subr.bf16.mxu0 %v4824_v28  ;;  %3703 = vmatprep.subr.bf16.mxu1 %v6473_v44 }
 0x16c   :  { %1060 = vmatprep.mubr.bf16.mxu0 %v6474_v48  ;;  %3717 = vmatprep.mubr.msk.bf16.mxu1 %vm4671_vm0, %v6473_v44 }
 0x16e   :  { %1031 = vmatpush1.bf16.msra.mxu0 %v4830_v29  ;;  %3704 = vmatpush3.bf16.msra.mxu1 %v4844_v33 }
 0x16f   :  { %1032 = vmatprep.subr.bf16.mxu0 %v4835_v31  ;;  %3705 = vmatprep.subr.bf16.mxu1 %v6473_v44 }
 0x172   :  { %1033 = vmatpush1.bf16.msra.mxu0 %v4842_v32  ;;  %3706 = vmatpush3.bf16.msra.mxu1 %v4857_v36 }
 0x173   :  { %1034 = vmatprep.subr.bf16.mxu0 %v4846_v34  ;;  %3707 = vmatprep.subr.bf16.mxu1 %v6473_v44 }
 0x176   :  { %1035 = vmatpush1.bf16.msra.mxu0 %v4853_v35  ;;  %3708 = vmatpush3.bf16.msra.mxu1 %v4870_v39 }
 0x177   :  { %1036 = vmatprep.subr.bf16.mxu0 %v4859_v37  ;;  %3709 = vmatprep.subr.bf16.mxu1 %v6473_v44 }
 0x17a   :  { %1037 = vmatpush1.bf16.msra.mxu0 %v4866_v38  ;;  %3710 = vmatpush3.bf16.msra.mxu1 %v4880_v42 }
 0x17b   :  { %1038 = vmatprep.subr.bf16.mxu0 %v4876_v40  ;;  %3711 = vmatprep.subr.bf16.mxu1 %v6473_v44 }
 0x17e   :  { %1039 = vmatpush1.bf16.msra.mxu0 %v4878_v41  ;;  %3712 = vmatpush3.bf16.msra.mxu1 %v4890_v45 }
 0x17f   :  { %1040 = vmatprep.subr.bf16.mxu0 %v6475_v7  ;;  %3713 = vmatprep.subr.bf16.mxu1 %v6473_v44 }
 0x182   :  { %1041 = vmatpush1.bf16.msra.mxu0 %v6476_v8  ;;  %3714 = vmatpush3.bf16.msra.mxu1 %v6477_v9 }
 0x183   :  { %1042 = vmatprep.subr.bf16.mxu0 %v6478_v10  ;;  %3715 = vmatprep.subr.bf16.mxu1 %v6473_v44 }
 0x186   :  { %1043 = vmatpush1.bf16.msra.mxu0 %v6479_v11  ;;  %3716 = vmatpush3.bf16.msra.mxu1 %v6480_v12 }
 0x187   :  { %1149 = vmatprep.subr.bf16.mxu0 %v6481_v13  ;;  %3721 = vmatprep.subr.bf16.mxu1 %v6473_v44 }
 0x209   :  { %v844_v23 = vpop.f32.mrf.mxu0  ;;  %v887_v43 = vpop.f32.mrf.mxu1 }
 0x20a   :  { %v894_v58 = vadd.f32 %v844_v23, %v563_v14 }
 0x20b   :  { %v846_v0 = vpop.f32.mrf.mxu0  ;;  %v3679_v61 = vpop.f32.mrf.mxu1 }
 0x20c   :  { %v898_v62 = vadd.f32 %v894_v58, %v5086_v22  ;;  %v895_v51 = vadd.f32 %v846_v0, %v565_v16  ;;  %v5102_v16 = vld [vmem:[%s6282_s6] ss:$0 sm:$0xff]  ;;  %v921_v61 = vadd.f32 %v5097_v17, %v5048_v5 }
 0x20d   :  { %v848_v2 = vpop.f32.mrf.mxu0  ;;  %v890_v47 = vpop.f32.mrf.mxu1  ;;  %v918_v23 = vadd.f32 %v5102_v16, %v887_v43 }
 0x20e   :  { %v902_v56 = vmul.f32 0.5, %v898_v62  ;;  %v896_v1 = vadd.f32 %v848_v2, %v567_v18  ;;  %v899_v49 = vadd.f32 %v895_v51, %v5089_v54  ;;  %v919_v2 = vadd.f32 %v5102_v16, %v890_v47 }
 0x20f   :  { %v850_v46 = vpop.f32.mrf.mxu0  ;;  %v3680_v55 = vpop.f32.mrf.mxu1 }
 0x210   :  { %4223 = vtanh.f32 %v902_v56  ;;  %v900_v52 = vadd.f32 %v896_v1, %v5086_v22  ;;  %v897_v60 = vadd.f32 %v850_v46, %v569_v21  ;;  %v903_v6 = vmul.f32 0.5, %v899_v49  ;;  %v937_v1 = vld [vmem:[#allocation2 + $0x30] sm:$0xff]  ;;  %v940_v49 = vld [vmem:[#allocation2 + $0x48] sm:$0xff] }
 0x212   :  { %v904_v59 = vmul.f32 0.5, %v900_v52  ;;  %v901_v4 = vadd.f32 %v897_v60, %v5089_v54 }
 0x214   :  { %4225 = vtanh.f32 %v904_v59  ;;  %v905_v14 = vmul.f32 0.5, %v901_v4 }
 0x215   :  { %4227 = vtanh.f32 %v903_v6 }
 0x216   :  { %4229 = vtanh.f32 %v905_v14 }
 0x21d   :  { %v4224_v15 = vpop.eup %4223 }
 0x21e   :  { %v910_v18 = vadd.f32 1.0, %v4224_v15 }
 0x220   :  { %v914_v20 = vmul.f32 0.5, %v910_v18 }
 0x221   :  { %v4226_v21 = vpop.eup %4225 }
 0x222   :  { %v922_v58 = vmul.f32 %v920_v19, %v914_v20  ;;  %v912_v0 = vadd.f32 1.0, %v4226_v21  ;;  %v4228_v55 = vpop.eup %4227  ;;  %v938_v20 = vld [vmem:[#allocation2 + $0x38] sm:$0xff] }
 0x223   :  { %v4230_v59 = vpop.eup %4229  ;;  %v911_v4 = vadd.f32 1.0, %v4228_v55 }
 0x224   :  { %v924_v62 = vadd.f32 %v922_v58, %v918_v23  ;;  %v916_v63 = vmul.f32 0.5, %v912_v0  ;;  %v913_v15 = vadd.f32 1.0, %v4230_v59  ;;  %v941_v23 = vld [vmem:[#allocation2 + $0x50] sm:$0xff] }
 0x225   :  { %v915_v19 = vmul.f32 0.5, %v911_v4 }
 0x226   :  { %4231 = vtanh.f32 %v924_v62  ;;  %v923_v56 = vmul.f32 %v921_v61, %v916_v63  ;;  %v917_v0 = vmul.f32 0.5, %v913_v15 }
 0x227   :  { %v928_v63 = vsub.f32 1.0, %v915_v19 }
 0x228   :  { %v925_v46 = vadd.f32 %v923_v56, %v919_v2  ;;  %v929_v56 = vsub.f32 1.0, %v917_v0 }
 0x229   :  { %v977_v51 = vpop.f32.mrf.mxu0  ;;  %v1020_v3 = vpop.f32.mrf.mxu1 }
 0x22a   :  { %4233 = vtanh.f32 %v925_v46  ;;  %v1112_v52 = vadd.f32 %v977_v51, %v937_v1  ;;  %v932_v51 = vmul.f32 0.0, %v915_v19  ;;  %v939_v19 = vld [vmem:[#allocation2 + $0x40] sm:$0xff] }
 0x22b   :  { %v979_v43 = vpop.f32.mrf.mxu0  ;;  %v3699_v60 = vpop.f32.mrf.mxu1 }
 0x22c   :  { %v1116_v6 = vmul.f32 0.5, %v1112_v52  ;;  %v1113_v62 = vadd.f32 %v979_v43, %v938_v20  ;;  %v933_v52 = vmul.f32 0.0, %v917_v0  ;;  %v6483_v20 = vld [vmem:[#allocation22_spill] sm:$0xff]  ;;  %v6485_v0 = vld [vmem:[#allocation24_spill] sm:$0xff] }
 0x22d   :  { %v981_v5 = vpop.f32.mrf.mxu0  ;;  %v1023_v14 = vpop.f32.mrf.mxu1 }
 0x22e   :  { %4235 = vtanh.f32 %v1116_v6  ;;  %v1114_v18 = vadd.f32 %v981_v5, %v940_v49  ;;  %v1117_v55 = vmul.f32 0.5, %v1113_v62  ;;  %v1133_v62 = vadd.f32 %v4999_v57, %v1023_v14 }
 0x22f   :  { %v3700_v47 = vpop.f32.mrf.mxu1  ;;  %v983_v58 = vpop.f32.mrf.mxu0 }
 0x230   :  { %v1118_v21 = vmul.f32 0.5, %v1114_v18  ;;  %v1115_v2 = vadd.f32 %v983_v58, %v941_v23  ;;  %v1132_v18 = vadd.f32 %v4999_v57, %v1020_v3 }
 0x232   :  { %4237 = vtanh.f32 %v1118_v21  ;;  %v1119_v59 = vmul.f32 0.5, %v1115_v2  ;;  %v6484_v21 = vld [vmem:[#allocation23_spill] sm:$0xff]  ;;  %v6486_v2 = vld [vmem:[#allocation25_spill] sm:$0xff] }
 0x233   :  { %v4232_v61 = vpop.eup %4231  ;;  %4239 = vtanh.f32 %v1117_v55 }
 0x234   :  { %v930_v1 = vmul.f32 %v4232_v61, %v928_v63  ;;  %4241 = vtanh.f32 %v1119_v59  ;;  %v942_v63 = vld [vmem:[#allocation2 + $0x58] sm:$0xff] }
 0x236   :  { %v5110_v49 = vadd.f32 %v932_v51, %v930_v1  ;;  %v6489_v51 = vld [vmem:[#allocation28_spill] sm:$0xff] }
 0x237   :  { %v4234_v46 = vpop.eup %4233 }
 0x238   :  { %v931_v60 = vmul.f32 %v4234_v46, %v929_v56  ;;  %v6487_v56 = vld [vmem:[#allocation26_spill] sm:$0xff]  ;;  %v6488_v46 = vld [vmem:[#allocation27_spill] sm:$0xff] }
 0x23a   :  { %v5112_v4 = vadd.f32 %v933_v52, %v931_v60  ;;  %v6490_v52 = vld [vmem:[#allocation29_spill] sm:$0xff]  ;;  %v6491_v60 = vld [vmem:[#allocation30_spill] sm:$0xff] }
 0x23b   :  { %v4236_v6 = vpop.eup %4235 }
 0x23c   :  { %v1124_v5 = vadd.f32 1.0, %v4236_v6  ;;  %v1027_v43 = vpack.c.bf16 %v5112_v4, %v5110_v49  ;;  %v6492_v6 = vld [vmem:[#allocation31_spill] sm:$0xff] }
 0x23e   :  { %v1128_v15 = vmul.f32 0.5, %v1124_v5  ;;  %1061 = vmatmul.mubr.bf16.vlgmr.msra.gmra.mxu0 %v1027_v43  ;;  %3718 = vmatmul.mubr.bf16.vlgmr.msra.gmra.mxu1 %v1027_v43  ;;  %v6493_v5 = vld [vmem:[#allocation32_spill] sm:$0xff] }
 0x23f   :  { %v4238_v47 = vpop.eup %4237  ;;  %1150 = vmatpush1.bf16.msra.mxu0 %v6483_v20  ;;  %3722 = vmatpush3.bf16.msra.mxu1 %v6484_v21 }
 0x240   :  { %v1134_v23 = vmul.f32 %v1132_v18, %v1128_v15  ;;  %v1126_v58 = vadd.f32 1.0, %v4238_v47  ;;  %1151 = vmatprep.subr.bf16.mxu0 %v6485_v0  ;;  %3723 = vmatprep.subr.bf16.mxu1 %v6473_v44  ;;  %v4240_v59 = vpop.eup %4239  ;;  %v6494_v18 = vld [vmem:[#allocation33_spill] sm:$0xff]  ;;  %v6495_v47 = vld [vmem:[#allocation34_spill] sm:$0xff] }
 0x241   :  { %1181 = vmatprep.mubr.bf16.mxu0 %v6474_v48  ;;  %3737 = vmatprep.mubr.msk.bf16.mxu1 %vm4671_vm0, %v6473_v44  ;;  %v4242_v14 = vpop.eup %4241  ;;  %v1125_v43 = vadd.f32 1.0, %v4240_v59  ;;  %v6498_v0 = vld [vmem:[#allocation37_spill] sm:$0xff]  ;;  %v6503_v59 = vld [vmem:[#allocation42_spill] sm:$0xff] }
 0x242   :  { %v1136_v3 = vadd.f32 %v1134_v23, %v939_v19  ;;  %v1130_v61 = vmul.f32 0.5, %v1126_v58  ;;  %v1127_v15 = vadd.f32 1.0, %v4242_v14  ;;  %v6496_v19 = vld [vmem:[#allocation35_spill] sm:$0xff]  ;;  %v6497_v23 = vld [vmem:[#allocation36_spill] sm:$0xff] }
 0x243   :  { %1152 = vmatpush1.bf16.msra.mxu0 %v6486_v2  ;;  %3724 = vmatpush3.bf16.msra.mxu1 %v6487_v56  ;;  %v1129_v20 = vmul.f32 0.5, %v1125_v43  ;;  %v5159_v43 = vld [vmem:[#allocation5 + $0xac] ss:$12 sps:$4 sm:$0xff]  }
 0x244   :  { %v1135_v1 = vmul.f32 %v1133_v62, %v1130_v61  ;;  %1153 = vmatprep.subr.bf16.mxu0 %v6488_v46  ;;  %3725 = vmatprep.subr.bf16.mxu1 %v6473_v44  ;;  %4243 = vtanh.f32 %v1136_v3  ;;  %v1131_v21 = vmul.f32 0.5, %v1127_v15  ;;  %v6499_v3 = vld [vmem:[#allocation38_spill] sm:$0xff]  ;;  %v5166_v15 = vld [vmem:[#allocation5 + $0xb0] ss:$12 sps:$4 sm:$0xff]  }
 0x245   :  { %v1140_v61 = vsub.f32 1.0, %v1129_v20 }
 0x246   :  { %v1137_v55 = vadd.f32 %v1135_v1, %v942_v63  ;;  %v1141_v62 = vsub.f32 1.0, %v1131_v21  ;;  %v6500_v63 = vld [vmem:[#allocation39_spill] sm:$0xff]  ;;  %v1145_v46 = vmul.f32 %v1131_v21, %v5005_v53  ;;  %v5186_v21 = vld [vmem:[#allocation5 + $0x78] ss:$12 sps:$4 sm:$0xff]  }
 0x247   :  { %1154 = vmatpush1.bf16.msra.mxu0 %v6489_v51  ;;  %3726 = vmatpush3.bf16.msra.mxu1 %v6490_v52  ;;  %v6502_v51 = vld [vmem:[#allocation41_spill] sm:$0xff]  ;;  %v1144_v52 = vmul.f32 %v1129_v20, %v5003_v50  ;;  %v5163_v50 = vld [vmem:[#allocation5 + $0xa8] ss:$12 sps:$4 sm:$0xff]   ;;  %6506 = vst [vmem:[#allocation16_spill] sm:$0xff] %v5186_v21 }
 0x248   :  { %4245 = vtanh.f32 %v1137_v55  ;;  %1155 = vmatprep.subr.bf16.mxu0 %v6491_v60  ;;  %3727 = vmatprep.subr.bf16.mxu1 %v6473_v44  ;;  %v6501_v55 = vld [vmem:[#allocation40_spill] sm:$0xff] }
 0x249   :  { %v5182_v20 = vld [vmem:[#allocation5 + $0x7c] ss:$12 sps:$4 sm:$0xff]  }
 0x24b   :  { %1156 = vmatpush1.bf16.msra.mxu0 %v6492_v6  ;;  %3728 = vmatpush3.bf16.msra.mxu1 %v6493_v5  ;;  %v6504_v6 = vld [vmem:[#allocation43_spill] sm:$0xff]  ;;  %v6505_v5 = vld [vmem:[#allocation44_spill] sm:$0xff] }
 0x24c   :  { %1157 = vmatprep.subr.bf16.mxu0 %v6494_v18  ;;  %3729 = vmatprep.subr.bf16.mxu1 %v6473_v44  ;;  %v5169_v18 = vld [vmem:[#allocation5 + $0x94] ss:$12 sps:$4 sm:$0xff]  }
 0x24f   :  { %1158 = vmatpush1.bf16.msra.mxu0 %v6495_v47  ;;  %3730 = vmatpush3.bf16.msra.mxu1 %v6496_v19  ;;  %v5176_v47 = vld [vmem:[#allocation5 + $0x90] ss:$12 sps:$4 sm:$0xff]   ;;  %v5179_v19 = vld [vmem:[#allocation5 + $0x98] ss:$12 sps:$4 sm:$0xff]  }
 0x250   :  { %1159 = vmatprep.subr.bf16.mxu0 %v6497_v23  ;;  %3731 = vmatprep.subr.bf16.mxu1 %v6473_v44  ;;  %v5189_v23 = vld [vmem:[#allocation5 + $0x80] ss:$12 sps:$4 sm:$0xff]  }
 0x251   :  { %v4244_v58 = vpop.eup %4243  ;;  %6507 = vst [vmem:[#allocation19_spill] sm:$0xff] %v5189_v23 }
 0x252   :  { %v1142_v56 = vmul.f32 %v4244_v58, %v1140_v61  ;;  %v5192_v58 = vld [vmem:[#allocation5 + $0x64] ss:$12 sps:$4 sm:$0xff]   ;;  %v5202_v61 = vld [vmem:[#allocation5 + $0x4c] ss:$12 sps:$4 sm:$0xff]  }
 0x253   :  { %1160 = vmatpush1.bf16.msra.mxu0 %v6498_v0  ;;  %3732 = vmatpush3.bf16.msra.mxu1 %v6499_v3  ;;  %6508 = vst [vmem:[#allocation17_spill] sm:$0xff] %v5192_v58  ;;  %v5196_v0 = vld [vmem:[#allocation5 + $0x60] ss:$12 sps:$4 sm:$0xff]   ;;  %v5199_v3 = vld [vmem:[#allocation5 + $0x68] ss:$12 sps:$4 sm:$0xff]   ;;  %6511 = vst [vmem:[#allocation21_spill] sm:$0xff] %v5202_v61 }
 0x254   :  { %1161 = vmatprep.subr.bf16.mxu0 %v6500_v63  ;;  %3733 = vmatprep.subr.bf16.mxu1 %v6473_v44  ;;  %v5153_v14 = vadd.f32 %v1144_v52, %v1142_v56  ;;  %6509 = vst [vmem:[#allocation18_spill] sm:$0xff] %v5196_v0  ;;  %6510 = vst [vmem:[#allocation20_spill] sm:$0xff] %v5199_v3  ;;  %v5209_v63 = vld [vmem:[#allocation5 + $0x50] ss:$12 sps:$4 sm:$0xff]   ;;  %v5234_v52 = vld [vmem:[#allocation5] ss:$12 sps:$4 sm:$0xff]  }
 0x255   :  { %v4246_v2 = vpop.eup %4245  ;;  %6513 = vst [vmem:[#allocation23_spill] sm:$0xff] %v5209_v63  ;;  %v5216_v56 = vld [vmem:[#allocation5 + $0x30] ss:$12 sps:$4 sm:$0xff]   ;;  %6520 = vst [vmem:[#allocation30_spill] sm:$0xff] %v5234_v52 }
 0x256   :  { %v1143_v1 = vmul.f32 %v4246_v2, %v1141_v62  ;;  %v5206_v62 = vld [vmem:[#allocation5 + $0x48] ss:$12 sps:$4 sm:$0xff]   ;;  %6515 = vst [vmem:[#allocation25_spill] sm:$0xff] %v5216_v56 }
 0x257   :  { %1162 = vmatpush1.bf16.msra.mxu0 %v6501_v55  ;;  %3734 = vmatpush3.bf16.msra.mxu1 %v6502_v51  ;;  %6512 = vst [vmem:[#allocation22_spill] sm:$0xff] %v5206_v62  ;;  %v5212_v2 = vld [vmem:[#allocation5 + $0x34] ss:$12 sps:$4 sm:$0xff]   ;;  %v5226_v55 = vld [vmem:[#allocation5 + $0x18] ss:$12 sps:$4 sm:$0xff]  }
 0x258   :  { %1163 = vmatprep.subr.bf16.mxu0 %v6503_v59  ;;  %3735 = vmatprep.subr.bf16.mxu1 %v6473_v44  ;;  %v5151_v60 = vadd.f32 %v1145_v46, %v1143_v1  ;;  %6514 = vst [vmem:[#allocation24_spill] sm:$0xff] %v5212_v2  ;;  %v5219_v1 = vld [vmem:[#allocation5 + $0x38] ss:$12 sps:$4 sm:$0xff]   ;;  %v5222_v46 = vld [vmem:[#allocation5 + $0x1c] ss:$12 sps:$4 sm:$0xff]   ;;  %6518 = vst [vmem:[#allocation28_spill] sm:$0xff] %v5226_v55 }
 0x259   :  { %6516 = vst [vmem:[#allocation26_spill] sm:$0xff] %v5219_v1  ;;  %6517 = vst [vmem:[#allocation27_spill] sm:$0xff] %v5222_v46  ;;  %v5230_v51 = vld [vmem:[#allocation5 + $0x4] ss:$12 sps:$4 sm:$0xff]  }
 0x25a   :  { %v1148_v53 = vpack.c.bf16 %v5151_v60, %v5153_v14  ;;  %6519 = vst [vmem:[#allocation29_spill] sm:$0xff] %v5230_v51 }
 0x25b   :  { %1164 = vmatpush1.bf16.msra.mxu0 %v6504_v6  ;;  %3736 = vmatpush3.bf16.msra.mxu1 %v6505_v5 }
 0x25c   :  { %1282 = vmatprep.subr.bf16.mxu0 %v5159_v43  ;;  %3741 = vmatprep.subr.bf16.mxu1 %v6473_v44 }
 0x25e   :  { %1182 = vmatmul.mubr.bf16.vlgmr.msra.gmra.mxu0 %v1148_v53  ;;  %3738 = vmatmul.mubr.bf16.vlgmr.msra.gmra.mxu1 %v1148_v53 }
 0x25f   :  { %1283 = vmatpush1.bf16.msra.mxu0 %v5163_v50  ;;  %3742 = vmatpush3.bf16.msra.mxu1 %v5166_v15 }
 0x260   :  { %1284 = vmatprep.subr.bf16.mxu0 %v5169_v18  ;;  %3743 = vmatprep.subr.bf16.mxu1 %v6473_v44 }
 0x261   :  { %1314 = vmatprep.mubr.bf16.mxu0 %v6474_v48  ;;  %3757 = vmatprep.mubr.msk.bf16.mxu1 %vm4671_vm0, %v6473_v44 }
 0x263   :  { %1285 = vmatpush1.bf16.msra.mxu0 %v5176_v47  ;;  %3744 = vmatpush3.bf16.msra.mxu1 %v5179_v19 }
 0x264   :  { %1286 = vmatprep.subr.bf16.mxu0 %v5182_v20  ;;  %3745 = vmatprep.subr.bf16.mxu1 %v6473_v44 }
 0x267   :  { %1287 = vmatpush1.bf16.msra.mxu0 %v5186_v21  ;;  %3746 = vmatpush3.bf16.msra.mxu1 %v5189_v23 }
 0x268   :  { %1288 = vmatprep.subr.bf16.mxu0 %v5192_v58  ;;  %3747 = vmatprep.subr.bf16.mxu1 %v6473_v44 }
 0x26b   :  { %1289 = vmatpush1.bf16.msra.mxu0 %v5196_v0  ;;  %3748 = vmatpush3.bf16.msra.mxu1 %v5199_v3 }
 0x26c   :  { %1290 = vmatprep.subr.bf16.mxu0 %v5202_v61  ;;  %3749 = vmatprep.subr.bf16.mxu1 %v6473_v44 }
 0x26f   :  { %1291 = vmatpush1.bf16.msra.mxu0 %v5206_v62  ;;  %3750 = vmatpush3.bf16.msra.mxu1 %v5209_v63 }
 0x270   :  { %1292 = vmatprep.subr.bf16.mxu0 %v5212_v2  ;;  %3751 = vmatprep.subr.bf16.mxu1 %v6473_v44 }
 0x273   :  { %1293 = vmatpush1.bf16.msra.mxu0 %v5216_v56  ;;  %3752 = vmatpush3.bf16.msra.mxu1 %v5219_v1 }
 0x274   :  { %1294 = vmatprep.subr.bf16.mxu0 %v5222_v46  ;;  %3753 = vmatprep.subr.bf16.mxu1 %v6473_v44 }
 0x277   :  { %1295 = vmatpush1.bf16.msra.mxu0 %v5226_v55  ;;  %3754 = vmatpush3.bf16.msra.mxu1 %v4813_v24 }
 0x278   :  { %1296 = vmatprep.subr.bf16.mxu0 %v5230_v51  ;;  %3755 = vmatprep.subr.bf16.mxu1 %v6473_v44 }
 0x27b   :  { %1297 = vmatpush1.bf16.msra.mxu0 %v5234_v52  ;;  %3756 = vmatpush3.bf16.msra.mxu1 %v4822_v27 }
 0x27c   :  { %1367 = vmatprep.subr.bf16.mxu0 %v4817_v25  ;;  %3761 = vmatprep.subr.bf16.mxu1 %v6473_v44 }
 0x27e   :  { %1315 = vmatmul.mubr.bf16.vlgmr.msra.gmra.mxu0 %v1148_v53  ;;  %3758 = vmatmul.mubr.bf16.vlgmr.msra.gmra.mxu1 %v1148_v53 }
 0x27f   :  { %1368 = vmatpush1.bf16.msra.mxu0 %v4820_v26  ;;  %3762 = vmatpush3.bf16.msra.mxu1 %v4833_v30 }
 0x280   :  { %1369 = vmatprep.subr.bf16.mxu0 %v4824_v28  ;;  %3763 = vmatprep.subr.bf16.mxu1 %v6473_v44 }
 0x281   :  { %1399 = vmatprep.mubr.bf16.mxu0 %v6474_v48  ;;  %3777 = vmatprep.mubr.msk.bf16.mxu1 %vm4671_vm0, %v6473_v44 }
 0x283   :  { %1370 = vmatpush1.bf16.msra.mxu0 %v4830_v29  ;;  %3764 = vmatpush3.bf16.msra.mxu1 %v4844_v33 }
 0x284   :  { %1371 = vmatprep.subr.bf16.mxu0 %v4835_v31  ;;  %3765 = vmatprep.subr.bf16.mxu1 %v6473_v44 }
 0x287   :  { %1372 = vmatpush1.bf16.msra.mxu0 %v4842_v32  ;;  %3766 = vmatpush3.bf16.msra.mxu1 %v4857_v36 }
 0x288   :  { %1373 = vmatprep.subr.bf16.mxu0 %v4846_v34  ;;  %3767 = vmatprep.subr.bf16.mxu1 %v6473_v44 }
 0x28b   :  { %1374 = vmatpush1.bf16.msra.mxu0 %v4853_v35  ;;  %3768 = vmatpush3.bf16.msra.mxu1 %v4870_v39 }
 0x28c   :  { %1375 = vmatprep.subr.bf16.mxu0 %v4859_v37  ;;  %3769 = vmatprep.subr.bf16.mxu1 %v6473_v44 }
 0x28f   :  { %1376 = vmatpush1.bf16.msra.mxu0 %v4866_v38  ;;  %3770 = vmatpush3.bf16.msra.mxu1 %v4880_v42 }
 0x290   :  { %1377 = vmatprep.subr.bf16.mxu0 %v4876_v40  ;;  %3771 = vmatprep.subr.bf16.mxu1 %v6473_v44 }
 0x293   :  { %1378 = vmatpush1.bf16.msra.mxu0 %v4878_v41  ;;  %3772 = vmatpush3.bf16.msra.mxu1 %v4890_v45 }
 0x294   :  { %1379 = vmatprep.subr.bf16.mxu0 %v6475_v7  ;;  %3773 = vmatprep.subr.bf16.mxu1 %v6473_v44 }
 0x297   :  { %1380 = vmatpush1.bf16.msra.mxu0 %v6476_v8  ;;  %3774 = vmatpush3.bf16.msra.mxu1 %v6477_v9 }
 0x298   :  { %1381 = vmatprep.subr.bf16.mxu0 %v6478_v10  ;;  %3775 = vmatprep.subr.bf16.mxu1 %v6473_v44 }
 0x29b   :  { %1382 = vmatpush1.bf16.msra.mxu0 %v6479_v11  ;;  %3776 = vmatpush3.bf16.msra.mxu1 %v6480_v12 }
 0x29c   :  { %1488 = vmatprep.subr.bf16.mxu0 %v6481_v13  ;;  %3781 = vmatprep.subr.bf16.mxu1 %v6473_v44 }
 0x2fe   :  { %v1105_v24 = vpop.f32.mrf.mxu1  ;;  %v1062_v28 = vpop.f32.mrf.mxu0 }
 0x2ff   :  { %v1259_v53 = vadd.f32 %v5097_v17, %v1105_v24 }
 0x300   :  { %v3719_v25 = vpop.f32.mrf.mxu1  ;;  %v1064_v29 = vpop.f32.mrf.mxu0 }
 0x302   :  { %v1108_v26 = vpop.f32.mrf.mxu1  ;;  %v1066_v30 = vpop.f32.mrf.mxu0 }
 0x304   :  { %v3720_v27 = vpop.f32.mrf.mxu1  ;;  %v1068_v31 = vpop.f32.mrf.mxu0 }
 0x31e   :  { %v1183_v32 = vpop.f32.mrf.mxu0  ;;  %v1226_v33 = vpop.f32.mrf.mxu1 }
 0x31f   :  { %v1233_v34 = vadd.f32 %v1183_v32, %v1062_v28  ;;  %v1257_v28 = vadd.f32 %v5102_v16, %v1226_v33 }
 0x320   :  { %v1185_v35 = vpop.f32.mrf.mxu0  ;;  %v3739_v36 = vpop.f32.mrf.mxu1 }
 0x321   :  { %v1237_v37 = vadd.f32 %v1233_v34, %v5086_v22  ;;  %v1234_v7 = vadd.f32 %v1185_v35, %v1064_v29 }
 0x322   :  { %v1187_v38 = vpop.f32.mrf.mxu0  ;;  %v1229_v39 = vpop.f32.mrf.mxu1 }
 0x323   :  { %v1241_v40 = vmul.f32 0.5, %v1237_v37  ;;  %v1235_v41 = vadd.f32 %v1187_v38, %v1066_v30  ;;  %v1238_v11 = vadd.f32 %v1234_v7, %v5089_v54  ;;  %v1258_v35 = vadd.f32 %v5102_v16, %v1229_v39  ;;  %v1276_v37 = vld [vmem:[#allocation2 + $0x60] sm:$0xff]  ;;  %v1277_v39 = vld [vmem:[#allocation2 + $0x68] sm:$0xff] }
 0x324   :  { %v1189_v42 = vpop.f32.mrf.mxu0  ;;  %v3740_v45 = vpop.f32.mrf.mxu1 }
 0x325   :  { %4247 = vtanh.f32 %v1241_v40  ;;  %v1239_v8 = vadd.f32 %v1235_v41, %v5086_v22  ;;  %v1236_v10 = vadd.f32 %v1189_v42, %v1068_v31  ;;  %v1242_v13 = vmul.f32 0.5, %v1238_v11 }
 0x326   :  { %v1260_v31 = vadd.f32 %v5097_v17, %v1108_v26 }
 0x327   :  { %v1243_v9 = vmul.f32 0.5, %v1239_v8  ;;  %v1240_v12 = vadd.f32 %v1236_v10, %v5089_v54  ;;  %v1279_v8 = vld [vmem:[#allocation2 + $0x78] sm:$0xff] }
 0x329   :  { %4249 = vtanh.f32 %v1243_v9  ;;  %v1244_v59 = vmul.f32 0.5, %v1240_v12 }
 0x32a   :  { %4251 = vtanh.f32 %v1242_v13 }
 0x32b   :  { %4253 = vtanh.f32 %v1244_v59 }
 0x332   :  { %v4248_v6 = vpop.eup %4247 }
 0x333   :  { %v1249_v5 = vadd.f32 1.0, %v4248_v6 }
 0x335   :  { %v1253_v25 = vmul.f32 0.5, %v1249_v5 }
 0x336   :  { %v4250_v27 = vpop.eup %4249 }
 0x337   :  { %v1261_v29 = vmul.f32 %v1259_v53, %v1253_v25  ;;  %v1251_v30 = vadd.f32 1.0, %v4250_v27  ;;  %v4252_v40 = vpop.eup %4251  ;;  %v1280_v53 = vld [vmem:[#allocation2 + $0x80] sm:$0xff] }
 0x338   :  { %v4254_v45 = vpop.eup %4253  ;;  %v1250_v9 = vadd.f32 1.0, %v4252_v40 }
 0x339   :  { %v1263_v32 = vadd.f32 %v1261_v29, %v1257_v28  ;;  %v1255_v34 = vmul.f32 0.5, %v1251_v30  ;;  %v1252_v12 = vadd.f32 1.0, %v4254_v45 }
 0x33a   :  { %v1254_v6 = vmul.f32 0.5, %v1250_v9 }
 0x33b   :  { %4255 = vtanh.f32 %v1263_v32  ;;  %v1262_v36 = vmul.f32 %v1260_v31, %v1255_v34  ;;  %v1256_v27 = vmul.f32 0.5, %v1252_v12  ;;  %v5295_v12 = vld [vmem:[#allocation7 + $0xb0] ss:$12 sps:$4 sm:$0xff]  }
 0x33c   :  { %v1267_v30 = vsub.f32 1.0, %v1254_v6 }
 0x33d   :  { %v1264_v38 = vadd.f32 %v1262_v36, %v1258_v35  ;;  %v1268_v32 = vsub.f32 1.0, %v1256_v27 }
 0x33e   :  { %v1316_v41 = vpop.f32.mrf.mxu0  ;;  %v1359_v42 = vpop.f32.mrf.mxu1 }
 0x33f   :  { %4257 = vtanh.f32 %v1264_v38  ;;  %v1451_v24 = vadd.f32 %v1316_v41, %v1276_v37  ;;  %v1271_v37 = vmul.f32 %v1254_v6, %v5110_v49  ;;  %v1272_v38 = vmul.f32 %v1256_v27, %v5112_v4  ;;  %v1278_v4 = vld [vmem:[#allocation2 + $0x70] sm:$0xff]  ;;  %v5309_v27 = vld [vmem:[#allocation7 + $0x98] ss:$12 sps:$4 sm:$0xff]  }
 0x340   :  { %v1318_v7 = vpop.f32.mrf.mxu0  ;;  %v3759_v33 = vpop.f32.mrf.mxu1 }
 0x341   :  { %v1455_v10 = vmul.f32 0.5, %v1451_v24  ;;  %v1452_v28 = vadd.f32 %v1318_v7, %v1277_v39 }
 0x342   :  { %v1320_v26 = vpop.f32.mrf.mxu0  ;;  %v1362_v11 = vpop.f32.mrf.mxu1 }
 0x343   :  { %4259 = vtanh.f32 %v1455_v10  ;;  %v1453_v13 = vadd.f32 %v1320_v26, %v1279_v8  ;;  %v1456_v34 = vmul.f32 0.5, %v1452_v28  ;;  %v1471_v10 = vadd.f32 %v4999_v57, %v1359_v42  ;;  %v5292_v26 = vld [vmem:[#allocation7 + $0xa8] ss:$12 sps:$4 sm:$0xff]  }
 0x344   :  { %v3760_v59 = vpop.f32.mrf.mxu1  ;;  %v1322_v25 = vpop.f32.mrf.mxu0 }
 0x345   :  { %v1457_v5 = vmul.f32 0.5, %v1453_v13  ;;  %v1454_v31 = vadd.f32 %v1322_v25, %v1280_v53  ;;  %v5298_v59 = vld [vmem:[#allocation7 + $0x94] ss:$12 sps:$4 sm:$0xff]   ;;  %v1281_v53 = vld [vmem:[#allocation2 + $0x88] sm:$0xff]  ;;  %v5306_v25 = vld [vmem:[#allocation7 + $0x90] ss:$12 sps:$4 sm:$0xff]  }
 0x347   :  { %4261 = vtanh.f32 %v1457_v5  ;;  %v1458_v40 = vmul.f32 0.5, %v1454_v31  ;;  %v1472_v5 = vadd.f32 %v4999_v57, %v1362_v11  ;;  %v5316_v57 = vld [vmem:[#allocation7 + $0x78] ss:$12 sps:$4 sm:$0xff]   ;;  %v5319_v11 = vld [vmem:[#allocation7 + $0x80] ss:$12 sps:$4 sm:$0xff]  }
 0x348   :  { %v4256_v29 = vpop.eup %4255  ;;  %4263 = vtanh.f32 %v1456_v34 }
 0x349   :  { %v1269_v35 = vmul.f32 %v4256_v29, %v1267_v30  ;;  %4265 = vtanh.f32 %v1458_v40  ;;  %v5312_v29 = vld [vmem:[#allocation7 + $0x7c] ss:$12 sps:$4 sm:$0xff]   ;;  %v5332_v40 = vld [vmem:[#allocation7 + $0x4c] ss:$12 sps:$4 sm:$0xff]  }
 0x34b   :  { %v5285_v24 = vadd.f32 %v1271_v37, %v1269_v35  ;;  %v5329_v37 = vld [vmem:[#allocation7 + $0x68] ss:$12 sps:$4 sm:$0xff]  }
 0x34c   :  { %v4258_v36 = vpop.eup %4257 }
 0x34d   :  { %v1270_v41 = vmul.f32 %v4258_v36, %v1268_v32  ;;  %v5322_v32 = vld [vmem:[#allocation7 + $0x64] ss:$12 sps:$4 sm:$0xff]   ;;  %v5326_v36 = vld [vmem:[#allocation7 + $0x60] ss:$12 sps:$4 sm:$0xff]  }
 0x34f   :  { %v5287_v45 = vadd.f32 %v1272_v38, %v1270_v41 }
 0x350   :  { %v4260_v7 = vpop.eup %4259 }
 0x351   :  { %v1463_v33 = vadd.f32 1.0, %v4260_v7  ;;  %v1366_v8 = vpack.c.bf16 %v5287_v45, %v5285_v24  ;;  %v5336_v7 = vld [vmem:[#allocation7 + $0x48] ss:$12 sps:$4 sm:$0xff]  }
 0x353   :  { %v1467_v9 = vmul.f32 0.5, %v1463_v33  ;;  %1400 = vmatmul.mubr.bf16.vlgmr.msra.gmra.mxu0 %v1366_v8  ;;  %3778 = vmatmul.mubr.bf16.vlgmr.msra.gmra.mxu1 %v1366_v8  ;;  %v5339_v33 = vld [vmem:[#allocation7 + $0x50] ss:$12 sps:$4 sm:$0xff]  }
 0x354   :  { %v4262_v49 = vpop.eup %4261  ;;  %1489 = vmatpush1.bf16.msra.mxu0 %v5292_v26  ;;  %3782 = vmatpush3.bf16.msra.mxu1 %v5295_v12 }
 0x355   :  { %v1473_v13 = vmul.f32 %v1471_v10, %v1467_v9  ;;  %v1465_v39 = vadd.f32 1.0, %v4262_v49  ;;  %1490 = vmatprep.subr.bf16.mxu0 %v5298_v59  ;;  %3783 = vmatprep.subr.bf16.mxu1 %v6473_v44  ;;  %v4264_v31 = vpop.eup %4263  ;;  %v5342_v9 = vld [vmem:[#allocation7 + $0x34] ss:$12 sps:$4 sm:$0xff]  }
 0x356   :  { %1520 = vmatprep.mubr.bf16.mxu0 %v6474_v48  ;;  %3797 = vmatprep.mubr.msk.bf16.mxu1 %vm4671_vm0, %v6473_v44  ;;  %v4266_v34 = vpop.eup %4265  ;;  %v1464_v35 = vadd.f32 1.0, %v4264_v31  ;;  %v5358_v31 = vld [vmem:[#allocation7 + $0x18] ss:$12 sps:$4 sm:$0xff]  }
 0x357   :  { %v1475_v42 = vadd.f32 %v1473_v13, %v1278_v4  ;;  %v1469_v6 = vmul.f32 0.5, %v1465_v39  ;;  %v1466_v38 = vadd.f32 1.0, %v4266_v34  ;;  %v5346_v4 = vld [vmem:[#allocation7 + $0x30] ss:$12 sps:$4 sm:$0xff]   ;;  %v5349_v13 = vld [vmem:[#allocation7 + $0x38] ss:$12 sps:$4 sm:$0xff]  }
 0x358   :  { %1491 = vmatpush1.bf16.msra.mxu0 %v5306_v25  ;;  %3784 = vmatpush3.bf16.msra.mxu1 %v5309_v27  ;;  %v1468_v41 = vmul.f32 0.5, %v1464_v35  ;;  %v5361_v34 = vld [vmem:[#allocation7 + $0x20] ss:$12 sps:$4 sm:$0xff]   ;;  %v5364_v35 = vld [vmem:[#allocation7 + $0x4] ss:$12 sps:$4 sm:$0xff]  }
 0x359   :  { %4267 = vtanh.f32 %v1475_v42  ;;  %v1474_v28 = vmul.f32 %v1472_v5, %v1469_v6  ;;  %1492 = vmatprep.subr.bf16.mxu0 %v5312_v29  ;;  %3785 = vmatprep.subr.bf16.mxu1 %v6473_v44  ;;  %v1470_v8 = vmul.f32 0.5, %v1466_v38  ;;  %v5352_v6 = vld [vmem:[#allocation7 + $0x1c] ss:$12 sps:$4 sm:$0xff]  }
 0x35a   :  { %v1479_v49 = vsub.f32 1.0, %v1468_v41 }
 0x35b   :  { %v1476_v30 = vadd.f32 %v1474_v28, %v1281_v53  ;;  %v1480_v42 = vsub.f32 1.0, %v1470_v8  ;;  %v1483_v53 = vmul.f32 %v1468_v41, %v5153_v14  ;;  %v5374_v41 = vld [vmem:[#allocation7] ss:$12 sps:$4 sm:$0xff]  }
 0x35c   :  { %1493 = vmatpush1.bf16.msra.mxu0 %v5316_v57  ;;  %3786 = vmatpush3.bf16.msra.mxu1 %v5319_v11 }
 0x35d   :  { %4269 = vtanh.f32 %v1476_v30  ;;  %1494 = vmatprep.subr.bf16.mxu0 %v5322_v32  ;;  %3787 = vmatprep.subr.bf16.mxu1 %v6473_v44  ;;  %v1484_v30 = vmul.f32 %v1470_v8, %v5151_v60  ;;  %v5377_v8 = vld [vmem:[#allocation7 + $0x8] ss:$12 sps:$4 sm:$0xff]  }
 0x360   :  { %1495 = vmatpush1.bf16.msra.mxu0 %v5326_v36  ;;  %3788 = vmatpush3.bf16.msra.mxu1 %v5329_v37 }
 0x361   :  { %1496 = vmatprep.subr.bf16.mxu0 %v5332_v40  ;;  %3789 = vmatprep.subr.bf16.mxu1 %v6473_v44 }
 0x364   :  { %1497 = vmatpush1.bf16.msra.mxu0 %v5336_v7  ;;  %3790 = vmatpush3.bf16.msra.mxu1 %v5339_v33 }
 0x365   :  { %1498 = vmatprep.subr.bf16.mxu0 %v5342_v9  ;;  %3791 = vmatprep.subr.bf16.mxu1 %v6473_v44 }
 0x366   :  { %v4268_v10 = vpop.eup %4267 }
 0x367   :  { %v1481_v39 = vmul.f32 %v4268_v10, %v1479_v49  ;;  %v5410_v10 = vld [vmem:[#allocation5 + $0x20] ss:$12 sps:$4 sm:$0xff]   ;;  %v5416_v49 = vld [vmem:[#allocation5 + $0x8] ss:$12 sps:$4 sm:$0xff]  }
 0x368   :  { %1499 = vmatpush1.bf16.msra.mxu0 %v5346_v4  ;;  %3792 = vmatpush3.bf16.msra.mxu1 %v5349_v13  ;;  %6521 = vst [vmem:[#allocation31_spill] sm:$0xff] %v5410_v10  ;;  %6522 = vst [vmem:[#allocation32_spill] sm:$0xff] %v5416_v49 }
 0x369   :  { %1500 = vmatprep.subr.bf16.mxu0 %v5352_v6  ;;  %3793 = vmatprep.subr.bf16.mxu1 %v6473_v44  ;;  %v5368_v38 = vadd.f32 %v1483_v53, %v1481_v39  ;;  %v5419_v39 = vld [vmem:[#allocation8 + $0xac] ss:$12 sps:$4 sm:$0xff]   ;;  %v5429_v53 = vld [vmem:[#allocation8 + $0x94] ss:$12 sps:$4 sm:$0xff]  }
 0x36a   :  { %v4270_v5 = vpop.eup %4269  ;;  %6523 = vst [vmem:[#allocation33_spill] sm:$0xff] %v5419_v39  ;;  %6526 = vst [vmem:[#allocation36_spill] sm:$0xff] %v5429_v53 }
 0x36b   :  { %v1482_v28 = vmul.f32 %v4270_v5, %v1480_v42  ;;  %v5423_v42 = vld [vmem:[#allocation8 + $0xa8] ss:$12 sps:$4 sm:$0xff]   ;;  %v5426_v5 = vld [vmem:[#allocation8 + $0xb0] ss:$12 sps:$4 sm:$0xff]  }
 0x36c   :  { %1501 = vmatpush1.bf16.msra.mxu0 %v5358_v31  ;;  %3794 = vmatpush3.bf16.msra.mxu1 %v5361_v34  ;;  %6524 = vst [vmem:[#allocation34_spill] sm:$0xff] %v5423_v42  ;;  %6525 = vst [vmem:[#allocation35_spill] sm:$0xff] %v5426_v5 }
 0x36d   :  { %1502 = vmatprep.subr.bf16.mxu0 %v5364_v35  ;;  %3795 = vmatprep.subr.bf16.mxu1 %v6473_v44  ;;  %v5370_v14 = vadd.f32 %v1484_v30, %v1482_v28  ;;  %v5436_v28 = vld [vmem:[#allocation8 + $0x90] ss:$12 sps:$4 sm:$0xff]   ;;  %v5439_v30 = vld [vmem:[#allocation8 + $0x98] ss:$12 sps:$4 sm:$0xff]  }
 0x36e   :  { %6527 = vst [vmem:[#allocation37_spill] sm:$0xff] %v5436_v28  ;;  %6528 = vst [vmem:[#allocation38_spill] sm:$0xff] %v5439_v30 }
 0x36f   :  { %v1487_v60 = vpack.c.bf16 %v5370_v14, %v5368_v38 }
 0x370   :  { %1503 = vmatpush1.bf16.msra.mxu0 %v5374_v41  ;;  %3796 = vmatpush3.bf16.msra.mxu1 %v5377_v8 }
 0x371   :  { %1621 = vmatprep.subr.bf16.mxu0 %v5159_v43  ;;  %3801 = vmatprep.subr.bf16.mxu1 %v6473_v44 }
 0x373   :  { %1521 = vmatmul.mubr.bf16.vlgmr.msra.gmra.mxu0 %v1487_v60  ;;  %3798 = vmatmul.mubr.bf16.vlgmr.msra.gmra.mxu1 %v1487_v60 }
 0x374   :  { %1622 = vmatpush1.bf16.msra.mxu0 %v5163_v50  ;;  %3802 = vmatpush3.bf16.msra.mxu1 %v5166_v15 }
 0x375   :  { %1623 = vmatprep.subr.bf16.mxu0 %v5169_v18  ;;  %3803 = vmatprep.subr.bf16.mxu1 %v6473_v44 }
 0x376   :  { %1653 = vmatprep.mubr.bf16.mxu0 %v6474_v48  ;;  %3817 = vmatprep.mubr.msk.bf16.mxu1 %vm4671_vm0, %v6473_v44 }
 0x378   :  { %1624 = vmatpush1.bf16.msra.mxu0 %v5176_v47  ;;  %3804 = vmatpush3.bf16.msra.mxu1 %v5179_v19 }
 0x379   :  { %1625 = vmatprep.subr.bf16.mxu0 %v5182_v20  ;;  %3805 = vmatprep.subr.bf16.mxu1 %v6473_v44 }
 0x37c   :  { %1626 = vmatpush1.bf16.msra.mxu0 %v5186_v21  ;;  %3806 = vmatpush3.bf16.msra.mxu1 %v5189_v23 }
 0x37d   :  { %1627 = vmatprep.subr.bf16.mxu0 %v5192_v58  ;;  %3807 = vmatprep.subr.bf16.mxu1 %v6473_v44 }
 0x380   :  { %1628 = vmatpush1.bf16.msra.mxu0 %v5196_v0  ;;  %3808 = vmatpush3.bf16.msra.mxu1 %v5199_v3 }
 0x381   :  { %1629 = vmatprep.subr.bf16.mxu0 %v5202_v61  ;;  %3809 = vmatprep.subr.bf16.mxu1 %v6473_v44 }
 0x384   :  { %1630 = vmatpush1.bf16.msra.mxu0 %v5206_v62  ;;  %3810 = vmatpush3.bf16.msra.mxu1 %v5209_v63 }
 0x385   :  { %1631 = vmatprep.subr.bf16.mxu0 %v5212_v2  ;;  %3811 = vmatprep.subr.bf16.mxu1 %v6473_v44 }
 0x388   :  { %1632 = vmatpush1.bf16.msra.mxu0 %v5216_v56  ;;  %3812 = vmatpush3.bf16.msra.mxu1 %v5219_v1 }
 0x389   :  { %1633 = vmatprep.subr.bf16.mxu0 %v5222_v46  ;;  %3813 = vmatprep.subr.bf16.mxu1 %v6473_v44 }
 0x38c   :  { %1634 = vmatpush1.bf16.msra.mxu0 %v5226_v55  ;;  %3814 = vmatpush3.bf16.msra.mxu1 %v5410_v10 }
 0x38d   :  { %1635 = vmatprep.subr.bf16.mxu0 %v5230_v51  ;;  %3815 = vmatprep.subr.bf16.mxu1 %v6473_v44 }
 0x390   :  { %1636 = vmatpush1.bf16.msra.mxu0 %v5234_v52  ;;  %3816 = vmatpush3.bf16.msra.mxu1 %v5416_v49 }
 0x391   :  { %1706 = vmatprep.subr.bf16.mxu0 %v5419_v39  ;;  %3821 = vmatprep.subr.bf16.mxu1 %v6473_v44 }
 0x393   :  { %1654 = vmatmul.mubr.bf16.vlgmr.msra.gmra.mxu0 %v1487_v60  ;;  %3818 = vmatmul.mubr.bf16.vlgmr.msra.gmra.mxu1 %v1487_v60  ;;  %v5442_v60 = vld [vmem:[#allocation8 + $0x7c] ss:$12 sps:$4 sm:$0xff]  }
 0x394   :  { %1707 = vmatpush1.bf16.msra.mxu0 %v5423_v42  ;;  %3822 = vmatpush3.bf16.msra.mxu1 %v5426_v5  ;;  %6529 = vst [vmem:[#allocation39_spill] sm:$0xff] %v5442_v60  ;;  %v5449_v5 = vld [vmem:[#allocation8 + $0x80] ss:$12 sps:$4 sm:$0xff]   ;;  %v5452_v42 = vld [vmem:[#allocation8 + $0x64] ss:$12 sps:$4 sm:$0xff]  }
 0x395   :  { %1708 = vmatprep.subr.bf16.mxu0 %v5429_v53  ;;  %3823 = vmatprep.subr.bf16.mxu1 %v6473_v44  ;;  %v5446_v53 = vld [vmem:[#allocation8 + $0x78] ss:$12 sps:$4 sm:$0xff]   ;;  %6531 = vst [vmem:[#allocation41_spill] sm:$0xff] %v5449_v5  ;;  %6532 = vst [vmem:[#allocation42_spill] sm:$0xff] %v5452_v42 }
 0x396   :  { %1738 = vmatprep.mubr.bf16.mxu0 %v6474_v48  ;;  %3837 = vmatprep.mubr.msk.bf16.mxu1 %vm4671_vm0, %v6473_v44  ;;  %6530 = vst [vmem:[#allocation40_spill] sm:$0xff] %v5446_v53 }
 0x398   :  { %1709 = vmatpush1.bf16.msra.mxu0 %v5436_v28  ;;  %3824 = vmatpush3.bf16.msra.mxu1 %v5439_v30  ;;  %v5456_v30 = vld [vmem:[#allocation8 + $0x60] ss:$12 sps:$4 sm:$0xff]  }
 0x399   :  { %1710 = vmatprep.subr.bf16.mxu0 %v5442_v60  ;;  %3825 = vmatprep.subr.bf16.mxu1 %v6473_v44  ;;  %6533 = vst [vmem:[#allocation43_spill] sm:$0xff] %v5456_v30  ;;  %v5459_v60 = vld [vmem:[#allocation8 + $0x68] ss:$12 sps:$4 sm:$0xff]   ;;  %v5462_v28 = vld [vmem:[#allocation8 + $0x4c] ss:$12 sps:$4 sm:$0xff]  }
 0x39a   :  { %6534 = vst [vmem:[#allocation44_spill] sm:$0xff] %v5459_v60  ;;  %6535 = vst [vmem:[#allocation45_spill] sm:$0xff] %v5462_v28 }
 0x39c   :  { %1711 = vmatpush1.bf16.msra.mxu0 %v5446_v53  ;;  %3826 = vmatpush3.bf16.msra.mxu1 %v5449_v5  ;;  %v5466_v5 = vld [vmem:[#allocation8 + $0x48] ss:$12 sps:$4 sm:$0xff]  }
 0x39d   :  { %1712 = vmatprep.subr.bf16.mxu0 %v5452_v42  ;;  %3827 = vmatprep.subr.bf16.mxu1 %v6473_v44  ;;  %6536 = vst [vmem:[#allocation46_spill] sm:$0xff] %v5466_v5  ;;  %v5469_v42 = vld [vmem:[#allocation8 + $0x50] ss:$12 sps:$4 sm:$0xff]   ;;  %v5472_v53 = vld [vmem:[#allocation8 + $0x34] ss:$12 sps:$4 sm:$0xff]  }
 0x39e   :  { %6537 = vst [vmem:[#allocation47_spill] sm:$0xff] %v5469_v42  ;;  %6538 = vst [vmem:[#allocation48_spill] sm:$0xff] %v5472_v53 }
 0x3a0   :  { %1713 = vmatpush1.bf16.msra.mxu0 %v5456_v30  ;;  %3828 = vmatpush3.bf16.msra.mxu1 %v5459_v60  ;;  %v5476_v60 = vld [vmem:[#allocation8 + $0x30] ss:$12 sps:$4 sm:$0xff]  }
 0x3a1   :  { %1714 = vmatprep.subr.bf16.mxu0 %v5462_v28  ;;  %3829 = vmatprep.subr.bf16.mxu1 %v6473_v44  ;;  %6539 = vst [vmem:[#allocation49_spill] sm:$0xff] %v5476_v60  ;;  %v5479_v28 = vld [vmem:[#allocation8 + $0x38] ss:$12 sps:$4 sm:$0xff]   ;;  %v5482_v30 = vld [vmem:[#allocation8 + $0x1c] ss:$12 sps:$4 sm:$0xff]  }
 0x3a2   :  { %6540 = vst [vmem:[#allocation50_spill] sm:$0xff] %v5479_v28  ;;  %6541 = vst [vmem:[#allocation51_spill] sm:$0xff] %v5482_v30 }
 0x3a4   :  { %1715 = vmatpush1.bf16.msra.mxu0 %v5466_v5  ;;  %3830 = vmatpush3.bf16.msra.mxu1 %v5469_v42  ;;  %v5486_v42 = vld [vmem:[#allocation8 + $0x18] ss:$12 sps:$4 sm:$0xff]  }
 0x3a5   :  { %1716 = vmatprep.subr.bf16.mxu0 %v5472_v53  ;;  %3831 = vmatprep.subr.bf16.mxu1 %v6473_v44  ;;  %6542 = vst [vmem:[#allocation52_spill] sm:$0xff] %v5486_v42  ;;  %v5489_v53 = vld [vmem:[#allocation8 + $0x20] ss:$12 sps:$4 sm:$0xff]   ;;  %v5492_v5 = vld [vmem:[#allocation8 + $0x4] ss:$12 sps:$4 sm:$0xff]  }
 0x3a6   :  { %6543 = vst [vmem:[#allocation53_spill] sm:$0xff] %v5489_v53  ;;  %6544 = vst [vmem:[#allocation54_spill] sm:$0xff] %v5492_v5 }
 0x3a8   :  { %1717 = vmatpush1.bf16.msra.mxu0 %v5476_v60  ;;  %3832 = vmatpush3.bf16.msra.mxu1 %v5479_v28  ;;  %v5496_v28 = vld [vmem:[#allocation8] ss:$12 sps:$4 sm:$0xff]  }
 0x3a9   :  { %1718 = vmatprep.subr.bf16.mxu0 %v5482_v30  ;;  %3833 = vmatprep.subr.bf16.mxu1 %v6473_v44  ;;  %6545 = vst [vmem:[#allocation55_spill] sm:$0xff] %v5496_v28  ;;  %v5499_v30 = vld [vmem:[#allocation8 + $0x8] ss:$12 sps:$4 sm:$0xff]   ;;  %v5502_v60 = vld [vmem:[#allocation7 + $0xac] ss:$12 sps:$4 sm:$0xff]  }
 0x3aa   :  { %6546 = vst [vmem:[#allocation56_spill] sm:$0xff] %v5499_v30  ;;  %6547 = vst [vmem:[#allocation57_spill] sm:$0xff] %v5502_v60 }
 0x3ac   :  { %1719 = vmatpush1.bf16.msra.mxu0 %v5486_v42  ;;  %3834 = vmatpush3.bf16.msra.mxu1 %v5489_v53 }
 0x3ad   :  { %1720 = vmatprep.subr.bf16.mxu0 %v5492_v5  ;;  %3835 = vmatprep.subr.bf16.mxu1 %v6473_v44 }
 0x3b0   :  { %1721 = vmatpush1.bf16.msra.mxu0 %v5496_v28  ;;  %3836 = vmatpush3.bf16.msra.mxu1 %v5499_v30 }
 0x3b1   :  { %1827 = vmatprep.subr.bf16.mxu0 %v5502_v60  ;;  %3841 = vmatprep.subr.bf16.mxu1 %v6473_v44 }
 0x413   :  { %v1444_v53 = vpop.f32.mrf.mxu1  ;;  %v1401_v49 = vpop.f32.mrf.mxu0 }
 0x415   :  { %v3779_v42 = vpop.f32.mrf.mxu1  ;;  %v1403_v52 = vpop.f32.mrf.mxu0 }
 0x417   :  { %v1447_v39 = vpop.f32.mrf.mxu1  ;;  %v1405_v51 = vpop.f32.mrf.mxu0 }
 0x419   :  { %v3780_v5 = vpop.f32.mrf.mxu1  ;;  %v1407_v10 = vpop.f32.mrf.mxu0 }
 0x433   :  { %v1522_v55 = vpop.f32.mrf.mxu0  ;;  %v1565_v28 = vpop.f32.mrf.mxu1 }
 0x434   :  { %v1572_v46 = vadd.f32 %v1522_v55, %v1401_v49 }
 0x435   :  { %v1524_v1 = vpop.f32.mrf.mxu0  ;;  %v3799_v56 = vpop.f32.mrf.mxu1 }
 0x436   :  { %v1576_v30 = vadd.f32 %v1572_v46, %v5086_v22  ;;  %v1573_v42 = vadd.f32 %v1524_v1, %v1403_v52  ;;  %v1596_v1 = vadd.f32 %v5102_v16, %v1565_v28 }
 0x437   :  { %v1526_v2 = vpop.f32.mrf.mxu0  ;;  %v1568_v63 = vpop.f32.mrf.mxu1 }
 0x438   :  { %v1580_v60 = vmul.f32 0.5, %v1576_v30  ;;  %v1574_v62 = vadd.f32 %v1526_v2, %v1405_v51  ;;  %v1577_v23 = vadd.f32 %v1573_v42, %v5089_v54  ;;  %v1598_v2 = vadd.f32 %v5097_v17, %v1444_v53  ;;  %v1615_v30 = vld [vmem:[#allocation2 + $0x90] sm:$0xff] }
 0x439   :  { %v1528_v61 = vpop.f32.mrf.mxu0  ;;  %v3800_v3 = vpop.f32.mrf.mxu1 }
 0x43a   :  { %4271 = vtanh.f32 %v1580_v60  ;;  %v1578_v5 = vadd.f32 %v1574_v62, %v5086_v22  ;;  %v1575_v58 = vadd.f32 %v1528_v61, %v1407_v10  ;;  %v1581_v56 = vmul.f32 0.5, %v1577_v23 }
 0x43b   :  { %v1599_v61 = vadd.f32 %v5097_v17, %v1447_v39  ;;  %v1597_v23 = vadd.f32 %v5102_v16, %v1568_v63  ;;  %v1616_v16 = vld [vmem:[#allocation2 + $0x98] sm:$0xff] }
 0x43c   :  { %v1582_v0 = vmul.f32 0.5, %v1578_v5  ;;  %v1579_v55 = vadd.f32 %v1575_v58, %v5089_v54 }
 0x43e   :  { %4273 = vtanh.f32 %v1582_v0  ;;  %v1583_v49 = vmul.f32 0.5, %v1579_v55 }
 0x43f   :  { %4275 = vtanh.f32 %v1581_v56 }
 0x440   :  { %4277 = vtanh.f32 %v1583_v49  ;;  %v1618_v49 = vld [vmem:[#allocation2 + $0xa8] sm:$0xff] }
 0x447   :  { %v4272_v46 = vpop.eup %4271 }
 0x448   :  { %v1588_v21 = vadd.f32 1.0, %v4272_v46 }
 0x44a   :  { %v1592_v3 = vmul.f32 0.5, %v1588_v21 }
 0x44b   :  { %v4274_v51 = vpop.eup %4273 }
 0x44c   :  { %v1600_v62 = vmul.f32 %v1598_v2, %v1592_v3  ;;  %v1590_v52 = vadd.f32 1.0, %v4274_v51  ;;  %v4276_v42 = vpop.eup %4275 }
 0x44d   :  { %v4278_v53 = vpop.eup %4277  ;;  %v1589_v46 = vadd.f32 1.0, %v4276_v42 }
 0x44e   :  { %v1602_v10 = vadd.f32 %v1600_v62, %v1596_v1  ;;  %v1594_v0 = vmul.f32 0.5, %v1590_v52  ;;  %v1591_v3 = vadd.f32 1.0, %v4278_v53  ;;  %v1619_v52 = vld [vmem:[#allocation2 + $0xb0] sm:$0xff] }
 0x44f   :  { %v1593_v1 = vmul.f32 0.5, %v1589_v46 }
 0x450   :  { %4279 = vtanh.f32 %v1602_v10  ;;  %v1601_v58 = vmul.f32 %v1599_v61, %v1594_v0  ;;  %v1595_v10 = vmul.f32 0.5, %v1591_v3 }
 0x451   :  { %v1610_v53 = vmul.f32 %v1593_v1, %v5285_v24  ;;  %v5525_v24 = vld [vmem:[%s6277_s1] ss:$0 sm:$0xff] }
 0x452   :  { %v1603_v60 = vadd.f32 %v1601_v58, %v1597_v23  ;;  %v1606_v58 = vsub.f32 1.0, %v1593_v1  ;;  %v1617_v1 = vld [vmem:[#allocation2 + $0xa0] sm:$0xff] }
 0x453   :  { %v1655_v5 = vpop.f32.mrf.mxu0  ;;  %v1698_v55 = vpop.f32.mrf.mxu1 }
 0x454   :  { %4281 = vtanh.f32 %v1603_v60  ;;  %v1790_v21 = vadd.f32 %v1655_v5, %v1615_v30  ;;  %v1607_v60 = vsub.f32 1.0, %v1595_v10 }
 0x455   :  { %v1657_v56 = vpop.f32.mrf.mxu0  ;;  %v3819_v28 = vpop.f32.mrf.mxu1 }
 0x456   :  { %v1794_v2 = vmul.f32 0.5, %v1790_v21  ;;  %v1791_v0 = vadd.f32 %v1657_v56, %v1616_v16  ;;  %v1611_v28 = vmul.f32 %v1595_v10, %v5287_v45  ;;  %v1810_v45 = vadd.f32 %v5525_v24, %v1698_v55 }
 0x457   :  { %v1659_v17 = vpop.f32.mrf.mxu0  ;;  %v1701_v39 = vpop.f32.mrf.mxu1 }
 0x458   :  { %4283 = vtanh.f32 %v1794_v2  ;;  %v1792_v51 = vadd.f32 %v1659_v17, %v1618_v49  ;;  %v1795_v42 = vmul.f32 0.5, %v1791_v0  ;;  %v1811_v10 = vadd.f32 %v5525_v24, %v1701_v39  ;;  %v1620_v0 = vld [vmem:[#allocation2 + $0xb8] sm:$0xff] }
 0x459   :  { %v3820_v63 = vpop.f32.mrf.mxu1  ;;  %v1661_v61 = vpop.f32.mrf.mxu0 }
 0x45a   :  { %v1796_v62 = vmul.f32 0.5, %v1792_v51  ;;  %v1793_v30 = vadd.f32 %v1661_v61, %v1619_v52 }
 0x45c   :  { %4285 = vtanh.f32 %v1796_v62  ;;  %v1797_v49 = vmul.f32 0.5, %v1793_v30 }
 0x45d   :  { %v4280_v23 = vpop.eup %4279  ;;  %4287 = vtanh.f32 %v1795_v42 }
 0x45e   :  { %v1608_v5 = vmul.f32 %v4280_v23, %v1606_v58  ;;  %4289 = vtanh.f32 %v1797_v49 }
 0x460   :  { %v5516_v46 = vadd.f32 %v1610_v53, %v1608_v5 }
 0x461   :  { %v4282_v21 = vpop.eup %4281 }
 0x462   :  { %v1609_v2 = vmul.f32 %v4282_v21, %v1607_v60 }
 0x464   :  { %v5518_v17 = vadd.f32 %v1611_v28, %v1609_v2 }
 0x465   :  { %v4284_v56 = vpop.eup %4283 }
 0x466   :  { %v1802_v3 = vadd.f32 1.0, %v4284_v56  ;;  %v1705_v51 = vpack.c.bf16 %v5518_v17, %v5516_v46 }
 0x468   :  { %v1806_v16 = vmul.f32 0.5, %v1802_v3  ;;  %1739 = vmatmul.mubr.bf16.vlgmr.msra.gmra.mxu0 %v1705_v51  ;;  %3838 = vmatmul.mubr.bf16.vlgmr.msra.gmra.mxu1 %v1705_v51 }
 0x469   :  { %v4286_v63 = vpop.eup %4285  ;;  %1828 = vmatpush1.bf16.msra.mxu0 %v5292_v26  ;;  %3842 = vmatpush3.bf16.msra.mxu1 %v5295_v12 }
 0x46a   :  { %v1812_v62 = vmul.f32 %v1810_v45, %v1806_v16  ;;  %v1804_v52 = vadd.f32 1.0, %v4286_v63  ;;  %1829 = vmatprep.subr.bf16.mxu0 %v5298_v59  ;;  %3843 = vmatprep.subr.bf16.mxu1 %v6473_v44  ;;  %v4288_v30 = vpop.eup %4287 }
 0x46b   :  { %1859 = vmatprep.mubr.bf16.mxu0 %v6474_v48  ;;  %3857 = vmatprep.mubr.msk.bf16.mxu1 %vm4671_vm0, %v6473_v44  ;;  %v4290_v39 = vpop.eup %4289  ;;  %v1803_v60 = vadd.f32 1.0, %v4288_v30  ;;  %v6565_v30 = vld [vmem:[#allocation33_spill] sm:$0xff] }
 0x46c   :  { %v1814_v55 = vadd.f32 %v1812_v62, %v1617_v1  ;;  %v1808_v61 = vmul.f32 0.5, %v1804_v52  ;;  %v1805_v42 = vadd.f32 1.0, %v4290_v39  ;;  %v6557_v62 = vld [vmem:[#allocation25_spill] sm:$0xff]  ;;  %v6558_v52 = vld [vmem:[#allocation26_spill] sm:$0xff] }
 0x46d   :  { %1830 = vmatpush1.bf16.msra.mxu0 %v5306_v25  ;;  %3844 = vmatpush3.bf16.msra.mxu1 %v5309_v27  ;;  %v1807_v5 = vmul.f32 0.5, %v1803_v60  ;;  %v6566_v39 = vld [vmem:[#allocation34_spill] sm:$0xff]  ;;  %v6567_v60 = vld [vmem:[#allocation35_spill] sm:$0xff] }
 0x46e   :  { %4291 = vtanh.f32 %v1814_v55  ;;  %v1813_v23 = vmul.f32 %v1811_v10, %v1808_v61  ;;  %1831 = vmatprep.subr.bf16.mxu0 %v5312_v29  ;;  %3845 = vmatprep.subr.bf16.mxu1 %v6473_v44  ;;  %v1809_v21 = vmul.f32 0.5, %v1805_v42  ;;  %v6559_v55 = vld [vmem:[#allocation27_spill] sm:$0xff]  ;;  %v6560_v61 = vld [vmem:[#allocation28_spill] sm:$0xff] }
 0x46f   :  { %v1818_v28 = vsub.f32 1.0, %v1807_v5  ;;  %v1822_v3 = vmul.f32 %v1807_v5, %v5368_v38  ;;  %v6552_v38 = vld [vmem:[#allocation20_spill] sm:$0xff]  ;;  %v6561_v10 = vld [vmem:[#allocation31_spill] sm:$0xff]  ;;  %v6569_v5 = vld [vmem:[#allocation37_spill] sm:$0xff] }
 0x470   :  { %v1815_v58 = vadd.f32 %v1813_v23, %v1620_v0  ;;  %v1819_v2 = vsub.f32 1.0, %v1809_v21  ;;  %v1823_v16 = vmul.f32 %v1809_v21, %v5370_v14  ;;  %v6553_v14 = vld [vmem:[#allocation21_spill] sm:$0xff]  ;;  %v6563_v23 = vld [vmem:[#allocation30_spill] sm:$0xff]  ;;  %v6568_v42 = vld [vmem:[#allocation36_spill] sm:$0xff] }
 0x471   :  { %1832 = vmatpush1.bf16.msra.mxu0 %v5316_v57  ;;  %3846 = vmatpush3.bf16.msra.mxu1 %v5319_v11  ;;  %v6562_v0 = vld [vmem:[#allocation29_spill] sm:$0xff]  ;;  %v6570_v21 = vld [vmem:[#allocation38_spill] sm:$0xff] }
 0x472   :  { %4293 = vtanh.f32 %v1815_v58  ;;  %1833 = vmatprep.subr.bf16.mxu0 %v5322_v32  ;;  %3847 = vmatprep.subr.bf16.mxu1 %v6473_v44  ;;  %v6564_v58 = vld [vmem:[#allocation32_spill] sm:$0xff] }
 0x475   :  { %1834 = vmatpush1.bf16.msra.mxu0 %v5326_v36  ;;  %3848 = vmatpush3.bf16.msra.mxu1 %v5329_v37 }
 0x476   :  { %1835 = vmatprep.subr.bf16.mxu0 %v5332_v40  ;;  %3849 = vmatprep.subr.bf16.mxu1 %v6473_v44 }
 0x479   :  { %1836 = vmatpush1.bf16.msra.mxu0 %v5336_v7  ;;  %3850 = vmatpush3.bf16.msra.mxu1 %v5339_v33 }
 0x47a   :  { %1837 = vmatprep.subr.bf16.mxu0 %v5342_v9  ;;  %3851 = vmatprep.subr.bf16.mxu1 %v6473_v44 }
 0x47b   :  { %v4292_v53 = vpop.eup %4291 }
 0x47c   :  { %v1820_v49 = vmul.f32 %v4292_v53, %v1818_v28  ;;  %v6571_v53 = vld [vmem:[#allocation39_spill] sm:$0xff]  ;;  %v6572_v28 = vld [vmem:[#allocation40_spill] sm:$0xff] }
 0x47d   :  { %1838 = vmatpush1.bf16.msra.mxu0 %v5346_v4  ;;  %3852 = vmatpush3.bf16.msra.mxu1 %v5349_v13 }
 0x47e   :  { %1839 = vmatprep.subr.bf16.mxu0 %v5352_v6  ;;  %3853 = vmatprep.subr.bf16.mxu1 %v6473_v44  ;;  %v5562_v45 = vadd.f32 %v1822_v3, %v1820_v49  ;;  %v6573_v49 = vld [vmem:[#allocation41_spill] sm:$0xff]  ;;  %v6576_v3 = vld [vmem:[#allocation44_spill] sm:$0xff] }
 0x47f   :  { %v4294_v56 = vpop.eup %4293 }
 0x480   :  { %v1821_v51 = vmul.f32 %v4294_v56, %v1819_v2  ;;  %v6574_v2 = vld [vmem:[#allocation42_spill] sm:$0xff]  ;;  %v6575_v56 = vld [vmem:[#allocation43_spill] sm:$0xff] }
 0x481   :  { %1840 = vmatpush1.bf16.msra.mxu0 %v5358_v31  ;;  %3854 = vmatpush3.bf16.msra.mxu1 %v5361_v34 }
 0x482   :  { %1841 = vmatprep.subr.bf16.mxu0 %v5364_v35  ;;  %3855 = vmatprep.subr.bf16.mxu1 %v6473_v44  ;;  %v5564_v63 = vadd.f32 %v1823_v16, %v1821_v51  ;;  %v6577_v51 = vld [vmem:[#allocation45_spill] sm:$0xff]  ;;  %v6578_v16 = vld [vmem:[#allocation46_spill] sm:$0xff] }
 0x484   :  { %v1826_v1 = vpack.c.bf16 %v5564_v63, %v5562_v45 }
 0x485   :  { %1842 = vmatpush1.bf16.msra.mxu0 %v5374_v41  ;;  %3856 = vmatpush3.bf16.msra.mxu1 %v5377_v8 }
 0x486   :  { %1960 = vmatprep.subr.bf16.mxu0 %v5159_v43  ;;  %3861 = vmatprep.subr.bf16.mxu1 %v6473_v44  ;;  %v6548_v43 = vld [vmem:[#allocation16_spill] sm:$0xff] }
 0x488   :  { %1860 = vmatmul.mubr.bf16.vlgmr.msra.gmra.mxu0 %v1826_v1  ;;  %3858 = vmatmul.mubr.bf16.vlgmr.msra.gmra.mxu1 %v1826_v1 }
 0x489   :  { %1961 = vmatpush1.bf16.msra.mxu0 %v5163_v50  ;;  %3862 = vmatpush3.bf16.msra.mxu1 %v5166_v15  ;;  %v6549_v50 = vld [vmem:[#allocation19_spill] sm:$0xff]  ;;  %v6550_v15 = vld [vmem:[#allocation17_spill] sm:$0xff] }
 0x48a   :  { %1962 = vmatprep.subr.bf16.mxu0 %v5169_v18  ;;  %3863 = vmatprep.subr.bf16.mxu1 %v6473_v44  ;;  %v6551_v18 = vld [vmem:[#allocation18_spill] sm:$0xff] }
 0x48b   :  { %1992 = vmatprep.mubr.bf16.mxu0 %v6474_v48  ;;  %3877 = vmatprep.mubr.msk.bf16.mxu1 %vm4671_vm0, %v6473_v44 }
 0x48d   :  { %1963 = vmatpush1.bf16.msra.mxu0 %v5176_v47  ;;  %3864 = vmatpush3.bf16.msra.mxu1 %v5179_v19  ;;  %v6554_v47 = vld [vmem:[#allocation22_spill] sm:$0xff]  ;;  %v6555_v19 = vld [vmem:[#allocation23_spill] sm:$0xff] }
 0x48e   :  { %1964 = vmatprep.subr.bf16.mxu0 %v5182_v20  ;;  %3865 = vmatprep.subr.bf16.mxu1 %v6473_v44  ;;  %v6556_v20 = vld [vmem:[#allocation24_spill] sm:$0xff] }
 0x491   :  { %1965 = vmatpush1.bf16.msra.mxu0 %v6548_v43  ;;  %3866 = vmatpush3.bf16.msra.mxu1 %v6549_v50  ;;  %v6580_v43 = vld [vmem:[#allocation48_spill] sm:$0xff]  ;;  %v6581_v50 = vld [vmem:[#allocation49_spill] sm:$0xff] }
 0x492   :  { %1966 = vmatprep.subr.bf16.mxu0 %v6550_v15  ;;  %3867 = vmatprep.subr.bf16.mxu1 %v6473_v44  ;;  %v6582_v15 = vld [vmem:[#allocation50_spill] sm:$0xff] }
 0x495   :  { %1967 = vmatpush1.bf16.msra.mxu0 %v6551_v18  ;;  %3868 = vmatpush3.bf16.msra.mxu1 %v6552_v38  ;;  %v6583_v18 = vld [vmem:[#allocation51_spill] sm:$0xff]  ;;  %v6584_v38 = vld [vmem:[#allocation52_spill] sm:$0xff] }
 0x496   :  { %1968 = vmatprep.subr.bf16.mxu0 %v6553_v14  ;;  %3869 = vmatprep.subr.bf16.mxu1 %v6473_v44  ;;  %v6585_v14 = vld [vmem:[#allocation53_spill] sm:$0xff] }
 0x499   :  { %1969 = vmatpush1.bf16.msra.mxu0 %v6554_v47  ;;  %3870 = vmatpush3.bf16.msra.mxu1 %v6555_v19  ;;  %v6586_v47 = vld [vmem:[#allocation54_spill] sm:$0xff]  ;;  %v6587_v19 = vld [vmem:[#allocation55_spill] sm:$0xff] }
 0x49a   :  { %1970 = vmatprep.subr.bf16.mxu0 %v6556_v20  ;;  %3871 = vmatprep.subr.bf16.mxu1 %v6473_v44  ;;  %v6588_v20 = vld [vmem:[#allocation56_spill] sm:$0xff] }
 0x49d   :  { %1971 = vmatpush1.bf16.msra.mxu0 %v6557_v62  ;;  %3872 = vmatpush3.bf16.msra.mxu1 %v6558_v52  ;;  %v6589_v62 = vld [vmem:[#allocation57_spill] sm:$0xff] }
 0x49e   :  { %1972 = vmatprep.subr.bf16.mxu0 %v6559_v55  ;;  %3873 = vmatprep.subr.bf16.mxu1 %v6473_v44 }
 0x4a1   :  { %1973 = vmatpush1.bf16.msra.mxu0 %v6560_v61  ;;  %3874 = vmatpush3.bf16.msra.mxu1 %v6561_v10 }
 0x4a2   :  { %1974 = vmatprep.subr.bf16.mxu0 %v6562_v0  ;;  %3875 = vmatprep.subr.bf16.mxu1 %v6473_v44 }
 0x4a5   :  { %1975 = vmatpush1.bf16.msra.mxu0 %v6563_v23  ;;  %3876 = vmatpush3.bf16.msra.mxu1 %v6564_v58 }
 0x4a6   :  { %2045 = vmatprep.subr.bf16.mxu0 %v6565_v30  ;;  %3881 = vmatprep.subr.bf16.mxu1 %v6473_v44 }
 0x4a8   :  { %1993 = vmatmul.mubr.bf16.vlgmr.msra.gmra.mxu0 %v1826_v1  ;;  %3878 = vmatmul.mubr.bf16.vlgmr.msra.gmra.mxu1 %v1826_v1  ;;  %v6579_v1 = vld [vmem:[#allocation47_spill] sm:$0xff] }
 0x4a9   :  { %2046 = vmatpush1.bf16.msra.mxu0 %v6566_v39  ;;  %3882 = vmatpush3.bf16.msra.mxu1 %v6567_v60 }
 0x4aa   :  { %2047 = vmatprep.subr.bf16.mxu0 %v6568_v42  ;;  %3883 = vmatprep.subr.bf16.mxu1 %v6473_v44 }
 0x4ab   :  { %2077 = vmatprep.mubr.bf16.mxu0 %v6474_v48  ;;  %3897 = vmatprep.mubr.msk.bf16.mxu1 %vm4671_vm0, %v6473_v44 }
 0x4ad   :  { %2048 = vmatpush1.bf16.msra.mxu0 %v6569_v5  ;;  %3884 = vmatpush3.bf16.msra.mxu1 %v6570_v21 }
 0x4ae   :  { %2049 = vmatprep.subr.bf16.mxu0 %v6571_v53  ;;  %3885 = vmatprep.subr.bf16.mxu1 %v6473_v44 }
 0x4b1   :  { %2050 = vmatpush1.bf16.msra.mxu0 %v6572_v28  ;;  %3886 = vmatpush3.bf16.msra.mxu1 %v6573_v49 }
 0x4b2   :  { %2051 = vmatprep.subr.bf16.mxu0 %v6574_v2  ;;  %3887 = vmatprep.subr.bf16.mxu1 %v6473_v44 }
 0x4b5   :  { %2052 = vmatpush1.bf16.msra.mxu0 %v6575_v56  ;;  %3888 = vmatpush3.bf16.msra.mxu1 %v6576_v3 }
 0x4b6   :  { %2053 = vmatprep.subr.bf16.mxu0 %v6577_v51  ;;  %3889 = vmatprep.subr.bf16.mxu1 %v6473_v44 }
 0x4b9   :  { %2054 = vmatpush1.bf16.msra.mxu0 %v6578_v16  ;;  %3890 = vmatpush3.bf16.msra.mxu1 %v6579_v1 }
 0x4ba   :  { %2055 = vmatprep.subr.bf16.mxu0 %v6580_v43  ;;  %3891 = vmatprep.subr.bf16.mxu1 %v6473_v44 }
 0x4bd   :  { %2056 = vmatpush1.bf16.msra.mxu0 %v6581_v50  ;;  %3892 = vmatpush3.bf16.msra.mxu1 %v6582_v15 }
 0x4be   :  { %2057 = vmatprep.subr.bf16.mxu0 %v6583_v18  ;;  %3893 = vmatprep.subr.bf16.mxu1 %v6473_v44 }
 0x4c1   :  { %2058 = vmatpush1.bf16.msra.mxu0 %v6584_v38  ;;  %3894 = vmatpush3.bf16.msra.mxu1 %v6585_v14 }
 0x4c2   :  { %2059 = vmatprep.subr.bf16.mxu0 %v6586_v47  ;;  %3895 = vmatprep.subr.bf16.mxu1 %v6473_v44 }
 0x4c5   :  { %2060 = vmatpush1.bf16.msra.mxu0 %v6587_v19  ;;  %3896 = vmatpush3.bf16.msra.mxu1 %v6588_v20 }
 0x4c6   :  { %2166 = vmatprep.subr.bf16.mxu0 %v6589_v62  ;;  %3901 = vmatprep.subr.bf16.mxu1 %v6473_v44 }
 0x528   :  { %v1783_v52 = vpop.f32.mrf.mxu1  ;;  %v1740_v23 = vpop.f32.mrf.mxu0 }
 0x52a   :  { %v3839_v55 = vpop.f32.mrf.mxu1  ;;  %v1742_v38 = vpop.f32.mrf.mxu0 }
 0x52c   :  { %v1786_v61 = vpop.f32.mrf.mxu1  ;;  %v1744_v18 = vpop.f32.mrf.mxu0 }
 0x52e   :  { %v3840_v0 = vpop.f32.mrf.mxu1  ;;  %v1746_v14 = vpop.f32.mrf.mxu0 }
 0x548   :  { %v1861_v15 = vpop.f32.mrf.mxu0  ;;  %v1904_v47 = vpop.f32.mrf.mxu1 }
 0x549   :  { %v1911_v50 = vadd.f32 %v1861_v15, %v1740_v23 }
 0x54a   :  { %v1863_v43 = vpop.f32.mrf.mxu0  ;;  %v3859_v1 = vpop.f32.mrf.mxu1 }
 0x54b   :  { %v1915_v19 = vadd.f32 %v1911_v50, %v5086_v22  ;;  %v1912_v55 = vadd.f32 %v1863_v43, %v1742_v38 }
 0x54c   :  { %v1865_v20 = vpop.f32.mrf.mxu0  ;;  %v1907_v16 = vpop.f32.mrf.mxu1 }
 0x54d   :  { %v1919_v62 = vmul.f32 0.5, %v1915_v19  ;;  %v1913_v51 = vadd.f32 %v1865_v20, %v1744_v18  ;;  %v1916_v28 = vadd.f32 %v1912_v55, %v5089_v54 }
 0x54e   :  { %v1867_v3 = vpop.f32.mrf.mxu0  ;;  %v3860_v56 = vpop.f32.mrf.mxu1 }
 0x54f   :  { %4295 = vtanh.f32 %v1919_v62  ;;  %v1917_v0 = vadd.f32 %v1913_v51, %v5086_v22  ;;  %v1914_v49 = vadd.f32 %v1867_v3, %v1746_v14  ;;  %v1920_v1 = vmul.f32 0.5, %v1916_v28  ;;  %v5649_v56 = vld [vmem:[%s6283_s7] ss:$0 sm:$0xff] }
 0x550   :  { %6590 = vst [vmem:[#allocation16_spill] sm:$0xff] %v5649_v56  ;;  %v1937_v51 = vadd.f32 %v5649_v56, %v1783_v52  ;;  %v1938_v38 = vadd.f32 %v5649_v56, %v1786_v61  ;;  %v1954_v52 = vld [vmem:[#allocation2 + $0xc0] sm:$0xff] }
 0x551   :  { %v1921_v2 = vmul.f32 0.5, %v1917_v0  ;;  %v1918_v15 = vadd.f32 %v1914_v49, %v5089_v54 }
 0x553   :  { %4297 = vtanh.f32 %v1921_v2  ;;  %v1922_v23 = vmul.f32 0.5, %v1918_v15  ;;  %v5655_v2 = vld [vmem:[%s6282_s6] ss:$0 sm:$0xff] }
 0x554   :  { %4299 = vtanh.f32 %v1920_v1  ;;  %6591 = vst [vmem:[#allocation19_spill] sm:$0xff] %v5655_v2  ;;  %v1935_v28 = vadd.f32 %v5655_v2, %v1904_v47  ;;  %v1936_v20 = vadd.f32 %v5655_v2, %v1907_v16  ;;  %v1955_v16 = vld [vmem:[#allocation2 + $0xc8] sm:$0xff] }
 0x555   :  { %4301 = vtanh.f32 %v1922_v23 }
 0x55c   :  { %v4296_v50 = vpop.eup %4295 }
 0x55d   :  { %v1927_v53 = vadd.f32 1.0, %v4296_v50 }
 0x55f   :  { %v1931_v43 = vmul.f32 0.5, %v1927_v53 }
 0x560   :  { %v4298_v3 = vpop.eup %4297 }
 0x561   :  { %v1939_v49 = vmul.f32 %v1937_v51, %v1931_v43  ;;  %v1929_v18 = vadd.f32 1.0, %v4298_v3  ;;  %v4300_v55 = vpop.eup %4299  ;;  %v1957_v51 = vld [vmem:[#allocation2 + $0xd8] sm:$0xff] }
 0x562   :  { %v4302_v23 = vpop.eup %4301  ;;  %v1928_v43 = vadd.f32 1.0, %v4300_v55 }
 0x563   :  { %v1941_v14 = vadd.f32 %v1939_v49, %v1935_v28  ;;  %v1933_v19 = vmul.f32 0.5, %v1929_v18  ;;  %v1930_v49 = vadd.f32 1.0, %v4302_v23 }
 0x565   :  { %4303 = vtanh.f32 %v1941_v14  ;;  %v1940_v62 = vmul.f32 %v1938_v38, %v1933_v19  ;;  %v1932_v14 = vmul.f32 0.5, %v1928_v43  ;;  %v1934_v2 = vmul.f32 0.5, %v1930_v49 }
 0x567   :  { %v1942_v53 = vadd.f32 %v1940_v62, %v1936_v20  ;;  %v1958_v20 = vld [vmem:[#allocation2 + $0xe0] sm:$0xff]  ;;  %v1946_v56 = vsub.f32 1.0, %v1934_v2  ;;  %v1949_v23 = vmul.f32 %v1932_v14, %v5516_v46 }
 0x568   :  { %v1994_v0 = vpop.f32.mrf.mxu0  ;;  %v2037_v15 = vpop.f32.mrf.mxu1 }
 0x569   :  { %4305 = vtanh.f32 %v1942_v53  ;;  %v2129_v1 = vadd.f32 %v1994_v0, %v1954_v52  ;;  %v1945_v0 = vsub.f32 1.0, %v1932_v14 }
 0x56a   :  { %v1996_v50 = vpop.f32.mrf.mxu0  ;;  %v3879_v47 = vpop.f32.mrf.mxu1 }
 0x56b   :  { %v2133_v3 = vmul.f32 0.5, %v2129_v1  ;;  %v2130_v53 = vadd.f32 %v1996_v50, %v1955_v16 }
 0x56c   :  { %v1998_v61 = vpop.f32.mrf.mxu0  ;;  %v2040_v28 = vpop.f32.mrf.mxu1 }
 0x56d   :  { %4307 = vtanh.f32 %v2133_v3  ;;  %v2131_v18 = vadd.f32 %v1998_v61, %v1957_v51  ;;  %v2134_v55 = vmul.f32 0.5, %v2130_v53  ;;  %v1950_v51 = vmul.f32 %v1934_v2, %v5518_v17  ;;  %v1956_v17 = vld [vmem:[#allocation2 + $0xd0] sm:$0xff]  ;;  %v5745_v53 = vld [vmem:[#allocation5 + $0x80] ss:$12 sps:$4 sm:$0xff]  }
 0x56e   :  { %v3880_v38 = vpop.f32.mrf.mxu1  ;;  %v2000_v62 = vpop.f32.mrf.mxu0  ;;  %v2150_v14 = vadd.f32 %v5525_v24, %v2040_v28  ;;  %6593 = vst [vmem:[#allocation18_spill] sm:$0xff] %v5745_v53 }
 0x56f   :  { %v2135_v19 = vmul.f32 0.5, %v2131_v18  ;;  %v2132_v47 = vadd.f32 %v2000_v62, %v1958_v20  ;;  %v1959_v20 = vld [vmem:[#allocation2 + $0xe8] sm:$0xff]  ;;  %v5742_v62 = vld [vmem:[#allocation5 + $0x78] ss:$12 sps:$4 sm:$0xff]  }
 0x570   :  { %6592 = vst [vmem:[#allocation17_spill] sm:$0xff] %v5742_v62 }
 0x571   :  { %4309 = vtanh.f32 %v2135_v19  ;;  %v2136_v3 = vmul.f32 0.5, %v2132_v47  ;;  %v2149_v19 = vadd.f32 %v5525_v24, %v2037_v15  ;;  %v5755_v47 = vld [vmem:[#allocation5 + $0x68] ss:$12 sps:$4 sm:$0xff]  }
 0x572   :  { %v4304_v52 = vpop.eup %4303  ;;  %4311 = vtanh.f32 %v2134_v55  ;;  %6596 = vst [vmem:[#allocation22_spill] sm:$0xff] %v5755_v47  ;;  %v5758_v55 = vld [vmem:[#allocation5 + $0x4c] ss:$12 sps:$4 sm:$0xff]  }
 0x573   :  { %v1947_v1 = vmul.f32 %v4304_v52, %v1945_v0  ;;  %4313 = vtanh.f32 %v2136_v3  ;;  %v5748_v52 = vld [vmem:[#allocation5 + $0x64] ss:$12 sps:$4 sm:$0xff]   ;;  %v5752_v0 = vld [vmem:[#allocation5 + $0x60] ss:$12 sps:$4 sm:$0xff]   ;;  %6597 = vst [vmem:[#allocation23_spill] sm:$0xff] %v5758_v55 }
 0x574   :  { %6594 = vst [vmem:[#allocation20_spill] sm:$0xff] %v5748_v52  ;;  %6595 = vst [vmem:[#allocation21_spill] sm:$0xff] %v5752_v0  ;;  %v5772_v3 = vld [vmem:[#allocation5 + $0x30] ss:$12 sps:$4 sm:$0xff]  }
 0x575   :  { %v5662_v43 = vadd.f32 %v1949_v23, %v1947_v1  ;;  %v5762_v1 = vld [vmem:[#allocation5 + $0x48] ss:$12 sps:$4 sm:$0xff]   ;;  %v5765_v23 = vld [vmem:[#allocation5 + $0x50] ss:$12 sps:$4 sm:$0xff]   ;;  %6601 = vst [vmem:[#allocation27_spill] sm:$0xff] %v5772_v3 }
 0x576   :  { %v4306_v54 = vpop.eup %4305  ;;  %6598 = vst [vmem:[#allocation24_spill] sm:$0xff] %v5762_v1  ;;  %6599 = vst [vmem:[#allocation25_spill] sm:$0xff] %v5765_v23 }
 0x577   :  { %v1948_v61 = vmul.f32 %v4306_v54, %v1946_v56 }
 0x579   :  { %v5664_v18 = vadd.f32 %v1950_v51, %v1948_v61  ;;  %v5768_v51 = vld [vmem:[#allocation5 + $0x34] ss:$12 sps:$4 sm:$0xff]   ;;  %v5775_v61 = vld [vmem:[#allocation5 + $0x38] ss:$12 sps:$4 sm:$0xff]  }
 0x57a   :  { %v4308_v50 = vpop.eup %4307  ;;  %6600 = vst [vmem:[#allocation26_spill] sm:$0xff] %v5768_v51  ;;  %6602 = vst [vmem:[#allocation28_spill] sm:$0xff] %v5775_v61 }
 0x57b   :  { %v2141_v49 = vadd.f32 1.0, %v4308_v50  ;;  %v2044_v16 = vpack.c.bf16 %v5664_v18, %v5662_v43  ;;  %v5778_v50 = vld [vmem:[#allocation5 + $0x1c] ss:$12 sps:$4 sm:$0xff]  }
 0x57c   :  { %6603 = vst [vmem:[#allocation31_spill] sm:$0xff] %v5778_v50 }
 0x57d   :  { %v2145_v38 = vmul.f32 0.5, %v2141_v49  ;;  %2078 = vmatmul.mubr.bf16.vlgmr.msra.gmra.mxu0 %v2044_v16  ;;  %3898 = vmatmul.mubr.bf16.vlgmr.msra.gmra.mxu1 %v2044_v16  ;;  %v5782_v49 = vld [vmem:[#allocation5 + $0x18] ss:$12 sps:$4 sm:$0xff]  }
 0x57e   :  { %v4310_v46 = vpop.eup %4309  ;;  %2167 = vmatpush1.bf16.msra.mxu0 %v5292_v26  ;;  %3902 = vmatpush3.bf16.msra.mxu1 %v5295_v12  ;;  %6604 = vst [vmem:[#allocation29_spill] sm:$0xff] %v5782_v49  ;;  %v5786_v16 = vld [vmem:[#allocation5 + $0x4] ss:$12 sps:$4 sm:$0xff]  }
 0x57f   :  { %v2151_v54 = vmul.f32 %v2149_v19, %v2145_v38  ;;  %v2143_v56 = vadd.f32 1.0, %v4310_v46  ;;  %2168 = vmatprep.subr.bf16.mxu0 %v5298_v59  ;;  %3903 = vmatprep.subr.bf16.mxu1 %v6473_v44  ;;  %v4312_v59 = vpop.eup %4311  ;;  %6605 = vst [vmem:[#allocation30_spill] sm:$0xff] %v5786_v16  ;;  %v5790_v38 = vld [vmem:[#allocation5] ss:$12 sps:$4 sm:$0xff]   ;;  %v6616_v46 = vld [vmem:[#allocation48_spill] sm:$0xff] }
 0x580   :  { %2198 = vmatprep.mubr.bf16.mxu0 %v6474_v48  ;;  %3917 = vmatprep.mubr.msk.bf16.mxu1 %vm4671_vm0, %v6473_v44  ;;  %v2142_v28 = vadd.f32 1.0, %v4312_v59  ;;  %6606 = vst [vmem:[#allocation32_spill] sm:$0xff] %v5790_v38  ;;  %v6613_v19 = vld [vmem:[#allocation45_spill] sm:$0xff] }
 0x581   :  { %v2153_v2 = vadd.f32 %v2151_v54, %v1956_v17  ;;  %v2147_v15 = vmul.f32 0.5, %v2143_v56  ;;  %v6617_v17 = vld [vmem:[#allocation49_spill] sm:$0xff]  ;;  %v6618_v54 = vld [vmem:[#allocation50_spill] sm:$0xff]  ;;  %v6619_v56 = vld [vmem:[#allocation51_spill] sm:$0xff] }
 0x582   :  { %2169 = vmatpush1.bf16.msra.mxu0 %v5306_v25  ;;  %3904 = vmatpush3.bf16.msra.mxu1 %v5309_v27  ;;  %v4314_v25 = vpop.eup %4313 }
 0x583   :  { %4315 = vtanh.f32 %v2153_v2  ;;  %v2152_v26 = vmul.f32 %v2150_v14, %v2147_v15  ;;  %2170 = vmatprep.subr.bf16.mxu0 %v5312_v29  ;;  %3905 = vmatprep.subr.bf16.mxu1 %v6473_v44  ;;  %v2144_v27 = vadd.f32 1.0, %v4314_v25  ;;  %v2146_v29 = vmul.f32 0.5, %v2142_v28  ;;  %v6620_v2 = vld [vmem:[#allocation52_spill] sm:$0xff]  ;;  %v6621_v15 = vld [vmem:[#allocation53_spill] sm:$0xff]  ;;  %v6622_v14 = vld [vmem:[#allocation54_spill] sm:$0xff] }
 0x585   :  { %v2154_v12 = vadd.f32 %v2152_v26, %v1959_v20  ;;  %v6623_v20 = vld [vmem:[#allocation55_spill] sm:$0xff]  ;;  %v6624_v26 = vld [vmem:[#allocation56_spill] sm:$0xff] }
 0x586   :  { %2171 = vmatpush1.bf16.msra.mxu0 %v5316_v57  ;;  %3906 = vmatpush3.bf16.msra.mxu1 %v5319_v11  ;;  %v2148_v57 = vmul.f32 0.5, %v2144_v27 }
 0x587   :  { %4317 = vtanh.f32 %v2154_v12  ;;  %2172 = vmatprep.subr.bf16.mxu0 %v5322_v32  ;;  %3907 = vmatprep.subr.bf16.mxu1 %v6473_v44  ;;  %v2157_v32 = vsub.f32 1.0, %v2146_v29  ;;  %v6625_v12 = vld [vmem:[#allocation57_spill] sm:$0xff] }
 0x58a   :  { %2173 = vmatpush1.bf16.msra.mxu0 %v5326_v36  ;;  %3908 = vmatpush3.bf16.msra.mxu1 %v5329_v37  ;;  %v2158_v37 = vsub.f32 1.0, %v2148_v57 }
 0x58b   :  { %2174 = vmatprep.subr.bf16.mxu0 %v5332_v40  ;;  %3909 = vmatprep.subr.bf16.mxu1 %v6473_v44 }
 0x58e   :  { %2175 = vmatpush1.bf16.msra.mxu0 %v5336_v7  ;;  %3910 = vmatpush3.bf16.msra.mxu1 %v5339_v33  ;;  %v2161_v7 = vmul.f32 %v2146_v29, %v5562_v45  ;;  %v5713_v45 = vld [vmem:[#allocation5 + $0xac] ss:$12 sps:$4 sm:$0xff]  }
 0x58f   :  { %2176 = vmatprep.subr.bf16.mxu0 %v5342_v9  ;;  %3911 = vmatprep.subr.bf16.mxu1 %v6473_v44  ;;  %v2162_v9 = vmul.f32 %v2148_v57, %v5564_v63  ;;  %v5738_v63 = vld [vmem:[#allocation5 + $0x7c] ss:$12 sps:$4 sm:$0xff]  }
 0x590   :  { %v4316_v11 = vpop.eup %4315 }
 0x591   :  { %v2159_v36 = vmul.f32 %v4316_v11, %v2157_v32 }
 0x592   :  { %2177 = vmatpush1.bf16.msra.mxu0 %v5346_v4  ;;  %3912 = vmatpush3.bf16.msra.mxu1 %v5349_v13 }
 0x593   :  { %2178 = vmatprep.subr.bf16.mxu0 %v5352_v6  ;;  %3913 = vmatprep.subr.bf16.mxu1 %v6473_v44  ;;  %v5703_v4 = vadd.f32 %v2161_v7, %v2159_v36 }
 0x594   :  { %v4318_v40 = vpop.eup %4317 }
 0x595   :  { %v2160_v33 = vmul.f32 %v4318_v40, %v2158_v37 }
 0x596   :  { %2179 = vmatpush1.bf16.msra.mxu0 %v5358_v31  ;;  %3914 = vmatpush3.bf16.msra.mxu1 %v5361_v34  ;;  %v5719_v31 = vld [vmem:[#allocation5 + $0xa8] ss:$12 sps:$4 sm:$0xff]   ;;  %v5722_v34 = vld [vmem:[#allocation5 + $0xb0] ss:$12 sps:$4 sm:$0xff]  }
 0x597   :  { %2180 = vmatprep.subr.bf16.mxu0 %v5364_v35  ;;  %3915 = vmatprep.subr.bf16.mxu1 %v6473_v44  ;;  %v5705_v13 = vadd.f32 %v2162_v9, %v2160_v33  ;;  %v5725_v35 = vld [vmem:[#allocation5 + $0x94] ss:$12 sps:$4 sm:$0xff]  }
 0x599   :  { %v5709_v6 = vpack.c.bf16 %v5705_v13, %v5703_v4 }
 0x59a   :  { %2181 = vmatpush1.bf16.msra.mxu0 %v5374_v41  ;;  %3916 = vmatpush3.bf16.msra.mxu1 %v5377_v8  ;;  %v5732_v41 = vld [vmem:[#allocation5 + $0x90] ss:$12 sps:$4 sm:$0xff]   ;;  %v5735_v8 = vld [vmem:[#allocation5 + $0x98] ss:$12 sps:$4 sm:$0xff]  }
 0x59b   :  { %2299 = vmatprep.subr.bf16.mxu0 %v5713_v45  ;;  %3921 = vmatprep.subr.bf16.mxu1 %v6473_v44 }
 0x59d   :  { %2199 = vmatmul.mubr.bf16.vlgmr.msra.gmra.mxu0 %v5709_v6  ;;  %3918 = vmatmul.mubr.bf16.vlgmr.msra.gmra.mxu1 %v5709_v6 }
 0x59e   :  { %2300 = vmatpush1.bf16.msra.mxu0 %v5719_v31  ;;  %3922 = vmatpush3.bf16.msra.mxu1 %v5722_v34 }
 0x59f   :  { %2301 = vmatprep.subr.bf16.mxu0 %v5725_v35  ;;  %3923 = vmatprep.subr.bf16.mxu1 %v6473_v44 }
 0x5a0   :  { %2331 = vmatprep.mubr.bf16.mxu0 %v6474_v48  ;;  %3937 = vmatprep.mubr.msk.bf16.mxu1 %vm4671_vm0, %v6473_v44 }
 0x5a2   :  { %2302 = vmatpush1.bf16.msra.mxu0 %v5732_v41  ;;  %3924 = vmatpush3.bf16.msra.mxu1 %v5735_v8 }
 0x5a3   :  { %2303 = vmatprep.subr.bf16.mxu0 %v5738_v63  ;;  %3925 = vmatprep.subr.bf16.mxu1 %v6473_v44 }
 0x5a6   :  { %2304 = vmatpush1.bf16.msra.mxu0 %v5742_v62  ;;  %3926 = vmatpush3.bf16.msra.mxu1 %v5745_v53 }
 0x5a7   :  { %2305 = vmatprep.subr.bf16.mxu0 %v5748_v52  ;;  %3927 = vmatprep.subr.bf16.mxu1 %v6473_v44 }
 0x5aa   :  { %2306 = vmatpush1.bf16.msra.mxu0 %v5752_v0  ;;  %3928 = vmatpush3.bf16.msra.mxu1 %v5755_v47 }
 0x5ab   :  { %2307 = vmatprep.subr.bf16.mxu0 %v5758_v55  ;;  %3929 = vmatprep.subr.bf16.mxu1 %v6473_v44 }
 0x5ae   :  { %2308 = vmatpush1.bf16.msra.mxu0 %v5762_v1  ;;  %3930 = vmatpush3.bf16.msra.mxu1 %v5765_v23 }
 0x5af   :  { %2309 = vmatprep.subr.bf16.mxu0 %v5768_v51  ;;  %3931 = vmatprep.subr.bf16.mxu1 %v6473_v44 }
 0x5b2   :  { %2310 = vmatpush1.bf16.msra.mxu0 %v5772_v3  ;;  %3932 = vmatpush3.bf16.msra.mxu1 %v5775_v61 }
 0x5b3   :  { %2311 = vmatprep.subr.bf16.mxu0 %v5778_v50  ;;  %3933 = vmatprep.subr.bf16.mxu1 %v6473_v44 }
 0x5b6   :  { %2312 = vmatpush1.bf16.msra.mxu0 %v5782_v49  ;;  %3934 = vmatpush3.bf16.msra.mxu1 %v6561_v10  ;;  %v6607_v10 = vld [vmem:[#allocation39_spill] sm:$0xff] }
 0x5b7   :  { %2313 = vmatprep.subr.bf16.mxu0 %v5786_v16  ;;  %3935 = vmatprep.subr.bf16.mxu1 %v6473_v44 }
 0x5ba   :  { %2314 = vmatpush1.bf16.msra.mxu0 %v5790_v38  ;;  %3936 = vmatpush3.bf16.msra.mxu1 %v6564_v58  ;;  %v6608_v58 = vld [vmem:[#allocation40_spill] sm:$0xff] }
 0x5bb   :  { %2384 = vmatprep.subr.bf16.mxu0 %v6565_v30  ;;  %3941 = vmatprep.subr.bf16.mxu1 %v6473_v44  ;;  %v6609_v30 = vld [vmem:[#allocation41_spill] sm:$0xff] }
 0x5bd   :  { %2332 = vmatmul.mubr.bf16.vlgmr.msra.gmra.mxu0 %v5709_v6  ;;  %3938 = vmatmul.mubr.bf16.vlgmr.msra.gmra.mxu1 %v5709_v6 }
 0x5be   :  { %2385 = vmatpush1.bf16.msra.mxu0 %v6566_v39  ;;  %3942 = vmatpush3.bf16.msra.mxu1 %v6567_v60  ;;  %v6610_v39 = vld [vmem:[#allocation42_spill] sm:$0xff]  ;;  %v6611_v60 = vld [vmem:[#allocation43_spill] sm:$0xff] }
 0x5bf   :  { %2386 = vmatprep.subr.bf16.mxu0 %v6568_v42  ;;  %3943 = vmatprep.subr.bf16.mxu1 %v6473_v44  ;;  %v6612_v42 = vld [vmem:[#allocation44_spill] sm:$0xff] }
 0x5c0   :  { %2416 = vmatprep.mubr.bf16.mxu0 %v6474_v48  ;;  %3957 = vmatprep.mubr.msk.bf16.mxu1 %vm4671_vm0, %v6473_v44 }
 0x5c2   :  { %2387 = vmatpush1.bf16.msra.mxu0 %v6569_v5  ;;  %3944 = vmatpush3.bf16.msra.mxu1 %v6570_v21  ;;  %v6614_v5 = vld [vmem:[#allocation46_spill] sm:$0xff]  ;;  %v6615_v21 = vld [vmem:[#allocation47_spill] sm:$0xff] }
 0x5c3   :  { %2388 = vmatprep.subr.bf16.mxu0 %v6607_v10  ;;  %3945 = vmatprep.subr.bf16.mxu1 %v6473_v44 }
 0x5c6   :  { %2389 = vmatpush1.bf16.msra.mxu0 %v6608_v58  ;;  %3946 = vmatpush3.bf16.msra.mxu1 %v6609_v30 }
 0x5c7   :  { %2390 = vmatprep.subr.bf16.mxu0 %v6610_v39  ;;  %3947 = vmatprep.subr.bf16.mxu1 %v6473_v44 }
 0x5ca   :  { %2391 = vmatpush1.bf16.msra.mxu0 %v6611_v60  ;;  %3948 = vmatpush3.bf16.msra.mxu1 %v6612_v42 }
 0x5cb   :  { %2392 = vmatprep.subr.bf16.mxu0 %v6613_v19  ;;  %3949 = vmatprep.subr.bf16.mxu1 %v6473_v44 }
 0x5ce   :  { %2393 = vmatpush1.bf16.msra.mxu0 %v6614_v5  ;;  %3950 = vmatpush3.bf16.msra.mxu1 %v6615_v21 }
 0x5cf   :  { %2394 = vmatprep.subr.bf16.mxu0 %v6616_v46  ;;  %3951 = vmatprep.subr.bf16.mxu1 %v6473_v44  ;;  %v6626_v46 = vld [vmem:[#allocation15_spill] sm:$0xff] }
 0x5d2   :  { %2395 = vmatpush1.bf16.msra.mxu0 %v6617_v17  ;;  %3952 = vmatpush3.bf16.msra.mxu1 %v6618_v54 }
 0x5d3   :  { %2396 = vmatprep.subr.bf16.mxu0 %v6619_v56  ;;  %3953 = vmatprep.subr.bf16.mxu1 %v6473_v44 }
 0x5d6   :  { %2397 = vmatpush1.bf16.msra.mxu0 %v6620_v2  ;;  %3954 = vmatpush3.bf16.msra.mxu1 %v6621_v15 }
 0x5d7   :  { %2398 = vmatprep.subr.bf16.mxu0 %v6622_v14  ;;  %3955 = vmatprep.subr.bf16.mxu1 %v6473_v44 }
 0x5da   :  { %2399 = vmatpush1.bf16.msra.mxu0 %v6623_v20  ;;  %3956 = vmatpush3.bf16.msra.mxu1 %v6624_v26  ;;  %v6627_v20 = vld [vmem:[#allocation16_spill] sm:$0xff] }
 0x5db   :  { %2505 = vmatprep.subr.bf16.mxu0 %v6625_v12  ;;  %3961 = vmatprep.subr.bf16.mxu1 %v6473_v44 }
 0x63d   :  { %v2122_v59 = vpop.f32.mrf.mxu1  ;;  %v2079_v29 = vpop.f32.mrf.mxu0 }
 0x63e   :  { %v2276_v26 = vadd.f32 %v6627_v20, %v2122_v59 }
 0x63f   :  { %v3899_v25 = vpop.f32.mrf.mxu1  ;;  %v2081_v57 = vpop.f32.mrf.mxu0 }
 0x641   :  { %v2125_v28 = vpop.f32.mrf.mxu1  ;;  %v2083_v11 = vpop.f32.mrf.mxu0 }
 0x643   :  { %v3900_v27 = vpop.f32.mrf.mxu1  ;;  %v2085_v32 = vpop.f32.mrf.mxu0 }
 0x644   :  { %v6628_v27 = vld [vmem:[#allocation19_spill] sm:$0xff] }
 0x65d   :  { %v2200_v36 = vpop.f32.mrf.mxu0  ;;  %v2243_v37 = vpop.f32.mrf.mxu1 }
 0x65e   :  { %v2250_v40 = vadd.f32 %v2200_v36, %v2079_v29  ;;  %v2274_v29 = vadd.f32 %v6628_v27, %v2243_v37 }
 0x65f   :  { %v2202_v7 = vpop.f32.mrf.mxu0  ;;  %v3919_v33 = vpop.f32.mrf.mxu1 }
 0x660   :  { %v2254_v9 = vadd.f32 %v2250_v40, %v5086_v22  ;;  %v2251_v42 = vadd.f32 %v2202_v7, %v2081_v57 }
 0x661   :  { %v2204_v6 = vpop.f32.mrf.mxu0  ;;  %v2246_v10 = vpop.f32.mrf.mxu1 }
 0x662   :  { %v2258_v58 = vmul.f32 0.5, %v2254_v9  ;;  %v2252_v30 = vadd.f32 %v2204_v6, %v2083_v11  ;;  %v2255_v17 = vadd.f32 %v2251_v42, %v6626_v46  ;;  %v2275_v7 = vadd.f32 %v6628_v27, %v2246_v10  ;;  %v2293_v9 = vld [vmem:[#allocation2 + $0xf0] sm:$0xff]  ;;  %v2294_v10 = vld [vmem:[#allocation2 + $0xf8] sm:$0xff] }
 0x663   :  { %v2206_v39 = vpop.f32.mrf.mxu0  ;;  %v3920_v60 = vpop.f32.mrf.mxu1 }
 0x664   :  { %4319 = vtanh.f32 %v2258_v58  ;;  %v2256_v19 = vadd.f32 %v2252_v30, %v5086_v22  ;;  %v2253_v21 = vadd.f32 %v2206_v39, %v2085_v32  ;;  %v2259_v56 = vmul.f32 0.5, %v2255_v17 }
 0x665   :  { %v2277_v32 = vadd.f32 %v6627_v20, %v2125_v28 }
 0x666   :  { %v2260_v5 = vmul.f32 0.5, %v2256_v19  ;;  %v2257_v54 = vadd.f32 %v2253_v21, %v6626_v46  ;;  %v2296_v19 = vld [vmem:[#allocation2 + $0x108] sm:$0xff] }
 0x668   :  { %4321 = vtanh.f32 %v2260_v5  ;;  %v2261_v2 = vmul.f32 0.5, %v2257_v54 }
 0x669   :  { %4323 = vtanh.f32 %v2259_v56 }
 0x66a   :  { %4325 = vtanh.f32 %v2261_v2 }
 0x671   :  { %v4320_v15 = vpop.eup %4319 }
 0x672   :  { %v2266_v14 = vadd.f32 1.0, %v4320_v15 }
 0x674   :  { %v2270_v12 = vmul.f32 0.5, %v2266_v14 }
 0x675   :  { %v4322_v25 = vpop.eup %4321 }
 0x676   :  { %v2278_v57 = vmul.f32 %v2276_v26, %v2270_v12  ;;  %v2268_v11 = vadd.f32 1.0, %v4322_v25  ;;  %v4324_v58 = vpop.eup %4323  ;;  %v2297_v26 = vld [vmem:[#allocation2 + $0x110] sm:$0xff] }
 0x677   :  { %v4326_v60 = vpop.eup %4325  ;;  %v2267_v5 = vadd.f32 1.0, %v4324_v58 }
 0x678   :  { %v2280_v36 = vadd.f32 %v2278_v57, %v2274_v29  ;;  %v2272_v40 = vmul.f32 0.5, %v2268_v11  ;;  %v2269_v54 = vadd.f32 1.0, %v4326_v60 }
 0x679   :  { %v2271_v15 = vmul.f32 0.5, %v2267_v5 }
 0x67a   :  { %4327 = vtanh.f32 %v2280_v36  ;;  %v2279_v33 = vmul.f32 %v2277_v32, %v2272_v40  ;;  %v2273_v25 = vmul.f32 0.5, %v2269_v54  ;;  %v5853_v54 = vld [vmem:[#allocation7 + $0xb0] ss:$12 sps:$4 sm:$0xff]  }
 0x67b   :  { %v2284_v11 = vsub.f32 1.0, %v2271_v15 }
 0x67c   :  { %v2281_v6 = vadd.f32 %v2279_v33, %v2275_v7  ;;  %v2285_v36 = vsub.f32 1.0, %v2273_v25 }
 0x67d   :  { %v2333_v30 = vpop.f32.mrf.mxu0  ;;  %v2376_v39 = vpop.f32.mrf.mxu1 }
 0x67e   :  { %4329 = vtanh.f32 %v2281_v6  ;;  %v2468_v59 = vadd.f32 %v2333_v30, %v2293_v9  ;;  %v2288_v9 = vmul.f32 %v2271_v15, %v5662_v43  ;;  %v2289_v6 = vmul.f32 %v2273_v25, %v5664_v18  ;;  %v2295_v18 = vld [vmem:[#allocation2 + $0x100] sm:$0xff] }
 0x67f   :  { %v2335_v42 = vpop.f32.mrf.mxu0  ;;  %v3939_v37 = vpop.f32.mrf.mxu1  ;;  %v5867_v25 = vld [vmem:[#allocation7 + $0x98] ss:$12 sps:$4 sm:$0xff]  }
 0x680   :  { %v2472_v21 = vmul.f32 0.5, %v2468_v59  ;;  %v2469_v29 = vadd.f32 %v2335_v42, %v2294_v10 }
 0x681   :  { %v2337_v28 = vpop.f32.mrf.mxu0  ;;  %v2379_v17 = vpop.f32.mrf.mxu1 }
 0x682   :  { %4331 = vtanh.f32 %v2472_v21  ;;  %v2470_v56 = vadd.f32 %v2337_v28, %v2296_v19  ;;  %v2473_v40 = vmul.f32 0.5, %v2469_v29  ;;  %v2488_v21 = vadd.f32 %v5525_v24, %v2376_v39  ;;  %v5850_v28 = vld [vmem:[#allocation7 + $0xa8] ss:$12 sps:$4 sm:$0xff]  }
 0x683   :  { %v3940_v2 = vpop.f32.mrf.mxu1  ;;  %v2339_v12 = vpop.f32.mrf.mxu0 }
 0x684   :  { %v2474_v14 = vmul.f32 0.5, %v2470_v56  ;;  %v2471_v32 = vadd.f32 %v2339_v12, %v2297_v26  ;;  %v5856_v2 = vld [vmem:[#allocation7 + $0x94] ss:$12 sps:$4 sm:$0xff]   ;;  %v2298_v26 = vld [vmem:[#allocation2 + $0x118] sm:$0xff] }
 0x685   :  { %v5864_v12 = vld [vmem:[#allocation7 + $0x90] ss:$12 sps:$4 sm:$0xff]  }
 0x686   :  { %4333 = vtanh.f32 %v2474_v14  ;;  %v2475_v58 = vmul.f32 0.5, %v2471_v32  ;;  %v2489_v14 = vadd.f32 %v5525_v24, %v2379_v17  ;;  %v5874_v24 = vld [vmem:[#allocation7 + $0x78] ss:$12 sps:$4 sm:$0xff]   ;;  %v5877_v17 = vld [vmem:[#allocation7 + $0x80] ss:$12 sps:$4 sm:$0xff]  }
 0x687   :  { %v4328_v57 = vpop.eup %4327  ;;  %4335 = vtanh.f32 %v2473_v40 }
 0x688   :  { %v2286_v7 = vmul.f32 %v4328_v57, %v2284_v11  ;;  %4337 = vtanh.f32 %v2475_v58  ;;  %v5870_v57 = vld [vmem:[#allocation7 + $0x7c] ss:$12 sps:$4 sm:$0xff]   ;;  %v5890_v58 = vld [vmem:[#allocation7 + $0x4c] ss:$12 sps:$4 sm:$0xff]  }
 0x68a   :  { %v5843_v59 = vadd.f32 %v2288_v9, %v2286_v7  ;;  %v5887_v9 = vld [vmem:[#allocation7 + $0x68] ss:$12 sps:$4 sm:$0xff]  }
 0x68b   :  { %v4330_v33 = vpop.eup %4329 }
 0x68c   :  { %v2287_v30 = vmul.f32 %v4330_v33, %v2285_v36  ;;  %v5880_v36 = vld [vmem:[#allocation7 + $0x64] ss:$12 sps:$4 sm:$0xff]   ;;  %v5884_v33 = vld [vmem:[#allocation7 + $0x60] ss:$12 sps:$4 sm:$0xff]  }
 0x68e   :  { %v5845_v60 = vadd.f32 %v2289_v6, %v2287_v30 }
 0x68f   :  { %v4332_v42 = vpop.eup %4331 }
 0x690   :  { %v2480_v37 = vadd.f32 1.0, %v4332_v42  ;;  %v2383_v19 = vpack.c.bf16 %v5845_v60, %v5843_v59  ;;  %v5894_v42 = vld [vmem:[#allocation7 + $0x48] ss:$12 sps:$4 sm:$0xff]  }
 0x692   :  { %v2484_v5 = vmul.f32 0.5, %v2480_v37  ;;  %2417 = vmatmul.mubr.bf16.vlgmr.msra.gmra.mxu0 %v2383_v19  ;;  %3958 = vmatmul.mubr.bf16.vlgmr.msra.gmra.mxu1 %v2383_v19  ;;  %v5897_v37 = vld [vmem:[#allocation7 + $0x50] ss:$12 sps:$4 sm:$0xff]  }
 0x693   :  { %v4334_v43 = vpop.eup %4333  ;;  %2506 = vmatpush1.bf16.msra.mxu0 %v5850_v28  ;;  %3962 = vmatpush3.bf16.msra.mxu1 %v5853_v54 }
 0x694   :  { %v2490_v56 = vmul.f32 %v2488_v21, %v2484_v5  ;;  %v2482_v10 = vadd.f32 1.0, %v4334_v43  ;;  %2507 = vmatprep.subr.bf16.mxu0 %v5856_v2  ;;  %3963 = vmatprep.subr.bf16.mxu1 %v6473_v44  ;;  %v4336_v32 = vpop.eup %4335  ;;  %v5900_v5 = vld [vmem:[#allocation7 + $0x34] ss:$12 sps:$4 sm:$0xff]  }
 0x695   :  { %2537 = vmatprep.mubr.bf16.mxu0 %v6474_v48  ;;  %3977 = vmatprep.mubr.msk.bf16.mxu1 %vm4671_vm0, %v6473_v44  ;;  %v4338_v40 = vpop.eup %4337  ;;  %v2481_v7 = vadd.f32 1.0, %v4336_v32  ;;  %v5916_v32 = vld [vmem:[#allocation7 + $0x18] ss:$12 sps:$4 sm:$0xff]  }
 0x696   :  { %v2492_v39 = vadd.f32 %v2490_v56, %v2295_v18  ;;  %v2486_v15 = vmul.f32 0.5, %v2482_v10  ;;  %v2483_v6 = vadd.f32 1.0, %v4338_v40  ;;  %v5904_v18 = vld [vmem:[#allocation7 + $0x30] ss:$12 sps:$4 sm:$0xff]   ;;  %v5907_v56 = vld [vmem:[#allocation7 + $0x38] ss:$12 sps:$4 sm:$0xff]  }
 0x697   :  { %2508 = vmatpush1.bf16.msra.mxu0 %v5864_v12  ;;  %3964 = vmatpush3.bf16.msra.mxu1 %v5867_v25  ;;  %v2485_v30 = vmul.f32 0.5, %v2481_v7  ;;  %v5919_v40 = vld [vmem:[#allocation7 + $0x20] ss:$12 sps:$4 sm:$0xff]   ;;  %v5922_v7 = vld [vmem:[#allocation7 + $0x4] ss:$12 sps:$4 sm:$0xff]  }
 0x698   :  { %4339 = vtanh.f32 %v2492_v39  ;;  %v2491_v29 = vmul.f32 %v2489_v14, %v2486_v15  ;;  %2509 = vmatprep.subr.bf16.mxu0 %v5870_v57  ;;  %3965 = vmatprep.subr.bf16.mxu1 %v6473_v44  ;;  %v2487_v19 = vmul.f32 0.5, %v2483_v6  ;;  %v5910_v15 = vld [vmem:[#allocation7 + $0x1c] ss:$12 sps:$4 sm:$0xff]  }
 0x699   :  { %v2496_v43 = vsub.f32 1.0, %v2485_v30 }
 0x69a   :  { %v2493_v11 = vadd.f32 %v2491_v29, %v2298_v26  ;;  %v2497_v39 = vsub.f32 1.0, %v2487_v19  ;;  %v2500_v26 = vmul.f32 %v2485_v30, %v5703_v4  ;;  %v5932_v30 = vld [vmem:[#allocation7] ss:$12 sps:$4 sm:$0xff]  }
 0x69b   :  { %2510 = vmatpush1.bf16.msra.mxu0 %v5874_v24  ;;  %3966 = vmatpush3.bf16.msra.mxu1 %v5877_v17 }
 0x69c   :  { %4341 = vtanh.f32 %v2493_v11  ;;  %2511 = vmatprep.subr.bf16.mxu0 %v5880_v36  ;;  %3967 = vmatprep.subr.bf16.mxu1 %v6473_v44  ;;  %v2501_v11 = vmul.f32 %v2487_v19, %v5705_v13  ;;  %v5935_v19 = vld [vmem:[#allocation7 + $0x8] ss:$12 sps:$4 sm:$0xff]  }
 0x69f   :  { %2512 = vmatpush1.bf16.msra.mxu0 %v5884_v33  ;;  %3968 = vmatpush3.bf16.msra.mxu1 %v5887_v9 }
 0x6a0   :  { %2513 = vmatprep.subr.bf16.mxu0 %v5890_v58  ;;  %3969 = vmatprep.subr.bf16.mxu1 %v6473_v44 }
 0x6a3   :  { %2514 = vmatpush1.bf16.msra.mxu0 %v5894_v42  ;;  %3970 = vmatpush3.bf16.msra.mxu1 %v5897_v37 }
 0x6a4   :  { %2515 = vmatprep.subr.bf16.mxu0 %v5900_v5  ;;  %3971 = vmatprep.subr.bf16.mxu1 %v6473_v44 }
 0x6a5   :  { %v4340_v21 = vpop.eup %4339 }
 0x6a6   :  { %v2498_v10 = vmul.f32 %v4340_v21, %v2496_v43  ;;  %v5968_v21 = vld [vmem:[#allocation5 + $0x20] ss:$12 sps:$4 sm:$0xff]   ;;  %v5974_v43 = vld [vmem:[#allocation5 + $0x8] ss:$12 sps:$4 sm:$0xff]  }
 0x6a7   :  { %2516 = vmatpush1.bf16.msra.mxu0 %v5904_v18  ;;  %3972 = vmatpush3.bf16.msra.mxu1 %v5907_v56  ;;  %6629 = vst [vmem:[#allocation33_spill] sm:$0xff] %v5968_v21  ;;  %6630 = vst [vmem:[#allocation34_spill] sm:$0xff] %v5974_v43 }
 0x6a8   :  { %2517 = vmatprep.subr.bf16.mxu0 %v5910_v15  ;;  %3973 = vmatprep.subr.bf16.mxu1 %v6473_v44  ;;  %v5926_v6 = vadd.f32 %v2500_v26, %v2498_v10  ;;  %v5977_v10 = vld [vmem:[#allocation8 + $0xac] ss:$12 sps:$4 sm:$0xff]   ;;  %v5987_v26 = vld [vmem:[#allocation8 + $0x94] ss:$12 sps:$4 sm:$0xff]  }
 0x6a9   :  { %v4342_v14 = vpop.eup %4341  ;;  %6631 = vst [vmem:[#allocation35_spill] sm:$0xff] %v5977_v10  ;;  %6634 = vst [vmem:[#allocation38_spill] sm:$0xff] %v5987_v26 }
 0x6aa   :  { %v2499_v29 = vmul.f32 %v4342_v14, %v2497_v39  ;;  %v5981_v39 = vld [vmem:[#allocation8 + $0xa8] ss:$12 sps:$4 sm:$0xff]   ;;  %v5984_v14 = vld [vmem:[#allocation8 + $0xb0] ss:$12 sps:$4 sm:$0xff]  }
 0x6ab   :  { %2518 = vmatpush1.bf16.msra.mxu0 %v5916_v32  ;;  %3974 = vmatpush3.bf16.msra.mxu1 %v5919_v40  ;;  %6632 = vst [vmem:[#allocation36_spill] sm:$0xff] %v5981_v39  ;;  %6633 = vst [vmem:[#allocation37_spill] sm:$0xff] %v5984_v14 }
 0x6ac   :  { %2519 = vmatprep.subr.bf16.mxu0 %v5922_v7  ;;  %3975 = vmatprep.subr.bf16.mxu1 %v6473_v44  ;;  %v5928_v4 = vadd.f32 %v2501_v11, %v2499_v29  ;;  %v5994_v29 = vld [vmem:[#allocation8 + $0x90] ss:$12 sps:$4 sm:$0xff]   ;;  %v5997_v11 = vld [vmem:[#allocation8 + $0x98] ss:$12 sps:$4 sm:$0xff]  }
 0x6ad   :  { %6635 = vst [vmem:[#allocation39_spill] sm:$0xff] %v5994_v29  ;;  %6636 = vst [vmem:[#allocation40_spill] sm:$0xff] %v5997_v11 }
 0x6ae   :  { %v2504_v13 = vpack.c.bf16 %v5928_v4, %v5926_v6 }
 0x6af   :  { %2520 = vmatpush1.bf16.msra.mxu0 %v5932_v30  ;;  %3976 = vmatpush3.bf16.msra.mxu1 %v5935_v19 }
 0x6b0   :  { %2638 = vmatprep.subr.bf16.mxu0 %v5713_v45  ;;  %3981 = vmatprep.subr.bf16.mxu1 %v6473_v44 }
 0x6b2   :  { %2538 = vmatmul.mubr.bf16.vlgmr.msra.gmra.mxu0 %v2504_v13  ;;  %3978 = vmatmul.mubr.bf16.vlgmr.msra.gmra.mxu1 %v2504_v13 }
 0x6b3   :  { %2639 = vmatpush1.bf16.msra.mxu0 %v5719_v31  ;;  %3982 = vmatpush3.bf16.msra.mxu1 %v5722_v34 }
 0x6b4   :  { %2640 = vmatprep.subr.bf16.mxu0 %v5725_v35  ;;  %3983 = vmatprep.subr.bf16.mxu1 %v6473_v44 }
 0x6b5   :  { %2670 = vmatprep.mubr.bf16.mxu0 %v6474_v48  ;;  %3997 = vmatprep.mubr.msk.bf16.mxu1 %vm4671_vm0, %v6473_v44 }
 0x6b7   :  { %2641 = vmatpush1.bf16.msra.mxu0 %v5732_v41  ;;  %3984 = vmatpush3.bf16.msra.mxu1 %v5735_v8 }
 0x6b8   :  { %2642 = vmatprep.subr.bf16.mxu0 %v5738_v63  ;;  %3985 = vmatprep.subr.bf16.mxu1 %v6473_v44 }
 0x6bb   :  { %2643 = vmatpush1.bf16.msra.mxu0 %v5742_v62  ;;  %3986 = vmatpush3.bf16.msra.mxu1 %v5745_v53 }
 0x6bc   :  { %2644 = vmatprep.subr.bf16.mxu0 %v5748_v52  ;;  %3987 = vmatprep.subr.bf16.mxu1 %v6473_v44 }
 0x6bf   :  { %2645 = vmatpush1.bf16.msra.mxu0 %v5752_v0  ;;  %3988 = vmatpush3.bf16.msra.mxu1 %v5755_v47 }
 0x6c0   :  { %2646 = vmatprep.subr.bf16.mxu0 %v5758_v55  ;;  %3989 = vmatprep.subr.bf16.mxu1 %v6473_v44 }
 0x6c3   :  { %2647 = vmatpush1.bf16.msra.mxu0 %v5762_v1  ;;  %3990 = vmatpush3.bf16.msra.mxu1 %v5765_v23 }
 0x6c4   :  { %2648 = vmatprep.subr.bf16.mxu0 %v5768_v51  ;;  %3991 = vmatprep.subr.bf16.mxu1 %v6473_v44 }
 0x6c7   :  { %2649 = vmatpush1.bf16.msra.mxu0 %v5772_v3  ;;  %3992 = vmatpush3.bf16.msra.mxu1 %v5775_v61 }
 0x6c8   :  { %2650 = vmatprep.subr.bf16.mxu0 %v5778_v50  ;;  %3993 = vmatprep.subr.bf16.mxu1 %v6473_v44 }
 0x6cb   :  { %2651 = vmatpush1.bf16.msra.mxu0 %v5782_v49  ;;  %3994 = vmatpush3.bf16.msra.mxu1 %v5968_v21 }
 0x6cc   :  { %2652 = vmatprep.subr.bf16.mxu0 %v5786_v16  ;;  %3995 = vmatprep.subr.bf16.mxu1 %v6473_v44 }
 0x6cf   :  { %2653 = vmatpush1.bf16.msra.mxu0 %v5790_v38  ;;  %3996 = vmatpush3.bf16.msra.mxu1 %v5974_v43 }
 0x6d0   :  { %2723 = vmatprep.subr.bf16.mxu0 %v5977_v10  ;;  %4001 = vmatprep.subr.bf16.mxu1 %v6473_v44 }
 0x6d2   :  { %2671 = vmatmul.mubr.bf16.vlgmr.msra.gmra.mxu0 %v2504_v13  ;;  %3998 = vmatmul.mubr.bf16.vlgmr.msra.gmra.mxu1 %v2504_v13  ;;  %v6000_v13 = vld [vmem:[#allocation8 + $0x7c] ss:$12 sps:$4 sm:$0xff]  }
 0x6d3   :  { %2724 = vmatpush1.bf16.msra.mxu0 %v5981_v39  ;;  %4002 = vmatpush3.bf16.msra.mxu1 %v5984_v14  ;;  %6637 = vst [vmem:[#allocation41_spill] sm:$0xff] %v6000_v13  ;;  %v6007_v14 = vld [vmem:[#allocation8 + $0x80] ss:$12 sps:$4 sm:$0xff]   ;;  %v6010_v39 = vld [vmem:[#allocation8 + $0x64] ss:$12 sps:$4 sm:$0xff]  }
 0x6d4   :  { %2725 = vmatprep.subr.bf16.mxu0 %v5987_v26  ;;  %4003 = vmatprep.subr.bf16.mxu1 %v6473_v44  ;;  %v6004_v26 = vld [vmem:[#allocation8 + $0x78] ss:$12 sps:$4 sm:$0xff]   ;;  %6639 = vst [vmem:[#allocation43_spill] sm:$0xff] %v6007_v14  ;;  %6640 = vst [vmem:[#allocation44_spill] sm:$0xff] %v6010_v39 }
 0x6d5   :  { %2755 = vmatprep.mubr.bf16.mxu0 %v6474_v48  ;;  %4017 = vmatprep.mubr.msk.bf16.mxu1 %vm4671_vm0, %v6473_v44  ;;  %6638 = vst [vmem:[#allocation42_spill] sm:$0xff] %v6004_v26 }
 0x6d7   :  { %2726 = vmatpush1.bf16.msra.mxu0 %v5994_v29  ;;  %4004 = vmatpush3.bf16.msra.mxu1 %v5997_v11  ;;  %v6014_v11 = vld [vmem:[#allocation8 + $0x60] ss:$12 sps:$4 sm:$0xff]  }
 0x6d8   :  { %2727 = vmatprep.subr.bf16.mxu0 %v6000_v13  ;;  %4005 = vmatprep.subr.bf16.mxu1 %v6473_v44  ;;  %6641 = vst [vmem:[#allocation45_spill] sm:$0xff] %v6014_v11  ;;  %v6017_v13 = vld [vmem:[#allocation8 + $0x68] ss:$12 sps:$4 sm:$0xff]   ;;  %v6020_v29 = vld [vmem:[#allocation8 + $0x4c] ss:$12 sps:$4 sm:$0xff]  }
 0x6d9   :  { %6642 = vst [vmem:[#allocation46_spill] sm:$0xff] %v6017_v13  ;;  %6643 = vst [vmem:[#allocation47_spill] sm:$0xff] %v6020_v29 }
 0x6db   :  { %2728 = vmatpush1.bf16.msra.mxu0 %v6004_v26  ;;  %4006 = vmatpush3.bf16.msra.mxu1 %v6007_v14  ;;  %v6024_v14 = vld [vmem:[#allocation8 + $0x48] ss:$12 sps:$4 sm:$0xff]  }
 0x6dc   :  { %2729 = vmatprep.subr.bf16.mxu0 %v6010_v39  ;;  %4007 = vmatprep.subr.bf16.mxu1 %v6473_v44  ;;  %6644 = vst [vmem:[#allocation48_spill] sm:$0xff] %v6024_v14  ;;  %v6027_v39 = vld [vmem:[#allocation8 + $0x50] ss:$12 sps:$4 sm:$0xff]   ;;  %v6030_v26 = vld [vmem:[#allocation8 + $0x34] ss:$12 sps:$4 sm:$0xff]  }
 0x6dd   :  { %6645 = vst [vmem:[#allocation49_spill] sm:$0xff] %v6027_v39  ;;  %6646 = vst [vmem:[#allocation50_spill] sm:$0xff] %v6030_v26 }
 0x6df   :  { %2730 = vmatpush1.bf16.msra.mxu0 %v6014_v11  ;;  %4008 = vmatpush3.bf16.msra.mxu1 %v6017_v13  ;;  %v6034_v13 = vld [vmem:[#allocation8 + $0x30] ss:$12 sps:$4 sm:$0xff]  }
 0x6e0   :  { %2731 = vmatprep.subr.bf16.mxu0 %v6020_v29  ;;  %4009 = vmatprep.subr.bf16.mxu1 %v6473_v44  ;;  %6647 = vst [vmem:[#allocation51_spill] sm:$0xff] %v6034_v13  ;;  %v6037_v29 = vld [vmem:[#allocation8 + $0x38] ss:$12 sps:$4 sm:$0xff]   ;;  %v6040_v11 = vld [vmem:[#allocation8 + $0x1c] ss:$12 sps:$4 sm:$0xff]  }
 0x6e1   :  { %6648 = vst [vmem:[#allocation52_spill] sm:$0xff] %v6037_v29  ;;  %6649 = vst [vmem:[#allocation53_spill] sm:$0xff] %v6040_v11 }
 0x6e3   :  { %2732 = vmatpush1.bf16.msra.mxu0 %v6024_v14  ;;  %4010 = vmatpush3.bf16.msra.mxu1 %v6027_v39  ;;  %v6044_v39 = vld [vmem:[#allocation8 + $0x18] ss:$12 sps:$4 sm:$0xff]  }
 0x6e4   :  { %2733 = vmatprep.subr.bf16.mxu0 %v6030_v26  ;;  %4011 = vmatprep.subr.bf16.mxu1 %v6473_v44  ;;  %6650 = vst [vmem:[#allocation54_spill] sm:$0xff] %v6044_v39  ;;  %v6047_v26 = vld [vmem:[#allocation8 + $0x20] ss:$12 sps:$4 sm:$0xff]   ;;  %v6050_v14 = vld [vmem:[#allocation8 + $0x4] ss:$12 sps:$4 sm:$0xff]  }
 0x6e5   :  { %6651 = vst [vmem:[#allocation55_spill] sm:$0xff] %v6047_v26  ;;  %6652 = vst [vmem:[#allocation56_spill] sm:$0xff] %v6050_v14 }
 0x6e7   :  { %2734 = vmatpush1.bf16.msra.mxu0 %v6034_v13  ;;  %4012 = vmatpush3.bf16.msra.mxu1 %v6037_v29  ;;  %v6054_v29 = vld [vmem:[#allocation8] ss:$12 sps:$4 sm:$0xff]  }
 0x6e8   :  { %2735 = vmatprep.subr.bf16.mxu0 %v6040_v11  ;;  %4013 = vmatprep.subr.bf16.mxu1 %v6473_v44  ;;  %6653 = vst [vmem:[#allocation57_spill] sm:$0xff] %v6054_v29  ;;  %v6057_v11 = vld [vmem:[#allocation8 + $0x8] ss:$12 sps:$4 sm:$0xff]   ;;  %v6060_v13 = vld [vmem:[#allocation7 + $0xac] ss:$12 sps:$4 sm:$0xff]  }
 0x6e9   :  { %6654 = vst [vmem:[#allocation15_spill] sm:$0xff] %v6057_v11  ;;  %6655 = vst [vmem:[#allocation16_spill] sm:$0xff] %v6060_v13 }
 0x6eb   :  { %2736 = vmatpush1.bf16.msra.mxu0 %v6044_v39  ;;  %4014 = vmatpush3.bf16.msra.mxu1 %v6047_v26 }
 0x6ec   :  { %2737 = vmatprep.subr.bf16.mxu0 %v6050_v14  ;;  %4015 = vmatprep.subr.bf16.mxu1 %v6473_v44 }
 0x6ef   :  { %2738 = vmatpush1.bf16.msra.mxu0 %v6054_v29  ;;  %4016 = vmatpush3.bf16.msra.mxu1 %v6057_v11 }
 0x6f0   :  { %2844 = vmatprep.subr.bf16.mxu0 %v6060_v13  ;;  %4021 = vmatprep.subr.bf16.mxu1 %v6473_v44 }
 0x752   :  { %v2461_v26 = vpop.f32.mrf.mxu1  ;;  %v2418_v43 = vpop.f32.mrf.mxu0 }
 0x754   :  { %v3959_v39 = vpop.f32.mrf.mxu1  ;;  %v2420_v38 = vpop.f32.mrf.mxu0 }
 0x756   :  { %v2464_v10 = vpop.f32.mrf.mxu1  ;;  %v2422_v16 = vpop.f32.mrf.mxu0 }
 0x758   :  { %v3960_v14 = vpop.f32.mrf.mxu1  ;;  %v2424_v21 = vpop.f32.mrf.mxu0 }
 0x772   :  { %v2539_v49 = vpop.f32.mrf.mxu0  ;;  %v2582_v29 = vpop.f32.mrf.mxu1 }
 0x773   :  { %v2589_v50 = vadd.f32 %v2539_v49, %v2418_v43 }
 0x774   :  { %v2541_v61 = vpop.f32.mrf.mxu0  ;;  %v3979_v3 = vpop.f32.mrf.mxu1 }
 0x775   :  { %v2593_v11 = vadd.f32 %v2589_v50, %v5086_v22  ;;  %v2590_v39 = vadd.f32 %v2541_v61, %v2420_v38  ;;  %v2613_v61 = vadd.f32 %v6628_v27, %v2582_v29 }
 0x776   :  { %v2543_v51 = vpop.f32.mrf.mxu0  ;;  %v2585_v23 = vpop.f32.mrf.mxu1 }
 0x777   :  { %v2597_v13 = vmul.f32 0.5, %v2593_v11  ;;  %v2591_v1 = vadd.f32 %v2543_v51, %v2422_v16  ;;  %v2594_v53 = vadd.f32 %v2590_v39, %v6626_v46  ;;  %v2615_v51 = vadd.f32 %v6627_v20, %v2461_v26  ;;  %v2632_v11 = vld [vmem:[#allocation2 + $0x120] sm:$0xff] }
 0x778   :  { %v2545_v55 = vpop.f32.mrf.mxu0  ;;  %v3980_v47 = vpop.f32.mrf.mxu1 }
 0x779   :  { %4343 = vtanh.f32 %v2597_v13  ;;  %v2595_v14 = vadd.f32 %v2591_v1, %v5086_v22  ;;  %v2592_v52 = vadd.f32 %v2545_v55, %v2424_v21  ;;  %v2598_v3 = vmul.f32 0.5, %v2594_v53 }
 0x77a   :  { %v2616_v55 = vadd.f32 %v6627_v20, %v2464_v10  ;;  %v2614_v53 = vadd.f32 %v6628_v27, %v2585_v23  ;;  %v2633_v23 = vld [vmem:[#allocation2 + $0x128] sm:$0xff] }
 0x77b   :  { %v2599_v0 = vmul.f32 0.5, %v2595_v14  ;;  %v2596_v49 = vadd.f32 %v2592_v52, %v6626_v46 }
 0x77d   :  { %4345 = vtanh.f32 %v2599_v0  ;;  %v2600_v43 = vmul.f32 0.5, %v2596_v49 }
 0x77e   :  { %4347 = vtanh.f32 %v2598_v3 }
 0x77f   :  { %4349 = vtanh.f32 %v2600_v43  ;;  %v2635_v43 = vld [vmem:[#allocation2 + $0x138] sm:$0xff] }
 0x786   :  { %v4344_v50 = vpop.eup %4343 }
 0x787   :  { %v2605_v62 = vadd.f32 1.0, %v4344_v50 }
 0x789   :  { %v2609_v47 = vmul.f32 0.5, %v2605_v62 }
 0x78a   :  { %v4346_v16 = vpop.eup %4345 }
 0x78b   :  { %v2617_v1 = vmul.f32 %v2615_v51, %v2609_v47  ;;  %v2607_v38 = vadd.f32 1.0, %v4346_v16  ;;  %v4348_v39 = vpop.eup %4347 }
 0x78c   :  { %v4350_v26 = vpop.eup %4349  ;;  %v2606_v50 = vadd.f32 1.0, %v4348_v39 }
 0x78d   :  { %v2619_v21 = vadd.f32 %v2617_v1, %v2613_v61  ;;  %v2611_v0 = vmul.f32 0.5, %v2607_v38  ;;  %v2608_v47 = vadd.f32 1.0, %v4350_v26  ;;  %v2636_v38 = vld [vmem:[#allocation2 + $0x140] sm:$0xff] }
 0x78e   :  { %v2610_v61 = vmul.f32 0.5, %v2606_v50 }
 0x78f   :  { %4351 = vtanh.f32 %v2619_v21  ;;  %v2618_v52 = vmul.f32 %v2616_v55, %v2611_v0  ;;  %v2612_v21 = vmul.f32 0.5, %v2608_v47 }
 0x790   :  { %v2627_v26 = vmul.f32 %v2610_v61, %v5843_v59  ;;  %v6083_v59 = vld [vmem:[%s6277_s1] ss:$0 sm:$0xff] }
 0x791   :  { %v2620_v13 = vadd.f32 %v2618_v52, %v2614_v53  ;;  %v2623_v52 = vsub.f32 1.0, %v2610_v61  ;;  %v2634_v61 = vld [vmem:[#allocation2 + $0x130] sm:$0xff] }
 0x792   :  { %v2672_v14 = vpop.f32.mrf.mxu0  ;;  %v2715_v49 = vpop.f32.mrf.mxu1 }
 0x793   :  { %4353 = vtanh.f32 %v2620_v13  ;;  %v2807_v62 = vadd.f32 %v2672_v14, %v2632_v11  ;;  %v2624_v13 = vsub.f32 1.0, %v2612_v21 }
 0x794   :  { %v2674_v3 = vpop.f32.mrf.mxu0  ;;  %v3999_v29 = vpop.f32.mrf.mxu1 }
 0x795   :  { %v2811_v51 = vmul.f32 0.5, %v2807_v62  ;;  %v2808_v0 = vadd.f32 %v2674_v3, %v2633_v23  ;;  %v2628_v29 = vmul.f32 %v2612_v21, %v5845_v60  ;;  %v2827_v60 = vadd.f32 %v6083_v59, %v2715_v49 }
 0x796   :  { %v2676_v20 = vpop.f32.mrf.mxu0  ;;  %v2718_v10 = vpop.f32.mrf.mxu1 }
 0x797   :  { %4355 = vtanh.f32 %v2811_v51  ;;  %v2809_v16 = vadd.f32 %v2676_v20, %v2635_v43  ;;  %v2812_v39 = vmul.f32 0.5, %v2808_v0  ;;  %v2828_v21 = vadd.f32 %v6083_v59, %v2718_v10  ;;  %v2637_v0 = vld [vmem:[#allocation2 + $0x148] sm:$0xff] }
 0x798   :  { %v4000_v27 = vpop.f32.mrf.mxu1  ;;  %v2678_v55 = vpop.f32.mrf.mxu0 }
 0x799   :  { %v2813_v1 = vmul.f32 0.5, %v2809_v16  ;;  %v2810_v11 = vadd.f32 %v2678_v55, %v2636_v38 }
 0x79b   :  { %4357 = vtanh.f32 %v2813_v1  ;;  %v2814_v43 = vmul.f32 0.5, %v2810_v11 }
 0x79c   :  { %v4352_v53 = vpop.eup %4351  ;;  %4359 = vtanh.f32 %v2812_v39 }
 0x79d   :  { %v2625_v14 = vmul.f32 %v4352_v53, %v2623_v52  ;;  %4361 = vtanh.f32 %v2814_v43 }
 0x79f   :  { %v6074_v50 = vadd.f32 %v2627_v26, %v2625_v14 }
 0x7a0   :  { %v4354_v62 = vpop.eup %4353 }
 0x7a1   :  { %v2626_v51 = vmul.f32 %v4354_v62, %v2624_v13 }
 0x7a3   :  { %v6076_v20 = vadd.f32 %v2628_v29, %v2626_v51 }
 0x7a4   :  { %v4356_v3 = vpop.eup %4355 }
 0x7a5   :  { %v2819_v47 = vadd.f32 1.0, %v4356_v3  ;;  %v2722_v16 = vpack.c.bf16 %v6076_v20, %v6074_v50 }
 0x7a7   :  { %v2823_v23 = vmul.f32 0.5, %v2819_v47  ;;  %2756 = vmatmul.mubr.bf16.vlgmr.msra.gmra.mxu0 %v2722_v16  ;;  %4018 = vmatmul.mubr.bf16.vlgmr.msra.gmra.mxu1 %v2722_v16 }
 0x7a8   :  { %v4358_v27 = vpop.eup %4357  ;;  %2845 = vmatpush1.bf16.msra.mxu0 %v5850_v28  ;;  %4022 = vmatpush3.bf16.msra.mxu1 %v5853_v54 }
 0x7a9   :  { %v2829_v1 = vmul.f32 %v2827_v60, %v2823_v23  ;;  %v2821_v38 = vadd.f32 1.0, %v4358_v27  ;;  %2846 = vmatprep.subr.bf16.mxu0 %v5856_v2  ;;  %4023 = vmatprep.subr.bf16.mxu1 %v6473_v44  ;;  %v4360_v11 = vpop.eup %4359 }
 0x7aa   :  { %2876 = vmatprep.mubr.bf16.mxu0 %v6474_v48  ;;  %4037 = vmatprep.mubr.msk.bf16.mxu1 %vm4671_vm0, %v6473_v44  ;;  %v4362_v10 = vpop.eup %4361  ;;  %v2820_v13 = vadd.f32 1.0, %v4360_v11  ;;  %v6673_v11 = vld [vmem:[#allocation35_spill] sm:$0xff] }
 0x7ab   :  { %v2831_v49 = vadd.f32 %v2829_v1, %v2634_v61  ;;  %v2825_v55 = vmul.f32 0.5, %v2821_v38  ;;  %v2822_v39 = vadd.f32 1.0, %v4362_v10  ;;  %v6665_v1 = vld [vmem:[#allocation27_spill] sm:$0xff]  ;;  %v6666_v38 = vld [vmem:[#allocation28_spill] sm:$0xff] }
 0x7ac   :  { %2847 = vmatpush1.bf16.msra.mxu0 %v5864_v12  ;;  %4024 = vmatpush3.bf16.msra.mxu1 %v5867_v25  ;;  %v2824_v14 = vmul.f32 0.5, %v2820_v13  ;;  %v6674_v10 = vld [vmem:[#allocation36_spill] sm:$0xff]  ;;  %v6675_v13 = vld [vmem:[#allocation37_spill] sm:$0xff] }
 0x7ad   :  { %4363 = vtanh.f32 %v2831_v49  ;;  %v2830_v53 = vmul.f32 %v2828_v21, %v2825_v55  ;;  %2848 = vmatprep.subr.bf16.mxu0 %v5870_v57  ;;  %4025 = vmatprep.subr.bf16.mxu1 %v6473_v44  ;;  %v2826_v62 = vmul.f32 0.5, %v2822_v39  ;;  %v6667_v49 = vld [vmem:[#allocation31_spill] sm:$0xff]  ;;  %v6668_v55 = vld [vmem:[#allocation29_spill] sm:$0xff]  ;;  %v6676_v39 = vld [vmem:[#allocation38_spill] sm:$0xff] }
 0x7ae   :  { %v2835_v29 = vsub.f32 1.0, %v2824_v14  ;;  %v2839_v47 = vmul.f32 %v2824_v14, %v5926_v6  ;;  %v6660_v6 = vld [vmem:[#allocation22_spill] sm:$0xff]  ;;  %v6669_v21 = vld [vmem:[#allocation33_spill] sm:$0xff]  ;;  %v6677_v14 = vld [vmem:[#allocation39_spill] sm:$0xff] }
 0x7af   :  { %v2832_v52 = vadd.f32 %v2830_v53, %v2637_v0  ;;  %v2836_v51 = vsub.f32 1.0, %v2826_v62  ;;  %v2840_v23 = vmul.f32 %v2826_v62, %v5928_v4  ;;  %v6661_v4 = vld [vmem:[#allocation23_spill] sm:$0xff]  ;;  %v6670_v0 = vld [vmem:[#allocation30_spill] sm:$0xff]  ;;  %v6671_v53 = vld [vmem:[#allocation32_spill] sm:$0xff] }
 0x7b0   :  { %2849 = vmatpush1.bf16.msra.mxu0 %v5874_v24  ;;  %4026 = vmatpush3.bf16.msra.mxu1 %v5877_v17  ;;  %v6678_v62 = vld [vmem:[#allocation40_spill] sm:$0xff] }
 0x7b1   :  { %4365 = vtanh.f32 %v2832_v52  ;;  %2850 = vmatprep.subr.bf16.mxu0 %v5880_v36  ;;  %4027 = vmatprep.subr.bf16.mxu1 %v6473_v44  ;;  %v6672_v52 = vld [vmem:[#allocation34_spill] sm:$0xff] }
 0x7b4   :  { %2851 = vmatpush1.bf16.msra.mxu0 %v5884_v33  ;;  %4028 = vmatpush3.bf16.msra.mxu1 %v5887_v9 }
 0x7b5   :  { %2852 = vmatprep.subr.bf16.mxu0 %v5890_v58  ;;  %4029 = vmatprep.subr.bf16.mxu1 %v6473_v44 }
 0x7b8   :  { %2853 = vmatpush1.bf16.msra.mxu0 %v5894_v42  ;;  %4030 = vmatpush3.bf16.msra.mxu1 %v5897_v37 }
 0x7b9   :  { %2854 = vmatprep.subr.bf16.mxu0 %v5900_v5  ;;  %4031 = vmatprep.subr.bf16.mxu1 %v6473_v44 }
 0x7ba   :  { %v4364_v26 = vpop.eup %4363 }
 0x7bb   :  { %v2837_v43 = vmul.f32 %v4364_v26, %v2835_v29  ;;  %v6679_v26 = vld [vmem:[#allocation41_spill] sm:$0xff]  ;;  %v6680_v29 = vld [vmem:[#allocation42_spill] sm:$0xff] }
 0x7bc   :  { %2855 = vmatpush1.bf16.msra.mxu0 %v5904_v18  ;;  %4032 = vmatpush3.bf16.msra.mxu1 %v5907_v56 }
 0x7bd   :  { %2856 = vmatprep.subr.bf16.mxu0 %v5910_v15  ;;  %4033 = vmatprep.subr.bf16.mxu1 %v6473_v44  ;;  %v6120_v60 = vadd.f32 %v2839_v47, %v2837_v43  ;;  %v6681_v43 = vld [vmem:[#allocation43_spill] sm:$0xff]  ;;  %v6684_v47 = vld [vmem:[#allocation46_spill] sm:$0xff] }
 0x7be   :  { %v4366_v3 = vpop.eup %4365 }
 0x7bf   :  { %v2838_v16 = vmul.f32 %v4366_v3, %v2836_v51  ;;  %v6682_v51 = vld [vmem:[#allocation44_spill] sm:$0xff]  ;;  %v6683_v3 = vld [vmem:[#allocation45_spill] sm:$0xff] }
 0x7c0   :  { %2857 = vmatpush1.bf16.msra.mxu0 %v5916_v32  ;;  %4034 = vmatpush3.bf16.msra.mxu1 %v5919_v40 }
 0x7c1   :  { %2858 = vmatprep.subr.bf16.mxu0 %v5922_v7  ;;  %4035 = vmatprep.subr.bf16.mxu1 %v6473_v44  ;;  %v6122_v27 = vadd.f32 %v2840_v23, %v2838_v16  ;;  %v6685_v16 = vld [vmem:[#allocation47_spill] sm:$0xff]  ;;  %v6686_v23 = vld [vmem:[#allocation48_spill] sm:$0xff] }
 0x7c3   :  { %v2843_v61 = vpack.c.bf16 %v6122_v27, %v6120_v60 }
 0x7c4   :  { %2859 = vmatpush1.bf16.msra.mxu0 %v5932_v30  ;;  %4036 = vmatpush3.bf16.msra.mxu1 %v5935_v19 }
 0x7c5   :  { %2977 = vmatprep.subr.bf16.mxu0 %v5713_v45  ;;  %4041 = vmatprep.subr.bf16.mxu1 %v6473_v44  ;;  %v6656_v45 = vld [vmem:[#allocation17_spill] sm:$0xff] }
 0x7c7   :  { %2877 = vmatmul.mubr.bf16.vlgmr.msra.gmra.mxu0 %v2843_v61  ;;  %4038 = vmatmul.mubr.bf16.vlgmr.msra.gmra.mxu1 %v2843_v61 }
 0x7c8   :  { %2978 = vmatpush1.bf16.msra.mxu0 %v5719_v31  ;;  %4042 = vmatpush3.bf16.msra.mxu1 %v5722_v34  ;;  %v6657_v31 = vld [vmem:[#allocation18_spill] sm:$0xff]  ;;  %v6658_v34 = vld [vmem:[#allocation20_spill] sm:$0xff] }
 0x7c9   :  { %2979 = vmatprep.subr.bf16.mxu0 %v5725_v35  ;;  %4043 = vmatprep.subr.bf16.mxu1 %v6473_v44  ;;  %v6659_v35 = vld [vmem:[#allocation21_spill] sm:$0xff] }
 0x7ca   :  { %3009 = vmatprep.mubr.bf16.mxu0 %v6474_v48  ;;  %4057 = vmatprep.mubr.msk.bf16.mxu1 %vm4671_vm0, %v6473_v44 }
 0x7cc   :  { %2980 = vmatpush1.bf16.msra.mxu0 %v5732_v41  ;;  %4044 = vmatpush3.bf16.msra.mxu1 %v5735_v8  ;;  %v6662_v41 = vld [vmem:[#allocation24_spill] sm:$0xff]  ;;  %v6663_v8 = vld [vmem:[#allocation25_spill] sm:$0xff] }
 0x7cd   :  { %2981 = vmatprep.subr.bf16.mxu0 %v5738_v63  ;;  %4045 = vmatprep.subr.bf16.mxu1 %v6473_v44  ;;  %v6664_v63 = vld [vmem:[#allocation26_spill] sm:$0xff] }
 0x7d0   :  { %2982 = vmatpush1.bf16.msra.mxu0 %v6656_v45  ;;  %4046 = vmatpush3.bf16.msra.mxu1 %v6657_v31  ;;  %v6688_v45 = vld [vmem:[#allocation50_spill] sm:$0xff]  ;;  %v6689_v31 = vld [vmem:[#allocation51_spill] sm:$0xff] }
 0x7d1   :  { %2983 = vmatprep.subr.bf16.mxu0 %v6658_v34  ;;  %4047 = vmatprep.subr.bf16.mxu1 %v6473_v44  ;;  %v6690_v34 = vld [vmem:[#allocation52_spill] sm:$0xff] }
 0x7d4   :  { %2984 = vmatpush1.bf16.msra.mxu0 %v6659_v35  ;;  %4048 = vmatpush3.bf16.msra.mxu1 %v6660_v6  ;;  %v6691_v35 = vld [vmem:[#allocation53_spill] sm:$0xff]  ;;  %v6692_v6 = vld [vmem:[#allocation54_spill] sm:$0xff] }
 0x7d5   :  { %2985 = vmatprep.subr.bf16.mxu0 %v6661_v4  ;;  %4049 = vmatprep.subr.bf16.mxu1 %v6473_v44  ;;  %v6693_v4 = vld [vmem:[#allocation55_spill] sm:$0xff] }
 0x7d8   :  { %2986 = vmatpush1.bf16.msra.mxu0 %v6662_v41  ;;  %4050 = vmatpush3.bf16.msra.mxu1 %v6663_v8  ;;  %v6694_v41 = vld [vmem:[#allocation56_spill] sm:$0xff]  ;;  %v6695_v8 = vld [vmem:[#allocation57_spill] sm:$0xff] }
 0x7d9   :  { %2987 = vmatprep.subr.bf16.mxu0 %v6664_v63  ;;  %4051 = vmatprep.subr.bf16.mxu1 %v6473_v44  ;;  %v6696_v63 = vld [vmem:[#allocation15_spill] sm:$0xff] }
 0x7dc   :  { %2988 = vmatpush1.bf16.msra.mxu0 %v6665_v1  ;;  %4052 = vmatpush3.bf16.msra.mxu1 %v6666_v38  ;;  %v6697_v1 = vld [vmem:[#allocation16_spill] sm:$0xff] }
 0x7dd   :  { %2989 = vmatprep.subr.bf16.mxu0 %v6667_v49  ;;  %4053 = vmatprep.subr.bf16.mxu1 %v6473_v44 }
 0x7e0   :  { %2990 = vmatpush1.bf16.msra.mxu0 %v6668_v55  ;;  %4054 = vmatpush3.bf16.msra.mxu1 %v6669_v21 }
 0x7e1   :  { %2991 = vmatprep.subr.bf16.mxu0 %v6670_v0  ;;  %4055 = vmatprep.subr.bf16.mxu1 %v6473_v44 }
 0x7e4   :  { %2992 = vmatpush1.bf16.msra.mxu0 %v6671_v53  ;;  %4056 = vmatpush3.bf16.msra.mxu1 %v6672_v52 }
 0x7e5   :  { %3062 = vmatprep.subr.bf16.mxu0 %v6673_v11  ;;  %4061 = vmatprep.subr.bf16.mxu1 %v6473_v44 }
 0x7e7   :  { %3010 = vmatmul.mubr.bf16.vlgmr.msra.gmra.mxu0 %v2843_v61  ;;  %4058 = vmatmul.mubr.bf16.vlgmr.msra.gmra.mxu1 %v2843_v61  ;;  %v6687_v61 = vld [vmem:[#allocation49_spill] sm:$0xff] }
 0x7e8   :  { %3063 = vmatpush1.bf16.msra.mxu0 %v6674_v10  ;;  %4062 = vmatpush3.bf16.msra.mxu1 %v6675_v13 }
 0x7e9   :  { %3064 = vmatprep.subr.bf16.mxu0 %v6676_v39  ;;  %4063 = vmatprep.subr.bf16.mxu1 %v6473_v44 }
 0x7ea   :  { %3094 = vmatprep.mubr.bf16.mxu0 %v6474_v48  ;;  %4077 = vmatprep.mubr.msk.bf16.mxu1 %vm4671_vm0, %v6473_v44 }
 0x7ec   :  { %3065 = vmatpush1.bf16.msra.mxu0 %v6677_v14  ;;  %4064 = vmatpush3.bf16.msra.mxu1 %v6678_v62 }
 0x7ed   :  { %3066 = vmatprep.subr.bf16.mxu0 %v6679_v26  ;;  %4065 = vmatprep.subr.bf16.mxu1 %v6473_v44 }
 0x7f0   :  { %3067 = vmatpush1.bf16.msra.mxu0 %v6680_v29  ;;  %4066 = vmatpush3.bf16.msra.mxu1 %v6681_v43 }
 0x7f1   :  { %3068 = vmatprep.subr.bf16.mxu0 %v6682_v51  ;;  %4067 = vmatprep.subr.bf16.mxu1 %v6473_v44 }
 0x7f4   :  { %3069 = vmatpush1.bf16.msra.mxu0 %v6683_v3  ;;  %4068 = vmatpush3.bf16.msra.mxu1 %v6684_v47 }
 0x7f5   :  { %3070 = vmatprep.subr.bf16.mxu0 %v6685_v16  ;;  %4069 = vmatprep.subr.bf16.mxu1 %v6473_v44 }
 0x7f8   :  { %3071 = vmatpush1.bf16.msra.mxu0 %v6686_v23  ;;  %4070 = vmatpush3.bf16.msra.mxu1 %v6687_v61 }
 0x7f9   :  { %3072 = vmatprep.subr.bf16.mxu0 %v6688_v45  ;;  %4071 = vmatprep.subr.bf16.mxu1 %v6473_v44 }
 0x7fc   :  { %3073 = vmatpush1.bf16.msra.mxu0 %v6689_v31  ;;  %4072 = vmatpush3.bf16.msra.mxu1 %v6690_v34 }
 0x7fd   :  { %3074 = vmatprep.subr.bf16.mxu0 %v6691_v35  ;;  %4073 = vmatprep.subr.bf16.mxu1 %v6473_v44 }
 0x800   :  { %3075 = vmatpush1.bf16.msra.mxu0 %v6692_v6  ;;  %4074 = vmatpush3.bf16.msra.mxu1 %v6693_v4 }
 0x801   :  { %3076 = vmatprep.subr.bf16.mxu0 %v6694_v41  ;;  %4075 = vmatprep.subr.bf16.mxu1 %v6473_v44 }
 0x804   :  { %3077 = vmatpush1.bf16.msra.mxu0 %v6695_v8  ;;  %4076 = vmatpush3.bf16.msra.mxu1 %v6696_v63  ;;  %v6207_v63 = vld [vmem:[%s6283_s7] ss:$0 sm:$0xff] }
 0x805   :  { %3183 = vmatprep.subr.bf16.mxu0 %v6697_v1  ;;  %4081 = vmatprep.subr.bf16.mxu1 %v6473_v44 }
 0x867   :  { %v2800_v38 = vpop.f32.mrf.mxu1  ;;  %v2757_v0 = vpop.f32.mrf.mxu0 }
 0x868   :  { %v2954_v1 = vadd.f32 %v6207_v63, %v2800_v38  ;;  %v2971_v38 = vld [vmem:[#allocation2 + $0x150] sm:$0xff] }
 0x869   :  { %v4019_v49 = vpop.f32.mrf.mxu1  ;;  %v2759_v53 = vpop.f32.mrf.mxu0 }
 0x86b   :  { %v2803_v55 = vpop.f32.mrf.mxu1  ;;  %v2761_v52 = vpop.f32.mrf.mxu0 }
 0x86d   :  { %v4020_v21 = vpop.f32.mrf.mxu1  ;;  %v2763_v11 = vpop.f32.mrf.mxu0 }
 0x887   :  { %v2878_v10 = vpop.f32.mrf.mxu0  ;;  %v2921_v13 = vpop.f32.mrf.mxu1 }
 0x888   :  { %v2928_v39 = vadd.f32 %v2878_v10, %v2757_v0  ;;  %v6213_v0 = vld [vmem:[%s6282_s6] ss:$0 sm:$0xff]  ;;  %v2955_v10 = vadd.f32 %v6207_v63, %v2803_v55  ;;  %s4672_s6 = smov [#allocation10]  }
 0x889   :  { %v2880_v14 = vpop.f32.mrf.mxu0  ;;  %v4039_v62 = vpop.f32.mrf.mxu1  ;;  %s3316_s7 = sshll.u32 %s4672_s6, 4  ;;  %s3317_s7 = int_to_ptr.vmem [resolvable:$true] %s3316_s7 }
 0x88a   :  { %v2932_v26 = vadd.f32 %v2928_v39, %v5086_v22  ;;  %v2929_v23 = vadd.f32 %v2880_v14, %v2759_v53  ;;  %v2952_v53 = vadd.f32 %v6213_v0, %v2921_v13  ;;  %s4633_s21 = scalar_lea.vmem %s3317_s7, 256  ;;  %p4638_p7 = scmp.lt.s32.totalorder %s3317_s7, %s3317_s7 }
 0x88b   :  { %v2882_v29 = vpop.f32.mrf.mxu0  ;;  %v2924_v43 = vpop.f32.mrf.mxu1  ;;  %p4634_p6 = scmp.ne.s32.totalorder %s3317_s7, %s4633_s21  ;;  %p4639_p8 = scmp.lt.s32.totalorder %s4633_s21, %s4633_s21 }
 0x88c   :  { %v2936_v51 = vmul.f32 0.5, %v2932_v26  ;;  %v2930_v3 = vadd.f32 %v2882_v29, %v2761_v52  ;;  %v2933_v34 = vadd.f32 %v2929_v23, %v6626_v46  ;;  %v2953_v62 = vadd.f32 %v6213_v0, %v2924_v43  ;;  %v2972_v43 = vld [vmem:[#allocation2 + $0x158] sm:$0xff] }
 0x88d   :  { %v2884_v47 = vpop.f32.mrf.mxu0  ;;  %v4040_v16 = vpop.f32.mrf.mxu1  ;;  %p4640_p9 = por %p4639_p8, %p4638_p7 }
 0x88e   :  { %4367 = vtanh.f32 %v2936_v51  ;;  %v2934_v61 = vadd.f32 %v2930_v3, %v5086_v22  ;;  %v2931_v31 = vadd.f32 %v2884_v47, %v2763_v11  ;;  %v2937_v6 = vmul.f32 0.5, %v2933_v34 }
 0x88f   :  { %p4641_p10 = pnand %p4640_p9, %p4634_p6 }
 0x890   :  { %v2938_v45 = vmul.f32 0.5, %v2934_v61  ;;  %v2935_v35 = vadd.f32 %v2931_v31, %v6626_v46 }
 0x892   :  { %4369 = vtanh.f32 %v2938_v45  ;;  %v2939_v4 = vmul.f32 0.5, %v2935_v35  ;;  %v2974_v45 = vld [vmem:[#allocation2 + $0x168] sm:$0xff] }
 0x893   :  { %4371 = vtanh.f32 %v2937_v6 }
 0x894   :  { %4373 = vtanh.f32 %v2939_v4 }
 0x89b   :  { %v4368_v41 = vpop.eup %4367 }
 0x89c   :  { %v2944_v8 = vadd.f32 1.0, %v4368_v41 }
 0x89e   :  { %v2948_v49 = vmul.f32 0.5, %v2944_v8 }
 0x89f   :  { %v4370_v21 = vpop.eup %4369 }
 0x8a0   :  { %v2956_v52 = vmul.f32 %v2954_v1, %v2948_v49  ;;  %v2946_v11 = vadd.f32 1.0, %v4370_v21  ;;  %v4372_v51 = vpop.eup %4371  ;;  %v2975_v49 = vld [vmem:[#allocation2 + $0x170] sm:$0xff] }
 0x8a1   :  { %v4374_v23 = vpop.eup %4373  ;;  %v2945_v31 = vadd.f32 1.0, %v4372_v51 }
 0x8a2   :  { %v2958_v39 = vadd.f32 %v2956_v52, %v2952_v53  ;;  %v2950_v14 = vmul.f32 0.5, %v2946_v11  ;;  %v2947_v6 = vadd.f32 1.0, %v4374_v23 }
 0x8a3   :  { %v2949_v8 = vmul.f32 0.5, %v2945_v31 }
 0x8a4   :  { %4375 = vtanh.f32 %v2958_v39  ;;  %v2957_v26 = vmul.f32 %v2955_v10, %v2950_v14  ;;  %v2951_v53 = vmul.f32 0.5, %v2947_v6 }
 0x8a5   :  { %v2962_v10 = vsub.f32 1.0, %v2949_v8 }
 0x8a6   :  { %v2959_v29 = vadd.f32 %v2957_v26, %v2953_v62  ;;  %v2963_v14 = vsub.f32 1.0, %v2951_v53  ;;  %v2967_v51 = vmul.f32 %v2951_v53, %v6076_v20  ;;  %v2973_v20 = vld [vmem:[#allocation2 + $0x160] sm:$0xff] }
 0x8a7   :  { %v3011_v3 = vpop.f32.mrf.mxu0  ;;  %v3054_v47 = vpop.f32.mrf.mxu1 }
 0x8a8   :  { %4377 = vtanh.f32 %v2959_v29  ;;  %v3146_v16 = vadd.f32 %v3011_v3, %v2971_v38  ;;  %v2966_v29 = vmul.f32 %v2949_v8, %v6074_v50  ;;  %v2976_v8 = vld [vmem:[#allocation2 + $0x178] sm:$0xff] }
 0x8a9   :  { %v3013_v61 = vpop.f32.mrf.mxu0  ;;  %v4059_v13 = vpop.f32.mrf.mxu1 }
 0x8aa   :  { %v3150_v34 = vmul.f32 0.5, %v3146_v16  ;;  %v3147_v52 = vadd.f32 %v3013_v61, %v2972_v43 }
 0x8ab   :  { %v3015_v55 = vpop.f32.mrf.mxu0  ;;  %v3057_v35 = vpop.f32.mrf.mxu1 }
 0x8ac   :  { %4379 = vtanh.f32 %v3150_v34  ;;  %v3148_v4 = vadd.f32 %v3015_v55, %v2974_v45  ;;  %v3151_v62 = vmul.f32 0.5, %v3147_v52  ;;  %v3166_v55 = vadd.f32 %v6083_v59, %v3054_v47 }
 0x8ad   :  { %v4060_v41 = vpop.f32.mrf.mxu1  ;;  %v3017_v21 = vpop.f32.mrf.mxu0 }
 0x8ae   :  { %v3152_v1 = vmul.f32 0.5, %v3148_v4  ;;  %v3149_v39 = vadd.f32 %v3017_v21, %v2975_v49  ;;  %v3167_v41 = vadd.f32 %v6083_v59, %v3057_v35 }
 0x8b0   :  { %4381 = vtanh.f32 %v3152_v1  ;;  %v3153_v3 = vmul.f32 0.5, %v3149_v39 }
 0x8b1   :  { %v4376_v11 = vpop.eup %4375  ;;  %4383 = vtanh.f32 %v3151_v62 }
 0x8b2   :  { %v2964_v26 = vmul.f32 %v4376_v11, %v2962_v10  ;;  %4385 = vtanh.f32 %v3153_v3 }
 0x8b4   :  { %v6220_v23 = vadd.f32 %v2966_v29, %v2964_v26 }
 0x8b5   :  { %v4378_v38 = vpop.eup %4377 }
 0x8b6   :  { %v2965_v16 = vmul.f32 %v4378_v38, %v2963_v14 }
 0x8b8   :  { %v6222_v13 = vadd.f32 %v2967_v51, %v2965_v16 }
 0x8b9   :  { %v4380_v61 = vpop.eup %4379 }
 0x8ba   :  { %v3158_v45 = vadd.f32 1.0, %v4380_v61  ;;  %v3061_v31 = vpack.c.bf16 %v6222_v13, %v6220_v23 }
 0x8bc   :  { %v3162_v34 = vmul.f32 0.5, %v3158_v45  ;;  %3095 = vmatmul.mubr.bf16.vlgmr.msra.gmra.mxu0 %v3061_v31  ;;  %4078 = vmatmul.mubr.bf16.vlgmr.msra.gmra.mxu1 %v3061_v31 }
 0x8bd   :  { %v4382_v50 = vpop.eup %4381  ;;  %3184 = vmatpush1.bf16.msra.mxu0 %v5850_v28  ;;  %4082 = vmatpush3.bf16.msra.mxu1 %v5853_v54 }
 0x8be   :  { %v3168_v6 = vmul.f32 %v3166_v55, %v3162_v34  ;;  %v3160_v4 = vadd.f32 1.0, %v4382_v50  ;;  %3185 = vmatprep.subr.bf16.mxu0 %v5856_v2  ;;  %4083 = vmatprep.subr.bf16.mxu1 %v6473_v44 }
 0x8bf   :  { %3215 = vmatprep.mubr.bf16.mxu0 %v6474_v48  ;;  %4097 = vmatprep.mubr.msk.bf16.mxu1 %vm4671_vm0, %v6473_v44  ;;  %v4384_v48 = vpop.eup %4383 }
 0x8c0   :  { %v3170_v47 = vadd.f32 %v3168_v6, %v2973_v20  ;;  %v3164_v43 = vmul.f32 0.5, %v3160_v4  ;;  %v4386_v2 = vpop.eup %4385 }
 0x8c1   :  { %3186 = vmatpush1.bf16.msra.mxu0 %v5864_v12  ;;  %4084 = vmatpush3.bf16.msra.mxu1 %v5867_v25  ;;  %v3159_v12 = vadd.f32 1.0, %v4384_v48  ;;  %v3161_v25 = vadd.f32 1.0, %v4386_v2 }
 0x8c2   :  { %4387 = vtanh.f32 %v3170_v47  ;;  %v3169_v28 = vmul.f32 %v3167_v41, %v3164_v43  ;;  %3187 = vmatprep.subr.bf16.mxu0 %v5870_v57  ;;  %4085 = vmatprep.subr.bf16.mxu1 %v6473_v44 }
 0x8c3   :  { %v3163_v57 = vmul.f32 0.5, %v3159_v12 }
 0x8c4   :  { %v3171_v54 = vadd.f32 %v3169_v28, %v2976_v8 }
 0x8c5   :  { %3188 = vmatpush1.bf16.msra.mxu0 %v5874_v24  ;;  %4086 = vmatpush3.bf16.msra.mxu1 %v5877_v17  ;;  %v3165_v24 = vmul.f32 0.5, %v3161_v25 }
 0x8c6   :  { %4389 = vtanh.f32 %v3171_v54  ;;  %3189 = vmatprep.subr.bf16.mxu0 %v5880_v36  ;;  %4087 = vmatprep.subr.bf16.mxu1 %v6473_v44  ;;  %v3174_v36 = vsub.f32 1.0, %v3163_v57 }
 0x8c9   :  { %3190 = vmatpush1.bf16.msra.mxu0 %v5884_v33  ;;  %4088 = vmatpush3.bf16.msra.mxu1 %v5887_v9  ;;  %v3175_v9 = vsub.f32 1.0, %v3165_v24 }
 0x8ca   :  { %3191 = vmatprep.subr.bf16.mxu0 %v5890_v58  ;;  %4089 = vmatprep.subr.bf16.mxu1 %v6473_v44 }
 0x8cd   :  { %3192 = vmatpush1.bf16.msra.mxu0 %v5894_v42  ;;  %4090 = vmatpush3.bf16.msra.mxu1 %v5897_v37  ;;  %v3178_v42 = vmul.f32 %v3163_v57, %v6120_v60 }
 0x8ce   :  { %3193 = vmatprep.subr.bf16.mxu0 %v5900_v5  ;;  %4091 = vmatprep.subr.bf16.mxu1 %v6473_v44  ;;  %v3179_v5 = vmul.f32 %v3165_v24, %v6122_v27 }
 0x8cf   :  { %v4388_v17 = vpop.eup %4387 }
 0x8d0   :  { %v3176_v33 = vmul.f32 %v4388_v17, %v3174_v36 }
 0x8d1   :  { %3194 = vmatpush1.bf16.msra.mxu0 %v5904_v18  ;;  %4092 = vmatpush3.bf16.msra.mxu1 %v5907_v56 }
 0x8d2   :  { %3195 = vmatprep.subr.bf16.mxu0 %v5910_v15  ;;  %4093 = vmatprep.subr.bf16.mxu1 %v6473_v44  ;;  %v3180_v18 = vadd.f32 %v3178_v42, %v3176_v33 }
 0x8d3   :  { %v4390_v58 = vpop.eup %4389 }
 0x8d4   :  { %v3177_v37 = vmul.f32 %v4390_v58, %v3175_v9 }
 0x8d5   :  { %3196 = vmatpush1.bf16.msra.mxu0 %v5916_v32  ;;  %4094 = vmatpush3.bf16.msra.mxu1 %v5919_v40 }
 0x8d6   :  { %3197 = vmatprep.subr.bf16.mxu0 %v5922_v7  ;;  %4095 = vmatprep.subr.bf16.mxu1 %v6473_v44  ;;  %v3181_v56 = vadd.f32 %v3179_v5, %v3177_v37 }
 0x8d8   :  { %v3182_v59 = vpack.c.bf16 %v3181_v56, %v3180_v18 }
 0x8d9   :  { %3198 = vmatpush1.bf16.msra.mxu0 %v5932_v30  ;;  %4096 = vmatpush3.bf16.msra.mxu1 %v5935_v19 }
 0x8dc   :  { %3216 = vmatmul.mubr.bf16.vlgmr.msra.gmra.mxu0 %v3182_v59  ;;  %4098 = vmatmul.mubr.bf16.vlgmr.msra.gmra.mxu1 %v3182_v59 }
 0x97c   :  { %v3139_v15 = vpop.f32.mrf.mxu1  ;;  %v3096_v32 = vpop.f32.mrf.mxu0 }
 0x97d   :  { %v3293_v55 = vadd.f32 %v6207_v63, %v3139_v15 }
 0x97e   :  { %v4079_v60 = vpop.f32.mrf.mxu1  ;;  %v3098_v1 = vpop.f32.mrf.mxu0 }
 0x980   :  { %v3142_v27 = vpop.f32.mrf.mxu1  ;;  %v3100_v40 = vpop.f32.mrf.mxu0 }
 0x981   :  { %v3294_v47 = vadd.f32 %v6207_v63, %v3142_v27 }
 0x982   :  { %v4080_v35 = vpop.f32.mrf.mxu1  ;;  %v3102_v49 = vpop.f32.mrf.mxu0 }
 0x99c   :  { %v3217_v7 = vpop.f32.mrf.mxu0  ;;  %v3260_v21 = vpop.f32.mrf.mxu1 }
 0x99d   :  { %v3267_v44 = vadd.f32 %v3217_v7, %v3096_v32  ;;  %v3291_v6 = vadd.f32 %v6213_v0, %v3260_v21 }
 0x99e   :  { %v3219_v53 = vpop.f32.mrf.mxu0  ;;  %v4099_v52 = vpop.f32.mrf.mxu1 }
 0x99f   :  { %v3271_v11 = vadd.f32 %v3267_v44, %v5086_v22  ;;  %v3268_v39 = vadd.f32 %v3219_v53, %v3098_v1 }
 0x9a0   :  { %v3221_v30 = vpop.f32.mrf.mxu0  ;;  %v3263_v10 = vpop.f32.mrf.mxu1 }
 0x9a1   :  { %v3275_v19 = vmul.f32 0.5, %v3271_v11  ;;  %v3269_v14 = vadd.f32 %v3221_v30, %v3100_v40  ;;  %v3272_v29 = vadd.f32 %v3268_v39, %v6626_v46 }
 0x9a2   :  { %v3223_v62 = vpop.f32.mrf.mxu0  ;;  %v4100_v26 = vpop.f32.mrf.mxu1 }
 0x9a3   :  { %4391 = vtanh.f32 %v3275_v19  ;;  %v3273_v38 = vadd.f32 %v3269_v14, %v5086_v22  ;;  %v3270_v3 = vadd.f32 %v3223_v62, %v3102_v49  ;;  %v3276_v16 = vmul.f32 0.5, %v3272_v29 }
 0x9a5   :  { %v3277_v51 = vmul.f32 0.5, %v3273_v38  ;;  %v3274_v61 = vadd.f32 %v3270_v3, %v6626_v46  ;;  %v3292_v46 = vadd.f32 %v6213_v0, %v3263_v10 }
 0x9a7   :  { %4393 = vtanh.f32 %v3277_v51  ;;  %v3278_v45 = vmul.f32 0.5, %v3274_v61 }
 0x9a8   :  { %4395 = vtanh.f32 %v3276_v16 }
 0x9a9   :  { %4397 = vtanh.f32 %v3278_v45 }
 0x9b0   :  { %v4392_v31 = vpop.eup %4391 }
 0x9b1   :  { %v3283_v34 = vadd.f32 1.0, %v4392_v31 }
 0x9b3   :  { %v3287_v50 = vmul.f32 0.5, %v3283_v34 }
 0x9b4   :  { %v4394_v20 = vpop.eup %4393 }
 0x9b5   :  { %v3295_v22 = vmul.f32 %v3293_v55, %v3287_v50  ;;  %v3285_v4 = vadd.f32 1.0, %v4394_v20  ;;  %v4396_v28 = vpop.eup %4395 }
 0x9b6   :  { %v3284_v48 = vadd.f32 1.0, %v4396_v28  ;;  %v4398_v2 = vpop.eup %4397 }
 0x9b7   :  { %v3297_v43 = vadd.f32 %v3295_v22, %v3291_v6  ;;  %v3289_v41 = vmul.f32 0.5, %v3285_v4  ;;  %v3286_v25 = vadd.f32 1.0, %v4398_v2 }
 0x9b8   :  { %v3288_v12 = vmul.f32 0.5, %v3284_v48 }
 0x9b9   :  { %4399 = vtanh.f32 %v3297_v43  ;;  %v3296_v8 = vmul.f32 %v3294_v47, %v3289_v41  ;;  %v3290_v24 = vmul.f32 0.5, %v3286_v25 }
 0x9ba   :  { %v3301_v57 = vsub.f32 1.0, %v3288_v12  ;;  %v3305_v33 = vmul.f32 %v3288_v12, %v6220_v23 }
 0x9bb   :  { %v3298_v54 = vadd.f32 %v3296_v8, %v3292_v46  ;;  %v3302_v63 = vsub.f32 1.0, %v3290_v24  ;;  %v3306_v42 = vmul.f32 %v3290_v24, %v6222_v13 }
 0x9bd   :  { %4401 = vtanh.f32 %v3298_v54 }
 0x9c6   :  { %v4400_v17 = vpop.eup %4399 }
 0x9c7   :  { %v3303_v36 = vmul.f32 %v4400_v17, %v3301_v57 }
 0x9c9   :  { %v3307_v9 = vadd.f32 %v3305_v33, %v3303_v36 }
 0x9ca   :  { %v4402_v58 = vpop.eup %4401 }
 0x9cb   :  { %v3304_v0 = vmul.f32 %v4402_v58, %v3302_v63  ;;  %3309 = vst [vmem:[#allocation10] sm:$0xff] %v3307_v9 }
 0x9cd   :  { %v3308_v37 = vadd.f32 %v3306_v42, %v3304_v0 }
 0x9cf   :  { %3310 = vst [vmem:[#allocation10 + $0x8] sm:$0xff] %v3308_v37 }
 0x9d0   :  { %4644 = shalt.err (!%p4641_p10)
}
 0x9d1   :  { %s4673_s2 = smov 128   ;;  %s4674_s22 = smov 8  }
 0x9d2   :  { %3322 = dma.vmem_to_hbm [thread:$0]  %s3317_s7, 256, %s6284_s8, [#allocation4], %s4673_s2, %s4673_s2, %s4674_s22  }
 0x9d3   :  { %4659 = dma.done.wait [#allocation4], 256  }
 0x9d4   :  { %4660 = vsyncadd [#allocation4], 4294967040 }
 0x9d5   :  { %3326 = vsyncpa [#allocation3], 1 }
 0x9d6   :  { %3327 = vsyncpa [#allocation6], 1 }
 0x9d7   :  { %3328 = vsyncpa [#allocation9], 1 }
 0x9d8   :  { %3329 = vsyncpa [#allocation4], 1 }

</bundles_post_ra>
